<compile_context>
chip_gen: v7x
topology: tpu7x:2x2x1
jax: 0.10.0
libtpu: 0.0.40
codegen_flags: <defaults>
</compile_context>

<pallas_src>
import functools

import jax
import jax.numpy as jnp
from jax import lax
from jax.experimental import pallas as pl
from jax.experimental.pallas import tpu as pltpu

EPS = 1e-3


def dwconv_bn_kernel(x_ref, w_ref, gamma_ref, beta_ref, o_ref, *, H, W):
    # x_ref     : (N, H, Wp, Cp)  NHWC; width zero-padded (1 left, Wp-W-1 right),
    #                             channels zero-padded to a multiple of 128.
    # w_ref     : (3, 3, Cp)      per-channel depthwise weights (channel-padded)
    # gamma_ref : (1, Cp), beta_ref : (1, Cp)
    # o_ref     : (N, H, Wp, Cp)  rows >= W / channels >= C are junk, sliced off outside.
    N = x_ref.shape[0]
    Wp = x_ref.shape[2]
    Cp = x_ref.shape[3]
    f32 = jnp.float32

    # Hoist the 9 per-tap weight vectors and the validity mask out of the
    # (unrolled) row loops — JAX does not CSE the extraction/broadcasts.
    w = w_ref[...]                                                      # (3, 3, Cp)
    w_taps = [[w[kh, kw:kw + 1, :] for kw in range(3)] for kh in range(3)]  # (1, Cp)
    valid = (lax.broadcasted_iota(jnp.int32, (Wp, 1), 0) < W).astype(f32)   # (Wp, 1)
    zero_row = jnp.zeros((Wp, Cp), dtype=f32)                           # H-direction pad

    # Full-tile BN-stat partials; sublane (XLU) reduction happens once at the end.
    s_sum_acc = jnp.zeros((Wp, Cp), dtype=f32)
    s_sq_acc = jnp.zeros((Wp, Cp), dtype=f32)

    # Pass 1: row-streamed depthwise 3x3 conv on full-width (Wp, Cp) tiles.
    # Tap alignment uses a sublane rotate; the wrap-around only lands in rows
    # >= W, which are masked out of the stats and sliced off by the caller.
    for n in range(N):
        r0 = zero_row                                    # input row h-1 (padded)
        r1 = x_ref[n, 0, :, :]                           # input row h     (Wp, Cp)
        for h in range(H):
            r2 = x_ref[n, h + 1, :, :] if h + 1 < H else zero_row
            rows = (r0, r1, r2)
            # Peel tap (0,0) into the accumulator init (saves one full-tile add).
            acc = rows[0] * w_taps[0][0]
            for kh in range(3):
                row = rows[kh]
                for kw in range(3):
                    if kh == 0 and kw == 0:
                        continue
                    # result[i] = row[i + kw]  (positive-shift circular rotate)
                    shifted = row if kw == 0 else pltpu.roll(row, shift=Wp - kw, axis=0)
                    acc = acc + shifted * w_taps[kh][kw]     # pure VPU MAC
            o_ref[n, h, :, :] = acc                          # unmasked, aligned vst
            s_sum_acc = s_sum_acc + acc                      # VPU adds only
            s_sq_acc = s_sq_acc + acc * acc
            r0, r1 = r1, r2                                  # slide the 3-row window

    # Single sublane reduction of the stat partials (garbage rows masked out).
    s_sum = jnp.sum(s_sum_acc * valid, axis=0, keepdims=True)    # (1, Cp)
    s_sq = jnp.sum(s_sq_acc * valid, axis=0, keepdims=True)      # (1, Cp)

    # BatchNorm2d (training-mode batch stats, biased variance) from moments.
    inv_cnt = 1.0 / float(N * H * W)
    mean = s_sum * inv_cnt
    var = jnp.maximum(s_sq * inv_cnt - mean * mean, 0.0)         # clamp >= 0
    inv_std = lax.rsqrt(var + EPS)                               # EUP
    scale = gamma_ref[...] * inv_std                             # (1, Cp)
    shift = beta_ref[...] - mean * scale                         # (1, Cp)

    # Pass 2: normalize rows in place (full, aligned loads/stores).
    for n in range(N):
        for h in range(H):
            o_ref[n, h, :, :] = o_ref[n, h, :, :] * scale + shift


def dwconv_bn(x_nchw, weight_oihw, gamma, beta):
    """x_nchw: (N, C, H, W); weight_oihw: (C, 1, 3, 3) like PyTorch depthwise conv."""
    N, C, H, W = x_nchw.shape
    Cp = ((C + 127) // 128) * 128             # lane-dense channels (200 -> 256)
    Wp = ((W + 2 + 7) // 8) * 8               # sublane-aligned padded width (>= W + 2)

    # NCHW -> NHWC; W and channel zero-padding fold into the same XLA copy.
    x = jnp.transpose(x_nchw, (0, 2, 3, 1)).astype(jnp.float32)
    x = jnp.pad(x, ((0, 0), (0, 0), (1, Wp - W - 1), (0, Cp - C)))   # (N, H, Wp, Cp)

    # (C, 1, 3, 3) -> (3, 3, Cp); pad gamma/beta with zeros (padded channels
    # produce exactly 0 and are sliced off).
    w = jnp.transpose(weight_oihw[:, 0, :, :], (1, 2, 0)).astype(jnp.float32)
    w = jnp.pad(w, ((0, 0), (0, 0), (0, Cp - C)))
    g = jnp.pad(gamma.astype(jnp.float32), (0, Cp - C)).reshape(1, Cp)
    b = jnp.pad(beta.astype(jnp.float32), (0, Cp - C)).reshape(1, Cp)

    kern = functools.partial(dwconv_bn_kernel, H=H, W=W)

    cost = pl.CostEstimate(
        flops=(2 * 9 + 6) * N * H * Wp * Cp,
        transcendentals=Cp,
        bytes_accessed=4 * (x.size + w.size + g.size + b.size + 2 * N * H * Wp * Cp),
    )

    out_nhwc = pl.pallas_call(
        kern,
        out_shape=jax.ShapeDtypeStruct((N, H, Wp, Cp), jnp.float32),
        in_specs=[
            pl.BlockSpec((N, H, Wp, Cp), lambda: (0, 0, 0, 0)),
            pl.BlockSpec((3, 3, Cp), lambda: (0, 0, 0)),
            pl.BlockSpec((1, Cp), lambda: (0, 0)),
            pl.BlockSpec((1, Cp), lambda: (0, 0)),
        ],
        out_specs=pl.BlockSpec((N, H, Wp, Cp), lambda: (0, 0, 0, 0)),
        cost_estimate=cost,
    )(x, w, g, b)

    # Drop W / channel padding, NHWC -> NCHW (fuses into one XLA copy).
    return jnp.transpose(out_nhwc[:, :, :W, :C], (0, 3, 1, 2))


dwconv_bn = jax.jit(dwconv_bn)


def reference(x_nchw, weight_oihw, gamma, beta):
    """Pure-JAX reference: depthwise conv + training-mode batchnorm."""
    y = lax.conv_general_dilated(
        x_nchw, weight_oihw,
        window_strides=(1, 1), padding=((1, 1), (1, 1)),
        dimension_numbers=("NCHW", "OIHW", "NCHW"),
        feature_group_count=x_nchw.shape[1],
    )
    mean = jnp.mean(y, axis=(0, 2, 3), keepdims=True)
    var = jnp.mean((y - mean) ** 2, axis=(0, 2, 3), keepdims=True)
    g = gamma.reshape(1, -1, 1, 1)
    b = beta.reshape(1, -1, 1, 1)
    return (y - mean) * lax.rsqrt(var + EPS) * g + b


if __name__ == "__main__":
    key = jax.random.PRNGKey(0)
    k_x, k_w, k_g, k_b = jax.random.split(key, 4)

    N, C, H, W = 1, 200, 14, 14  # matches the module's fixed input x81
    x = jax.random.normal(k_x, (N, C, H, W), dtype=jnp.float32)
    weight = jax.random.normal(k_w, (C, 1, 3, 3), dtype=jnp.float32) * 0.1
    gamma = 1.0 + 0.1 * jax.random.normal(k_g, (C,), dtype=jnp.float32)
    beta = 0.1 * jax.random.normal(k_b, (C,), dtype=jnp.float32)

    # TODO(synk): BatchNorm running-stat (momentum) buffer update is a training-
    # time side effect, not part of the returned tensor; it is not implemented.
    out = dwconv_bn(x, weight, gamma, beta)
    jax.block_until_ready(out)

    ref = reference(x, weight, gamma, beta)
    assert out.shape == (N, C, H, W)
    assert jnp.allclose(out, ref, atol=1e-3, rtol=1e-3)

    print("KERNEL_OK")
</pallas_src>

<mosaic_0001>
module attributes {stable_mosaic.version = 11 : i64} {
  func.func @dwconv_bn_kernel(%arg0: memref<1x14x16x256xf32, #tpu.memory_space<vmem>>, %arg1: memref<3x3x256xf32, #tpu.memory_space<vmem>>, %arg2: memref<1x256xf32, #tpu.memory_space<vmem>>, %arg3: memref<1x256xf32, #tpu.memory_space<vmem>>, %arg4: memref<1x14x16x256xf32, #tpu.memory_space<vmem>>) attributes {dimension_semantics = [], scalar_prefetch = 0 : i64, scratch_operands = 0 : i64, tpu.core_type = #tpu.core_type<tc>} {
    %c0 = arith.constant 0 : index
    %c0_0 = arith.constant 0 : index
    %c0_1 = arith.constant 0 : index
    %0 = vector.load %arg1[%c0, %c0_0, %c0_1] : memref<3x3x256xf32, #tpu.memory_space<vmem>>, vector<3x3x256xf32>
    %1 = vector.extract_strided_slice %0 {offsets = [0, 0, 0], sizes = [1, 1, 256], strides = [1, 1, 1]} : vector<3x3x256xf32> to vector<1x1x256xf32>
    %2 = vector.shape_cast %1 : vector<1x1x256xf32> to vector<1x256xf32>
    %3 = vector.extract_strided_slice %0 {offsets = [0, 1, 0], sizes = [1, 1, 256], strides = [1, 1, 1]} : vector<3x3x256xf32> to vector<1x1x256xf32>
    %4 = vector.shape_cast %3 : vector<1x1x256xf32> to vector<1x256xf32>
    %5 = vector.extract_strided_slice %0 {offsets = [0, 2, 0], sizes = [1, 1, 256], strides = [1, 1, 1]} : vector<3x3x256xf32> to vector<1x1x256xf32>
    %6 = vector.shape_cast %5 : vector<1x1x256xf32> to vector<1x256xf32>
    %7 = vector.extract_strided_slice %0 {offsets = [1, 0, 0], sizes = [1, 1, 256], strides = [1, 1, 1]} : vector<3x3x256xf32> to vector<1x1x256xf32>
    %8 = vector.shape_cast %7 : vector<1x1x256xf32> to vector<1x256xf32>
    %9 = vector.extract_strided_slice %0 {offsets = [1, 1, 0], sizes = [1, 1, 256], strides = [1, 1, 1]} : vector<3x3x256xf32> to vector<1x1x256xf32>
    %10 = vector.shape_cast %9 : vector<1x1x256xf32> to vector<1x256xf32>
    %11 = vector.extract_strided_slice %0 {offsets = [1, 2, 0], sizes = [1, 1, 256], strides = [1, 1, 1]} : vector<3x3x256xf32> to vector<1x1x256xf32>
    %12 = vector.shape_cast %11 : vector<1x1x256xf32> to vector<1x256xf32>
    %13 = vector.extract_strided_slice %0 {offsets = [2, 0, 0], sizes = [1, 1, 256], strides = [1, 1, 1]} : vector<3x3x256xf32> to vector<1x1x256xf32>
    %14 = vector.shape_cast %13 : vector<1x1x256xf32> to vector<1x256xf32>
    %15 = vector.extract_strided_slice %0 {offsets = [2, 1, 0], sizes = [1, 1, 256], strides = [1, 1, 1]} : vector<3x3x256xf32> to vector<1x1x256xf32>
    %16 = vector.shape_cast %15 : vector<1x1x256xf32> to vector<1x256xf32>
    %17 = vector.extract_strided_slice %0 {offsets = [2, 2, 0], sizes = [1, 1, 256], strides = [1, 1, 1]} : vector<3x3x256xf32> to vector<1x1x256xf32>
    %18 = vector.shape_cast %17 : vector<1x1x256xf32> to vector<1x256xf32>
    %19 = tpu.iota {dimensions = array<i32: 0>} : vector<16x1xi32>
    %c14_i32 = arith.constant 14 : i32
    %20 = vector.broadcast %c14_i32 : i32 to vector<16x1xi32>
    %21 = arith.cmpi slt, %19, %20 : vector<16x1xi32>
    %22 = arith.extui %21 : vector<16x1xi1> to vector<16x1xi32>
    %23 = arith.sitofp %22 : vector<16x1xi32> to vector<16x1xf32>
    %cst = arith.constant 0.000000e+00 : f32
    %24 = vector.broadcast %cst : f32 to vector<16x256xf32>
    %cst_2 = arith.constant 0.000000e+00 : f32
    %25 = vector.broadcast %cst_2 : f32 to vector<16x256xf32>
    %cst_3 = arith.constant 0.000000e+00 : f32
    %26 = vector.broadcast %cst_3 : f32 to vector<16x256xf32>
    %c0_4 = arith.constant 0 : index
    %c0_5 = arith.constant 0 : index
    %c0_6 = arith.constant 0 : index
    %c0_7 = arith.constant 0 : index
    %27 = vector.load %arg0[%c0_4, %c0_5, %c0_6, %c0_7] : memref<1x14x16x256xf32, #tpu.memory_space<vmem>>, vector<1x1x16x256xf32>
    %28 = vector.shape_cast %27 : vector<1x1x16x256xf32> to vector<16x256xf32>
    %c0_8 = arith.constant 0 : index
    %c1 = arith.constant 1 : index
    %c0_9 = arith.constant 0 : index
    %c0_10 = arith.constant 0 : index
    %29 = vector.load %arg0[%c0_8, %c1, %c0_9, %c0_10] : memref<1x14x16x256xf32, #tpu.memory_space<vmem>>, vector<1x1x16x256xf32>
    %30 = vector.shape_cast %29 : vector<1x1x16x256xf32> to vector<16x256xf32>
    %31 = vector.broadcast %2 : vector<1x256xf32> to vector<16x256xf32>
    %32 = arith.mulf %24, %31 : vector<16x256xf32>
    %c15_i32 = arith.constant 15 : i32
    %33 = tpu.dynamic_rotate %24 by %c15_i32 dim 0 : vector<16x256xf32>, i32 -> vector<16x256xf32>
    %34 = vector.broadcast %4 : vector<1x256xf32> to vector<16x256xf32>
    %35 = arith.mulf %33, %34 : vector<16x256xf32>
    %36 = arith.addf %32, %35 : vector<16x256xf32>
    %c14_i32_11 = arith.constant 14 : i32
    %37 = tpu.dynamic_rotate %24 by %c14_i32_11 dim 0 : vector<16x256xf32>, i32 -> vector<16x256xf32>
    %38 = vector.broadcast %6 : vector<1x256xf32> to vector<16x256xf32>
    %39 = arith.mulf %37, %38 : vector<16x256xf32>
    %40 = arith.addf %36, %39 : vector<16x256xf32>
    %41 = vector.broadcast %8 : vector<1x256xf32> to vector<16x256xf32>
    %42 = arith.mulf %28, %41 : vector<16x256xf32>
    %43 = arith.addf %40, %42 : vector<16x256xf32>
    %c15_i32_12 = arith.constant 15 : i32
    %44 = tpu.dynamic_rotate %28 by %c15_i32_12 dim 0 : vector<16x256xf32>, i32 -> vector<16x256xf32>
    %45 = vector.broadcast %10 : vector<1x256xf32> to vector<16x256xf32>
    %46 = arith.mulf %44, %45 : vector<16x256xf32>
    %47 = arith.addf %43, %46 : vector<16x256xf32>
    %c14_i32_13 = arith.constant 14 : i32
    %48 = tpu.dynamic_rotate %28 by %c14_i32_13 dim 0 : vector<16x256xf32>, i32 -> vector<16x256xf32>
    %49 = vector.broadcast %12 : vector<1x256xf32> to vector<16x256xf32>
    %50 = arith.mulf %48, %49 : vector<16x256xf32>
    %51 = arith.addf %47, %50 : vector<16x256xf32>
    %52 = vector.broadcast %14 : vector<1x256xf32> to vector<16x256xf32>
    %53 = arith.mulf %30, %52 : vector<16x256xf32>
    %54 = arith.addf %51, %53 : vector<16x256xf32>
    %c15_i32_14 = arith.constant 15 : i32
    %55 = tpu.dynamic_rotate %30 by %c15_i32_14 dim 0 : vector<16x256xf32>, i32 -> vector<16x256xf32>
    %56 = vector.broadcast %16 : vector<1x256xf32> to vector<16x256xf32>
    %57 = arith.mulf %55, %56 : vector<16x256xf32>
    %58 = arith.addf %54, %57 : vector<16x256xf32>
    %c14_i32_15 = arith.constant 14 : i32
    %59 = tpu.dynamic_rotate %30 by %c14_i32_15 dim 0 : vector<16x256xf32>, i32 -> vector<16x256xf32>
    %60 = vector.broadcast %18 : vector<1x256xf32> to vector<16x256xf32>
    %61 = arith.mulf %59, %60 : vector<16x256xf32>
    %62 = arith.addf %58, %61 : vector<16x256xf32>
    %c0_16 = arith.constant 0 : index
    %c0_17 = arith.constant 0 : index
    %c0_18 = arith.constant 0 : index
    %c0_19 = arith.constant 0 : index
    %63 = vector.load %arg4[%c0_16, %c0_17, %c0_18, %c0_19] : memref<1x14x16x256xf32, #tpu.memory_space<vmem>>, vector<1x1x16x256xf32>
    %64 = vector.shape_cast %63 : vector<1x1x16x256xf32> to vector<16x256xf32>
    %65 = vector.shape_cast %62 : vector<16x256xf32> to vector<1x1x16x256xf32>
    tpu.vector_store %arg4[%c0_16, %c0_17, %c0_18, %c0_19], %65 {strides = array<i32>} : memref<1x14x16x256xf32, #tpu.memory_space<vmem>>, vector<1x1x16x256xf32>,
    %66 = arith.addf %25, %62 : vector<16x256xf32>
    %67 = arith.mulf %62, %62 : vector<16x256xf32>
    %68 = arith.addf %26, %67 : vector<16x256xf32>
    %c0_20 = arith.constant 0 : index
    %c2 = arith.constant 2 : index
    %c0_21 = arith.constant 0 : index
    %c0_22 = arith.constant 0 : index
    %69 = vector.load %arg0[%c0_20, %c2, %c0_21, %c0_22] : memref<1x14x16x256xf32, #tpu.memory_space<vmem>>, vector<1x1x16x256xf32>
    %70 = vector.shape_cast %69 : vector<1x1x16x256xf32> to vector<16x256xf32>
    %71 = vector.broadcast %2 : vector<1x256xf32> to vector<16x256xf32>
    %72 = arith.mulf %28, %71 : vector<16x256xf32>
    %c15_i32_23 = arith.constant 15 : i32
    %73 = tpu.dynamic_rotate %28 by %c15_i32_23 dim 0 : vector<16x256xf32>, i32 -> vector<16x256xf32>
    %74 = vector.broadcast %4 : vector<1x256xf32> to vector<16x256xf32>
    %75 = arith.mulf %73, %74 : vector<16x256xf32>
    %76 = arith.addf %72, %75 : vector<16x256xf32>
    %c14_i32_24 = arith.constant 14 : i32
    %77 = tpu.dynamic_rotate %28 by %c14_i32_24 dim 0 : vector<16x256xf32>, i32 -> vector<16x256xf32>
    %78 = vector.broadcast %6 : vector<1x256xf32> to vector<16x256xf32>
    %79 = arith.mulf %77, %78 : vector<16x256xf32>
    %80 = arith.addf %76, %79 : vector<16x256xf32>
    %81 = vector.broadcast %8 : vector<1x256xf32> to vector<16x256xf32>
    %82 = arith.mulf %30, %81 : vector<16x256xf32>
    %83 = arith.addf %80, %82 : vector<16x256xf32>
    %c15_i32_25 = arith.constant 15 : i32
    %84 = tpu.dynamic_rotate %30 by %c15_i32_25 dim 0 : vector<16x256xf32>, i32 -> vector<16x256xf32>
    %85 = vector.broadcast %10 : vector<1x256xf32> to vector<16x256xf32>
    %86 = arith.mulf %84, %85 : vector<16x256xf32>
    %87 = arith.addf %83, %86 : vector<16x256xf32>
    %c14_i32_26 = arith.constant 14 : i32
    %88 = tpu.dynamic_rotate %30 by %c14_i32_26 dim 0 : vector<16x256xf32>, i32 -> vector<16x256xf32>
    %89 = vector.broadcast %12 : vector<1x256xf32> to vector<16x256xf32>
    %90 = arith.mulf %88, %89 : vector<16x256xf32>
    %91 = arith.addf %87, %90 : vector<16x256xf32>
    %92 = vector.broadcast %14 : vector<1x256xf32> to vector<16x256xf32>
    %93 = arith.mulf %70, %92 : vector<16x256xf32>
    %94 = arith.addf %91, %93 : vector<16x256xf32>
    %c15_i32_27 = arith.constant 15 : i32
    %95 = tpu.dynamic_rotate %70 by %c15_i32_27 dim 0 : vector<16x256xf32>, i32 -> vector<16x256xf32>
    %96 = vector.broadcast %16 : vector<1x256xf32> to vector<16x256xf32>
    %97 = arith.mulf %95, %96 : vector<16x256xf32>
    %98 = arith.addf %94, %97 : vector<16x256xf32>
    %c14_i32_28 = arith.constant 14 : i32
    %99 = tpu.dynamic_rotate %70 by %c14_i32_28 dim 0 : vector<16x256xf32>, i32 -> vector<16x256xf32>
    %100 = vector.broadcast %18 : vector<1x256xf32> to vector<16x256xf32>
    %101 = arith.mulf %99, %100 : vector<16x256xf32>
    %102 = arith.addf %98, %101 : vector<16x256xf32>
    %c0_29 = arith.constant 0 : index
    %c1_30 = arith.constant 1 : index
    %c0_31 = arith.constant 0 : index
    %c0_32 = arith.constant 0 : index
    %103 = vector.load %arg4[%c0_29, %c1_30, %c0_31, %c0_32] : memref<1x14x16x256xf32, #tpu.memory_space<vmem>>, vector<1x1x16x256xf32>
    %104 = vector.shape_cast %103 : vector<1x1x16x256xf32> to vector<16x256xf32>
    %105 = vector.shape_cast %102 : vector<16x256xf32> to vector<1x1x16x256xf32>
    tpu.vector_store %arg4[%c0_29, %c1_30, %c0_31, %c0_32], %105 {strides = array<i32>} : memref<1x14x16x256xf32, #tpu.memory_space<vmem>>, vector<1x1x16x256xf32>,
    %106 = arith.addf %66, %102 : vector<16x256xf32>
    %107 = arith.mulf %102, %102 : vector<16x256xf32>
    %108 = arith.addf %68, %107 : vector<16x256xf32>
    %c0_33 = arith.constant 0 : index
    %c3 = arith.constant 3 : index
    %c0_34 = arith.constant 0 : index
    %c0_35 = arith.constant 0 : index
    %109 = vector.load %arg0[%c0_33, %c3, %c0_34, %c0_35] : memref<1x14x16x256xf32, #tpu.memory_space<vmem>>, vector<1x1x16x256xf32>
    %110 = vector.shape_cast %109 : vector<1x1x16x256xf32> to vector<16x256xf32>
    %111 = vector.broadcast %2 : vector<1x256xf32> to vector<16x256xf32>
    %112 = arith.mulf %30, %111 : vector<16x256xf32>
    %c15_i32_36 = arith.constant 15 : i32
    %113 = tpu.dynamic_rotate %30 by %c15_i32_36 dim 0 : vector<16x256xf32>, i32 -> vector<16x256xf32>
    %114 = vector.broadcast %4 : vector<1x256xf32> to vector<16x256xf32>
    %115 = arith.mulf %113, %114 : vector<16x256xf32>
    %116 = arith.addf %112, %115 : vector<16x256xf32>
    %c14_i32_37 = arith.constant 14 : i32
    %117 = tpu.dynamic_rotate %30 by %c14_i32_37 dim 0 : vector<16x256xf32>, i32 -> vector<16x256xf32>
    %118 = vector.broadcast %6 : vector<1x256xf32> to vector<16x256xf32>
    %119 = arith.mulf %117, %118 : vector<16x256xf32>
    %120 = arith.addf %116, %119 : vector<16x256xf32>
    %121 = vector.broadcast %8 : vector<1x256xf32> to vector<16x256xf32>
    %122 = arith.mulf %70, %121 : vector<16x256xf32>
    %123 = arith.addf %120, %122 : vector<16x256xf32>
    %c15_i32_38 = arith.constant 15 : i32
    %124 = tpu.dynamic_rotate %70 by %c15_i32_38 dim 0 : vector<16x256xf32>, i32 -> vector<16x256xf32>
    %125 = vector.broadcast %10 : vector<1x256xf32> to vector<16x256xf32>
    %126 = arith.mulf %124, %125 : vector<16x256xf32>
    %127 = arith.addf %123, %126 : vector<16x256xf32>
    %c14_i32_39 = arith.constant 14 : i32
    %128 = tpu.dynamic_rotate %70 by %c14_i32_39 dim 0 : vector<16x256xf32>, i32 -> vector<16x256xf32>
    %129 = vector.broadcast %12 : vector<1x256xf32> to vector<16x256xf32>
    %130 = arith.mulf %128, %129 : vector<16x256xf32>
    %131 = arith.addf %127, %130 : vector<16x256xf32>
    %132 = vector.broadcast %14 : vector<1x256xf32> to vector<16x256xf32>
    %133 = arith.mulf %110, %132 : vector<16x256xf32>
    %134 = arith.addf %131, %133 : vector<16x256xf32>
    %c15_i32_40 = arith.constant 15 : i32
    %135 = tpu.dynamic_rotate %110 by %c15_i32_40 dim 0 : vector<16x256xf32>, i32 -> vector<16x256xf32>
    %136 = vector.broadcast %16 : vector<1x256xf32> to vector<16x256xf32>
    %137 = arith.mulf %135, %136 : vector<16x256xf32>
    %138 = arith.addf %134, %137 : vector<16x256xf32>
    %c14_i32_41 = arith.constant 14 : i32
    %139 = tpu.dynamic_rotate %110 by %c14_i32_41 dim 0 : vector<16x256xf32>, i32 -> vector<16x256xf32>
    %140 = vector.broadcast %18 : vector<1x256xf32> to vector<16x256xf32>
    %141 = arith.mulf %139, %140 : vector<16x256xf32>
    %142 = arith.addf %138, %141 : vector<16x256xf32>
    %c0_42 = arith.constant 0 : index
    %c2_43 = arith.constant 2 : index
    %c0_44 = arith.constant 0 : index
    %c0_45 = arith.constant 0 : index
    %143 = vector.load %arg4[%c0_42, %c2_43, %c0_44, %c0_45] : memref<1x14x16x256xf32, #tpu.memory_space<vmem>>, vector<1x1x16x256xf32>
    %144 = vector.shape_cast %143 : vector<1x1x16x256xf32> to vector<16x256xf32>
    %145 = vector.shape_cast %142 : vector<16x256xf32> to vector<1x1x16x256xf32>
    tpu.vector_store %arg4[%c0_42, %c2_43, %c0_44, %c0_45], %145 {strides = array<i32>} : memref<1x14x16x256xf32, #tpu.memory_space<vmem>>, vector<1x1x16x256xf32>,
    %146 = arith.addf %106, %142 : vector<16x256xf32>
    %147 = arith.mulf %142, %142 : vector<16x256xf32>
    %148 = arith.addf %108, %147 : vector<16x256xf32>
    %c0_46 = arith.constant 0 : index
    %c4 = arith.constant 4 : index
    %c0_47 = arith.constant 0 : index
    %c0_48 = arith.constant 0 : index
    %149 = vector.load %arg0[%c0_46, %c4, %c0_47, %c0_48] : memref<1x14x16x256xf32, #tpu.memory_space<vmem>>, vector<1x1x16x256xf32>
    %150 = vector.shape_cast %149 : vector<1x1x16x256xf32> to vector<16x256xf32>
    %151 = vector.broadcast %2 : vector<1x256xf32> to vector<16x256xf32>
    %152 = arith.mulf %70, %151 : vector<16x256xf32>
    %c15_i32_49 = arith.constant 15 : i32
    %153 = tpu.dynamic_rotate %70 by %c15_i32_49 dim 0 : vector<16x256xf32>, i32 -> vector<16x256xf32>
    %154 = vector.broadcast %4 : vector<1x256xf32> to vector<16x256xf32>
    %155 = arith.mulf %153, %154 : vector<16x256xf32>
    %156 = arith.addf %152, %155 : vector<16x256xf32>
    %c14_i32_50 = arith.constant 14 : i32
    %157 = tpu.dynamic_rotate %70 by %c14_i32_50 dim 0 : vector<16x256xf32>, i32 -> vector<16x256xf32>
    %158 = vector.broadcast %6 : vector<1x256xf32> to vector<16x256xf32>
    %159 = arith.mulf %157, %158 : vector<16x256xf32>
    %160 = arith.addf %156, %159 : vector<16x256xf32>
    %161 = vector.broadcast %8 : vector<1x256xf32> to vector<16x256xf32>
    %162 = arith.mulf %110, %161 : vector<16x256xf32>
    %163 = arith.addf %160, %162 : vector<16x256xf32>
    %c15_i32_51 = arith.constant 15 : i32
    %164 = tpu.dynamic_rotate %110 by %c15_i32_51 dim 0 : vector<16x256xf32>, i32 -> vector<16x256xf32>
    %165 = vector.broadcast %10 : vector<1x256xf32> to vector<16x256xf32>
    %166 = arith.mulf %164, %165 : vector<16x256xf32>
    %167 = arith.addf %163, %166 : vector<16x256xf32>
    %c14_i32_52 = arith.constant 14 : i32
    %168 = tpu.dynamic_rotate %110 by %c14_i32_52 dim 0 : vector<16x256xf32>, i32 -> vector<16x256xf32>
    %169 = vector.broadcast %12 : vector<1x256xf32> to vector<16x256xf32>
    %170 = arith.mulf %168, %169 : vector<16x256xf32>
    %171 = arith.addf %167, %170 : vector<16x256xf32>
    %172 = vector.broadcast %14 : vector<1x256xf32> to vector<16x256xf32>
    %173 = arith.mulf %150, %172 : vector<16x256xf32>
    %174 = arith.addf %171, %173 : vector<16x256xf32>
    %c15_i32_53 = arith.constant 15 : i32
    %175 = tpu.dynamic_rotate %150 by %c15_i32_53 dim 0 : vector<16x256xf32>, i32 -> vector<16x256xf32>
    %176 = vector.broadcast %16 : vector<1x256xf32> to vector<16x256xf32>
    %177 = arith.mulf %175, %176 : vector<16x256xf32>
    %178 = arith.addf %174, %177 : vector<16x256xf32>
    %c14_i32_54 = arith.constant 14 : i32
    %179 = tpu.dynamic_rotate %150 by %c14_i32_54 dim 0 : vector<16x256xf32>, i32 -> vector<16x256xf32>
    %180 = vector.broadcast %18 : vector<1x256xf32> to vector<16x256xf32>
    %181 = arith.mulf %179, %180 : vector<16x256xf32>
    %182 = arith.addf %178, %181 : vector<16x256xf32>
    %c0_55 = arith.constant 0 : index
    %c3_56 = arith.constant 3 : index
    %c0_57 = arith.constant 0 : index
    %c0_58 = arith.constant 0 : index
    %183 = vector.load %arg4[%c0_55, %c3_56, %c0_57, %c0_58] : memref<1x14x16x256xf32, #tpu.memory_space<vmem>>, vector<1x1x16x256xf32>
    %184 = vector.shape_cast %183 : vector<1x1x16x256xf32> to vector<16x256xf32>
    %185 = vector.shape_cast %182 : vector<16x256xf32> to vector<1x1x16x256xf32>
    tpu.vector_store %arg4[%c0_55, %c3_56, %c0_57, %c0_58], %185 {strides = array<i32>} : memref<1x14x16x256xf32, #tpu.memory_space<vmem>>, vector<1x1x16x256xf32>,
    %186 = arith.addf %146, %182 : vector<16x256xf32>
    %187 = arith.mulf %182, %182 : vector<16x256xf32>
    %188 = arith.addf %148, %187 : vector<16x256xf32>
    %c0_59 = arith.constant 0 : index
    %c5 = arith.constant 5 : index
    %c0_60 = arith.constant 0 : index
    %c0_61 = arith.constant 0 : index
    %189 = vector.load %arg0[%c0_59, %c5, %c0_60, %c0_61] : memref<1x14x16x256xf32, #tpu.memory_space<vmem>>, vector<1x1x16x256xf32>
    %190 = vector.shape_cast %189 : vector<1x1x16x256xf32> to vector<16x256xf32>
    %191 = vector.broadcast %2 : vector<1x256xf32> to vector<16x256xf32>
    %192 = arith.mulf %110, %191 : vector<16x256xf32>
    %c15_i32_62 = arith.constant 15 : i32
    %193 = tpu.dynamic_rotate %110 by %c15_i32_62 dim 0 : vector<16x256xf32>, i32 -> vector<16x256xf32>
    %194 = vector.broadcast %4 : vector<1x256xf32> to vector<16x256xf32>
    %195 = arith.mulf %193, %194 : vector<16x256xf32>
    %196 = arith.addf %192, %195 : vector<16x256xf32>
    %c14_i32_63 = arith.constant 14 : i32
    %197 = tpu.dynamic_rotate %110 by %c14_i32_63 dim 0 : vector<16x256xf32>, i32 -> vector<16x256xf32>
    %198 = vector.broadcast %6 : vector<1x256xf32> to vector<16x256xf32>
    %199 = arith.mulf %197, %198 : vector<16x256xf32>
    %200 = arith.addf %196, %199 : vector<16x256xf32>
    %201 = vector.broadcast %8 : vector<1x256xf32> to vector<16x256xf32>
    %202 = arith.mulf %150, %201 : vector<16x256xf32>
    %203 = arith.addf %200, %202 : vector<16x256xf32>
    %c15_i32_64 = arith.constant 15 : i32
    %204 = tpu.dynamic_rotate %150 by %c15_i32_64 dim 0 : vector<16x256xf32>, i32 -> vector<16x256xf32>
    %205 = vector.broadcast %10 : vector<1x256xf32> to vector<16x256xf32>
    %206 = arith.mulf %204, %205 : vector<16x256xf32>
    %207 = arith.addf %203, %206 : vector<16x256xf32>
    %c14_i32_65 = arith.constant 14 : i32
    %208 = tpu.dynamic_rotate %150 by %c14_i32_65 dim 0 : vector<16x256xf32>, i32 -> vector<16x256xf32>
    %209 = vector.broadcast %12 : vector<1x256xf32> to vector<16x256xf32>
    %210 = arith.mulf %208, %209 : vector<16x256xf32>
    %211 = arith.addf %207, %210 : vector<16x256xf32>
    %212 = vector.broadcast %14 : vector<1x256xf32> to vector<16x256xf32>
    %213 = arith.mulf %190, %212 : vector<16x256xf32>
    %214 = arith.addf %211, %213 : vector<16x256xf32>
    %c15_i32_66 = arith.constant 15 : i32
    %215 = tpu.dynamic_rotate %190 by %c15_i32_66 dim 0 : vector<16x256xf32>, i32 -> vector<16x256xf32>
    %216 = vector.broadcast %16 : vector<1x256xf32> to vector<16x256xf32>
    %217 = arith.mulf %215, %216 : vector<16x256xf32>
    %218 = arith.addf %214, %217 : vector<16x256xf32>
    %c14_i32_67 = arith.constant 14 : i32
    %219 = tpu.dynamic_rotate %190 by %c14_i32_67 dim 0 : vector<16x256xf32>, i32 -> vector<16x256xf32>
    %220 = vector.broadcast %18 : vector<1x256xf32> to vector<16x256xf32>
    %221 = arith.mulf %219, %220 : vector<16x256xf32>
    %222 = arith.addf %218, %221 : vector<16x256xf32>
    %c0_68 = arith.constant 0 : index
    %c4_69 = arith.constant 4 : index
    %c0_70 = arith.constant 0 : index
    %c0_71 = arith.constant 0 : index
    %223 = vector.load %arg4[%c0_68, %c4_69, %c0_70, %c0_71] : memref<1x14x16x256xf32, #tpu.memory_space<vmem>>, vector<1x1x16x256xf32>
    %224 = vector.shape_cast %223 : vector<1x1x16x256xf32> to vector<16x256xf32>
    %225 = vector.shape_cast %222 : vector<16x256xf32> to vector<1x1x16x256xf32>
    tpu.vector_store %arg4[%c0_68, %c4_69, %c0_70, %c0_71], %225 {strides = array<i32>} : memref<1x14x16x256xf32, #tpu.memory_space<vmem>>, vector<1x1x16x256xf32>,
    %226 = arith.addf %186, %222 : vector<16x256xf32>
    %227 = arith.mulf %222, %222 : vector<16x256xf32>
    %228 = arith.addf %188, %227 : vector<16x256xf32>
    %c0_72 = arith.constant 0 : index
    %c6 = arith.constant 6 : index
    %c0_73 = arith.constant 0 : index
    %c0_74 = arith.constant 0 : index
    %229 = vector.load %arg0[%c0_72, %c6, %c0_73, %c0_74] : memref<1x14x16x256xf32, #tpu.memory_space<vmem>>, vector<1x1x16x256xf32>
    %230 = vector.shape_cast %229 : vector<1x1x16x256xf32> to vector<16x256xf32>
    %231 = vector.broadcast %2 : vector<1x256xf32> to vector<16x256xf32>
    %232 = arith.mulf %150, %231 : vector<16x256xf32>
    %c15_i32_75 = arith.constant 15 : i32
    %233 = tpu.dynamic_rotate %150 by %c15_i32_75 dim 0 : vector<16x256xf32>, i32 -> vector<16x256xf32>
    %234 = vector.broadcast %4 : vector<1x256xf32> to vector<16x256xf32>
    %235 = arith.mulf %233, %234 : vector<16x256xf32>
    %236 = arith.addf %232, %235 : vector<16x256xf32>
    %c14_i32_76 = arith.constant 14 : i32
    %237 = tpu.dynamic_rotate %150 by %c14_i32_76 dim 0 : vector<16x256xf32>, i32 -> vector<16x256xf32>
    %238 = vector.broadcast %6 : vector<1x256xf32> to vector<16x256xf32>
    %239 = arith.mulf %237, %238 : vector<16x256xf32>
    %240 = arith.addf %236, %239 : vector<16x256xf32>
    %241 = vector.broadcast %8 : vector<1x256xf32> to vector<16x256xf32>
    %242 = arith.mulf %190, %241 : vector<16x256xf32>
    %243 = arith.addf %240, %242 : vector<16x256xf32>
    %c15_i32_77 = arith.constant 15 : i32
    %244 = tpu.dynamic_rotate %190 by %c15_i32_77 dim 0 : vector<16x256xf32>, i32 -> vector<16x256xf32>
    %245 = vector.broadcast %10 : vector<1x256xf32> to vector<16x256xf32>
    %246 = arith.mulf %244, %245 : vector<16x256xf32>
    %247 = arith.addf %243, %246 : vector<16x256xf32>
    %c14_i32_78 = arith.constant 14 : i32
    %248 = tpu.dynamic_rotate %190 by %c14_i32_78 dim 0 : vector<16x256xf32>, i32 -> vector<16x256xf32>
    %249 = vector.broadcast %12 : vector<1x256xf32> to vector<16x256xf32>
    %250 = arith.mulf %248, %249 : vector<16x256xf32>
    %251 = arith.addf %247, %250 : vector<16x256xf32>
    %252 = vector.broadcast %14 : vector<1x256xf32> to vector<16x256xf32>
    %253 = arith.mulf %230, %252 : vector<16x256xf32>
    %254 = arith.addf %251, %253 : vector<16x256xf32>
    %c15_i32_79 = arith.constant 15 : i32
    %255 = tpu.dynamic_rotate %230 by %c15_i32_79 dim 0 : vector<16x256xf32>, i32 -> vector<16x256xf32>
    %256 = vector.broadcast %16 : vector<1x256xf32> to vector<16x256xf32>
    %257 = arith.mulf %255, %256 : vector<16x256xf32>
    %258 = arith.addf %254, %257 : vector<16x256xf32>
    %c14_i32_80 = arith.constant 14 : i32
    %259 = tpu.dynamic_rotate %230 by %c14_i32_80 dim 0 : vector<16x256xf32>, i32 -> vector<16x256xf32>
    %260 = vector.broadcast %18 : vector<1x256xf32> to vector<16x256xf32>
    %261 = arith.mulf %259, %260 : vector<16x256xf32>
    %262 = arith.addf %258, %261 : vector<16x256xf32>
    %c0_81 = arith.constant 0 : index
    %c5_82 = arith.constant 5 : index
    %c0_83 = arith.constant 0 : index
    %c0_84 = arith.constant 0 : index
    %263 = vector.load %arg4[%c0_81, %c5_82, %c0_83, %c0_84] : memref<1x14x16x256xf32, #tpu.memory_space<vmem>>, vector<1x1x16x256xf32>
    %264 = vector.shape_cast %263 : vector<1x1x16x256xf32> to vector<16x256xf32>
    %265 = vector.shape_cast %262 : vector<16x256xf32> to vector<1x1x16x256xf32>
    tpu.vector_store %arg4[%c0_81, %c5_82, %c0_83, %c0_84], %265 {strides = array<i32>} : memref<1x14x16x256xf32, #tpu.memory_space<vmem>>, vector<1x1x16x256xf32>,
    %266 = arith.addf %226, %262 : vector<16x256xf32>
    %267 = arith.mulf %262, %262 : vector<16x256xf32>
    %268 = arith.addf %228, %267 : vector<16x256xf32>
    %c0_85 = arith.constant 0 : index
    %c7 = arith.constant 7 : index
    %c0_86 = arith.constant 0 : index
    %c0_87 = arith.constant 0 : index
    %269 = vector.load %arg0[%c0_85, %c7, %c0_86, %c0_87] : memref<1x14x16x256xf32, #tpu.memory_space<vmem>>, vector<1x1x16x256xf32>
    %270 = vector.shape_cast %269 : vector<1x1x16x256xf32> to vector<16x256xf32>
    %271 = vector.broadcast %2 : vector<1x256xf32> to vector<16x256xf32>
    %272 = arith.mulf %190, %271 : vector<16x256xf32>
    %c15_i32_88 = arith.constant 15 : i32
    %273 = tpu.dynamic_rotate %190 by %c15_i32_88 dim 0 : vector<16x256xf32>, i32 -> vector<16x256xf32>
    %274 = vector.broadcast %4 : vector<1x256xf32> to vector<16x256xf32>
    %275 = arith.mulf %273, %274 : vector<16x256xf32>
    %276 = arith.addf %272, %275 : vector<16x256xf32>
    %c14_i32_89 = arith.constant 14 : i32
    %277 = tpu.dynamic_rotate %190 by %c14_i32_89 dim 0 : vector<16x256xf32>, i32 -> vector<16x256xf32>
    %278 = vector.broadcast %6 : vector<1x256xf32> to vector<16x256xf32>
    %279 = arith.mulf %277, %278 : vector<16x256xf32>
    %280 = arith.addf %276, %279 : vector<16x256xf32>
    %281 = vector.broadcast %8 : vector<1x256xf32> to vector<16x256xf32>
    %282 = arith.mulf %230, %281 : vector<16x256xf32>
    %283 = arith.addf %280, %282 : vector<16x256xf32>
    %c15_i32_90 = arith.constant 15 : i32
    %284 = tpu.dynamic_rotate %230 by %c15_i32_90 dim 0 : vector<16x256xf32>, i32 -> vector<16x256xf32>
    %285 = vector.broadcast %10 : vector<1x256xf32> to vector<16x256xf32>
    %286 = arith.mulf %284, %285 : vector<16x256xf32>
    %287 = arith.addf %283, %286 : vector<16x256xf32>
    %c14_i32_91 = arith.constant 14 : i32
    %288 = tpu.dynamic_rotate %230 by %c14_i32_91 dim 0 : vector<16x256xf32>, i32 -> vector<16x256xf32>
    %289 = vector.broadcast %12 : vector<1x256xf32> to vector<16x256xf32>
    %290 = arith.mulf %288, %289 : vector<16x256xf32>
    %291 = arith.addf %287, %290 : vector<16x256xf32>
    %292 = vector.broadcast %14 : vector<1x256xf32> to vector<16x256xf32>
    %293 = arith.mulf %270, %292 : vector<16x256xf32>
    %294 = arith.addf %291, %293 : vector<16x256xf32>
    %c15_i32_92 = arith.constant 15 : i32
    %295 = tpu.dynamic_rotate %270 by %c15_i32_92 dim 0 : vector<16x256xf32>, i32 -> vector<16x256xf32>
    %296 = vector.broadcast %16 : vector<1x256xf32> to vector<16x256xf32>
    %297 = arith.mulf %295, %296 : vector<16x256xf32>
    %298 = arith.addf %294, %297 : vector<16x256xf32>
    %c14_i32_93 = arith.constant 14 : i32
    %299 = tpu.dynamic_rotate %270 by %c14_i32_93 dim 0 : vector<16x256xf32>, i32 -> vector<16x256xf32>
    %300 = vector.broadcast %18 : vector<1x256xf32> to vector<16x256xf32>
    %301 = arith.mulf %299, %300 : vector<16x256xf32>
    %302 = arith.addf %298, %301 : vector<16x256xf32>
    %c0_94 = arith.constant 0 : index
    %c6_95 = arith.constant 6 : index
    %c0_96 = arith.constant 0 : index
    %c0_97 = arith.constant 0 : index
    %303 = vector.load %arg4[%c0_94, %c6_95, %c0_96, %c0_97] : memref<1x14x16x256xf32, #tpu.memory_space<vmem>>, vector<1x1x16x256xf32>
    %304 = vector.shape_cast %303 : vector<1x1x16x256xf32> to vector<16x256xf32>
    %305 = vector.shape_cast %302 : vector<16x256xf32> to vector<1x1x16x256xf32>
    tpu.vector_store %arg4[%c0_94, %c6_95, %c0_96, %c0_97], %305 {strides = array<i32>} : memref<1x14x16x256xf32, #tpu.memory_space<vmem>>, vector<1x1x16x256xf32>,
    %306 = arith.addf %266, %302 : vector<16x256xf32>
    %307 = arith.mulf %302, %302 : vector<16x256xf32>
    %308 = arith.addf %268, %307 : vector<16x256xf32>
    %c0_98 = arith.constant 0 : index
    %c8 = arith.constant 8 : index
    %c0_99 = arith.constant 0 : index
    %c0_100 = arith.constant 0 : index
    %309 = vector.load %arg0[%c0_98, %c8, %c0_99, %c0_100] : memref<1x14x16x256xf32, #tpu.memory_space<vmem>>, vector<1x1x16x256xf32>
    %310 = vector.shape_cast %309 : vector<1x1x16x256xf32> to vector<16x256xf32>
    %311 = vector.broadcast %2 : vector<1x256xf32> to vector<16x256xf32>
    %312 = arith.mulf %230, %311 : vector<16x256xf32>
    %c15_i32_101 = arith.constant 15 : i32
    %313 = tpu.dynamic_rotate %230 by %c15_i32_101 dim 0 : vector<16x256xf32>, i32 -> vector<16x256xf32>
    %314 = vector.broadcast %4 : vector<1x256xf32> to vector<16x256xf32>
    %315 = arith.mulf %313, %314 : vector<16x256xf32>
    %316 = arith.addf %312, %315 : vector<16x256xf32>
    %c14_i32_102 = arith.constant 14 : i32
    %317 = tpu.dynamic_rotate %230 by %c14_i32_102 dim 0 : vector<16x256xf32>, i32 -> vector<16x256xf32>
    %318 = vector.broadcast %6 : vector<1x256xf32> to vector<16x256xf32>
    %319 = arith.mulf %317, %318 : vector<16x256xf32>
    %320 = arith.addf %316, %319 : vector<16x256xf32>
    %321 = vector.broadcast %8 : vector<1x256xf32> to vector<16x256xf32>
    %322 = arith.mulf %270, %321 : vector<16x256xf32>
    %323 = arith.addf %320, %322 : vector<16x256xf32>
    %c15_i32_103 = arith.constant 15 : i32
    %324 = tpu.dynamic_rotate %270 by %c15_i32_103 dim 0 : vector<16x256xf32>, i32 -> vector<16x256xf32>
    %325 = vector.broadcast %10 : vector<1x256xf32> to vector<16x256xf32>
    %326 = arith.mulf %324, %325 : vector<16x256xf32>
    %327 = arith.addf %323, %326 : vector<16x256xf32>
    %c14_i32_104 = arith.constant 14 : i32
    %328 = tpu.dynamic_rotate %270 by %c14_i32_104 dim 0 : vector<16x256xf32>, i32 -> vector<16x256xf32>
    %329 = vector.broadcast %12 : vector<1x256xf32> to vector<16x256xf32>
    %330 = arith.mulf %328, %329 : vector<16x256xf32>
    %331 = arith.addf %327, %330 : vector<16x256xf32>
    %332 = vector.broadcast %14 : vector<1x256xf32> to vector<16x256xf32>
    %333 = arith.mulf %310, %332 : vector<16x256xf32>
    %334 = arith.addf %331, %333 : vector<16x256xf32>
    %c15_i32_105 = arith.constant 15 : i32
    %335 = tpu.dynamic_rotate %310 by %c15_i32_105 dim 0 : vector<16x256xf32>, i32 -> vector<16x256xf32>
    %336 = vector.broadcast %16 : vector<1x256xf32> to vector<16x256xf32>
    %337 = arith.mulf %335, %336 : vector<16x256xf32>
    %338 = arith.addf %334, %337 : vector<16x256xf32>
    %c14_i32_106 = arith.constant 14 : i32
    %339 = tpu.dynamic_rotate %310 by %c14_i32_106 dim 0 : vector<16x256xf32>, i32 -> vector<16x256xf32>
    %340 = vector.broadcast %18 : vector<1x256xf32> to vector<16x256xf32>
    %341 = arith.mulf %339, %340 : vector<16x256xf32>
    %342 = arith.addf %338, %341 : vector<16x256xf32>
    %c0_107 = arith.constant 0 : index
    %c7_108 = arith.constant 7 : index
    %c0_109 = arith.constant 0 : index
    %c0_110 = arith.constant 0 : index
    %343 = vector.load %arg4[%c0_107, %c7_108, %c0_109, %c0_110] : memref<1x14x16x256xf32, #tpu.memory_space<vmem>>, vector<1x1x16x256xf32>
    %344 = vector.shape_cast %343 : vector<1x1x16x256xf32> to vector<16x256xf32>
    %345 = vector.shape_cast %342 : vector<16x256xf32> to vector<1x1x16x256xf32>
    tpu.vector_store %arg4[%c0_107, %c7_108, %c0_109, %c0_110], %345 {strides = array<i32>} : memref<1x14x16x256xf32, #tpu.memory_space<vmem>>, vector<1x1x16x256xf32>,
    %346 = arith.addf %306, %342 : vector<16x256xf32>
    %347 = arith.mulf %342, %342 : vector<16x256xf32>
    %348 = arith.addf %308, %347 : vector<16x256xf32>
    %c0_111 = arith.constant 0 : index
    %c9 = arith.constant 9 : index
    %c0_112 = arith.constant 0 : index
    %c0_113 = arith.constant 0 : index
    %349 = vector.load %arg0[%c0_111, %c9, %c0_112, %c0_113] : memref<1x14x16x256xf32, #tpu.memory_space<vmem>>, vector<1x1x16x256xf32>
    %350 = vector.shape_cast %349 : vector<1x1x16x256xf32> to vector<16x256xf32>
    %351 = vector.broadcast %2 : vector<1x256xf32> to vector<16x256xf32>
    %352 = arith.mulf %270, %351 : vector<16x256xf32>
    %c15_i32_114 = arith.constant 15 : i32
    %353 = tpu.dynamic_rotate %270 by %c15_i32_114 dim 0 : vector<16x256xf32>, i32 -> vector<16x256xf32>
    %354 = vector.broadcast %4 : vector<1x256xf32> to vector<16x256xf32>
    %355 = arith.mulf %353, %354 : vector<16x256xf32>
    %356 = arith.addf %352, %355 : vector<16x256xf32>
    %c14_i32_115 = arith.constant 14 : i32
    %357 = tpu.dynamic_rotate %270 by %c14_i32_115 dim 0 : vector<16x256xf32>, i32 -> vector<16x256xf32>
    %358 = vector.broadcast %6 : vector<1x256xf32> to vector<16x256xf32>
    %359 = arith.mulf %357, %358 : vector<16x256xf32>
    %360 = arith.addf %356, %359 : vector<16x256xf32>
    %361 = vector.broadcast %8 : vector<1x256xf32> to vector<16x256xf32>
    %362 = arith.mulf %310, %361 : vector<16x256xf32>
    %363 = arith.addf %360, %362 : vector<16x256xf32>
    %c15_i32_116 = arith.constant 15 : i32
    %364 = tpu.dynamic_rotate %310 by %c15_i32_116 dim 0 : vector<16x256xf32>, i32 -> vector<16x256xf32>
    %365 = vector.broadcast %10 : vector<1x256xf32> to vector<16x256xf32>
    %366 = arith.mulf %364, %365 : vector<16x256xf32>
    %367 = arith.addf %363, %366 : vector<16x256xf32>
    %c14_i32_117 = arith.constant 14 : i32
    %368 = tpu.dynamic_rotate %310 by %c14_i32_117 dim 0 : vector<16x256xf32>, i32 -> vector<16x256xf32>
    %369 = vector.broadcast %12 : vector<1x256xf32> to vector<16x256xf32>
    %370 = arith.mulf %368, %369 : vector<16x256xf32>
    %371 = arith.addf %367, %370 : vector<16x256xf32>
    %372 = vector.broadcast %14 : vector<1x256xf32> to vector<16x256xf32>
    %373 = arith.mulf %350, %372 : vector<16x256xf32>
    %374 = arith.addf %371, %373 : vector<16x256xf32>
    %c15_i32_118 = arith.constant 15 : i32
    %375 = tpu.dynamic_rotate %350 by %c15_i32_118 dim 0 : vector<16x256xf32>, i32 -> vector<16x256xf32>
    %376 = vector.broadcast %16 : vector<1x256xf32> to vector<16x256xf32>
    %377 = arith.mulf %375, %376 : vector<16x256xf32>
    %378 = arith.addf %374, %377 : vector<16x256xf32>
    %c14_i32_119 = arith.constant 14 : i32
    %379 = tpu.dynamic_rotate %350 by %c14_i32_119 dim 0 : vector<16x256xf32>, i32 -> vector<16x256xf32>
    %380 = vector.broadcast %18 : vector<1x256xf32> to vector<16x256xf32>
    %381 = arith.mulf %379, %380 : vector<16x256xf32>
    %382 = arith.addf %378, %381 : vector<16x256xf32>
    %c0_120 = arith.constant 0 : index
    %c8_121 = arith.constant 8 : index
    %c0_122 = arith.constant 0 : index
    %c0_123 = arith.constant 0 : index
    %383 = vector.load %arg4[%c0_120, %c8_121, %c0_122, %c0_123] : memref<1x14x16x256xf32, #tpu.memory_space<vmem>>, vector<1x1x16x256xf32>
    %384 = vector.shape_cast %383 : vector<1x1x16x256xf32> to vector<16x256xf32>
    %385 = vector.shape_cast %382 : vector<16x256xf32> to vector<1x1x16x256xf32>
    tpu.vector_store %arg4[%c0_120, %c8_121, %c0_122, %c0_123], %385 {strides = array<i32>} : memref<1x14x16x256xf32, #tpu.memory_space<vmem>>, vector<1x1x16x256xf32>,
    %386 = arith.addf %346, %382 : vector<16x256xf32>
    %387 = arith.mulf %382, %382 : vector<16x256xf32>
    %388 = arith.addf %348, %387 : vector<16x256xf32>
    %c0_124 = arith.constant 0 : index
    %c10 = arith.constant 10 : index
    %c0_125 = arith.constant 0 : index
    %c0_126 = arith.constant 0 : index
    %389 = vector.load %arg0[%c0_124, %c10, %c0_125, %c0_126] : memref<1x14x16x256xf32, #tpu.memory_space<vmem>>, vector<1x1x16x256xf32>
    %390 = vector.shape_cast %389 : vector<1x1x16x256xf32> to vector<16x256xf32>
    %391 = vector.broadcast %2 : vector<1x256xf32> to vector<16x256xf32>
    %392 = arith.mulf %310, %391 : vector<16x256xf32>
    %c15_i32_127 = arith.constant 15 : i32
    %393 = tpu.dynamic_rotate %310 by %c15_i32_127 dim 0 : vector<16x256xf32>, i32 -> vector<16x256xf32>
    %394 = vector.broadcast %4 : vector<1x256xf32> to vector<16x256xf32>
    %395 = arith.mulf %393, %394 : vector<16x256xf32>
    %396 = arith.addf %392, %395 : vector<16x256xf32>
    %c14_i32_128 = arith.constant 14 : i32
    %397 = tpu.dynamic_rotate %310 by %c14_i32_128 dim 0 : vector<16x256xf32>, i32 -> vector<16x256xf32>
    %398 = vector.broadcast %6 : vector<1x256xf32> to vector<16x256xf32>
    %399 = arith.mulf %397, %398 : vector<16x256xf32>
    %400 = arith.addf %396, %399 : vector<16x256xf32>
    %401 = vector.broadcast %8 : vector<1x256xf32> to vector<16x256xf32>
    %402 = arith.mulf %350, %401 : vector<16x256xf32>
    %403 = arith.addf %400, %402 : vector<16x256xf32>
    %c15_i32_129 = arith.constant 15 : i32
    %404 = tpu.dynamic_rotate %350 by %c15_i32_129 dim 0 : vector<16x256xf32>, i32 -> vector<16x256xf32>
    %405 = vector.broadcast %10 : vector<1x256xf32> to vector<16x256xf32>
    %406 = arith.mulf %404, %405 : vector<16x256xf32>
    %407 = arith.addf %403, %406 : vector<16x256xf32>
    %c14_i32_130 = arith.constant 14 : i32
    %408 = tpu.dynamic_rotate %350 by %c14_i32_130 dim 0 : vector<16x256xf32>, i32 -> vector<16x256xf32>
    %409 = vector.broadcast %12 : vector<1x256xf32> to vector<16x256xf32>
    %410 = arith.mulf %408, %409 : vector<16x256xf32>
    %411 = arith.addf %407, %410 : vector<16x256xf32>
    %412 = vector.broadcast %14 : vector<1x256xf32> to vector<16x256xf32>
    %413 = arith.mulf %390, %412 : vector<16x256xf32>
    %414 = arith.addf %411, %413 : vector<16x256xf32>
    %c15_i32_131 = arith.constant 15 : i32
    %415 = tpu.dynamic_rotate %390 by %c15_i32_131 dim 0 : vector<16x256xf32>, i32 -> vector<16x256xf32>
    %416 = vector.broadcast %16 : vector<1x256xf32> to vector<16x256xf32>
    %417 = arith.mulf %415, %416 : vector<16x256xf32>
    %418 = arith.addf %414, %417 : vector<16x256xf32>
    %c14_i32_132 = arith.constant 14 : i32
    %419 = tpu.dynamic_rotate %390 by %c14_i32_132 dim 0 : vector<16x256xf32>, i32 -> vector<16x256xf32>
    %420 = vector.broadcast %18 : vector<1x256xf32> to vector<16x256xf32>
    %421 = arith.mulf %419, %420 : vector<16x256xf32>
    %422 = arith.addf %418, %421 : vector<16x256xf32>
    %c0_133 = arith.constant 0 : index
    %c9_134 = arith.constant 9 : index
    %c0_135 = arith.constant 0 : index
    %c0_136 = arith.constant 0 : index
    %423 = vector.load %arg4[%c0_133, %c9_134, %c0_135, %c0_136] : memref<1x14x16x256xf32, #tpu.memory_space<vmem>>, vector<1x1x16x256xf32>
    %424 = vector.shape_cast %423 : vector<1x1x16x256xf32> to vector<16x256xf32>
    %425 = vector.shape_cast %422 : vector<16x256xf32> to vector<1x1x16x256xf32>
    tpu.vector_store %arg4[%c0_133, %c9_134, %c0_135, %c0_136], %425 {strides = array<i32>} : memref<1x14x16x256xf32, #tpu.memory_space<vmem>>, vector<1x1x16x256xf32>,
    %426 = arith.addf %386, %422 : vector<16x256xf32>
    %427 = arith.mulf %422, %422 : vector<16x256xf32>
    %428 = arith.addf %388, %427 : vector<16x256xf32>
    %c0_137 = arith.constant 0 : index
    %c11 = arith.constant 11 : index
    %c0_138 = arith.constant 0 : index
    %c0_139 = arith.constant 0 : index
    %429 = vector.load %arg0[%c0_137, %c11, %c0_138, %c0_139] : memref<1x14x16x256xf32, #tpu.memory_space<vmem>>, vector<1x1x16x256xf32>
    %430 = vector.shape_cast %429 : vector<1x1x16x256xf32> to vector<16x256xf32>
    %431 = vector.broadcast %2 : vector<1x256xf32> to vector<16x256xf32>
    %432 = arith.mulf %350, %431 : vector<16x256xf32>
    %c15_i32_140 = arith.constant 15 : i32
    %433 = tpu.dynamic_rotate %350 by %c15_i32_140 dim 0 : vector<16x256xf32>, i32 -> vector<16x256xf32>
    %434 = vector.broadcast %4 : vector<1x256xf32> to vector<16x256xf32>
    %435 = arith.mulf %433, %434 : vector<16x256xf32>
    %436 = arith.addf %432, %435 : vector<16x256xf32>
    %c14_i32_141 = arith.constant 14 : i32
    %437 = tpu.dynamic_rotate %350 by %c14_i32_141 dim 0 : vector<16x256xf32>, i32 -> vector<16x256xf32>
    %438 = vector.broadcast %6 : vector<1x256xf32> to vector<16x256xf32>
    %439 = arith.mulf %437, %438 : vector<16x256xf32>
    %440 = arith.addf %436, %439 : vector<16x256xf32>
    %441 = vector.broadcast %8 : vector<1x256xf32> to vector<16x256xf32>
    %442 = arith.mulf %390, %441 : vector<16x256xf32>
    %443 = arith.addf %440, %442 : vector<16x256xf32>
    %c15_i32_142 = arith.constant 15 : i32
    %444 = tpu.dynamic_rotate %390 by %c15_i32_142 dim 0 : vector<16x256xf32>, i32 -> vector<16x256xf32>
    %445 = vector.broadcast %10 : vector<1x256xf32> to vector<16x256xf32>
    %446 = arith.mulf %444, %445 : vector<16x256xf32>
    %447 = arith.addf %443, %446 : vector<16x256xf32>
    %c14_i32_143 = arith.constant 14 : i32
    %448 = tpu.dynamic_rotate %390 by %c14_i32_143 dim 0 : vector<16x256xf32>, i32 -> vector<16x256xf32>
    %449 = vector.broadcast %12 : vector<1x256xf32> to vector<16x256xf32>
    %450 = arith.mulf %448, %449 : vector<16x256xf32>
    %451 = arith.addf %447, %450 : vector<16x256xf32>
    %452 = vector.broadcast %14 : vector<1x256xf32> to vector<16x256xf32>
    %453 = arith.mulf %430, %452 : vector<16x256xf32>
    %454 = arith.addf %451, %453 : vector<16x256xf32>
    %c15_i32_144 = arith.constant 15 : i32
    %455 = tpu.dynamic_rotate %430 by %c15_i32_144 dim 0 : vector<16x256xf32>, i32 -> vector<16x256xf32>
    %456 = vector.broadcast %16 : vector<1x256xf32> to vector<16x256xf32>
    %457 = arith.mulf %455, %456 : vector<16x256xf32>
    %458 = arith.addf %454, %457 : vector<16x256xf32>
    %c14_i32_145 = arith.constant 14 : i32
    %459 = tpu.dynamic_rotate %430 by %c14_i32_145 dim 0 : vector<16x256xf32>, i32 -> vector<16x256xf32>
    %460 = vector.broadcast %18 : vector<1x256xf32> to vector<16x256xf32>
    %461 = arith.mulf %459, %460 : vector<16x256xf32>
    %462 = arith.addf %458, %461 : vector<16x256xf32>
    %c0_146 = arith.constant 0 : index
    %c10_147 = arith.constant 10 : index
    %c0_148 = arith.constant 0 : index
    %c0_149 = arith.constant 0 : index
    %463 = vector.load %arg4[%c0_146, %c10_147, %c0_148, %c0_149] : memref<1x14x16x256xf32, #tpu.memory_space<vmem>>, vector<1x1x16x256xf32>
    %464 = vector.shape_cast %463 : vector<1x1x16x256xf32> to vector<16x256xf32>
    %465 = vector.shape_cast %462 : vector<16x256xf32> to vector<1x1x16x256xf32>
    tpu.vector_store %arg4[%c0_146, %c10_147, %c0_148, %c0_149], %465 {strides = array<i32>} : memref<1x14x16x256xf32, #tpu.memory_space<vmem>>, vector<1x1x16x256xf32>,
    %466 = arith.addf %426, %462 : vector<16x256xf32>
    %467 = arith.mulf %462, %462 : vector<16x256xf32>
    %468 = arith.addf %428, %467 : vector<16x256xf32>
    %c0_150 = arith.constant 0 : index
    %c12 = arith.constant 12 : index
    %c0_151 = arith.constant 0 : index
    %c0_152 = arith.constant 0 : index
    %469 = vector.load %arg0[%c0_150, %c12, %c0_151, %c0_152] : memref<1x14x16x256xf32, #tpu.memory_space<vmem>>, vector<1x1x16x256xf32>
    %470 = vector.shape_cast %469 : vector<1x1x16x256xf32> to vector<16x256xf32>
    %471 = vector.broadcast %2 : vector<1x256xf32> to vector<16x256xf32>
    %472 = arith.mulf %390, %471 : vector<16x256xf32>
    %c15_i32_153 = arith.constant 15 : i32
    %473 = tpu.dynamic_rotate %390 by %c15_i32_153 dim 0 : vector<16x256xf32>, i32 -> vector<16x256xf32>
    %474 = vector.broadcast %4 : vector<1x256xf32> to vector<16x256xf32>
    %475 = arith.mulf %473, %474 : vector<16x256xf32>
    %476 = arith.addf %472, %475 : vector<16x256xf32>
    %c14_i32_154 = arith.constant 14 : i32
    %477 = tpu.dynamic_rotate %390 by %c14_i32_154 dim 0 : vector<16x256xf32>, i32 -> vector<16x256xf32>
    %478 = vector.broadcast %6 : vector<1x256xf32> to vector<16x256xf32>
    %479 = arith.mulf %477, %478 : vector<16x256xf32>
    %480 = arith.addf %476, %479 : vector<16x256xf32>
    %481 = vector.broadcast %8 : vector<1x256xf32> to vector<16x256xf32>
    %482 = arith.mulf %430, %481 : vector<16x256xf32>
    %483 = arith.addf %480, %482 : vector<16x256xf32>
    %c15_i32_155 = arith.constant 15 : i32
    %484 = tpu.dynamic_rotate %430 by %c15_i32_155 dim 0 : vector<16x256xf32>, i32 -> vector<16x256xf32>
    %485 = vector.broadcast %10 : vector<1x256xf32> to vector<16x256xf32>
    %486 = arith.mulf %484, %485 : vector<16x256xf32>
    %487 = arith.addf %483, %486 : vector<16x256xf32>
    %c14_i32_156 = arith.constant 14 : i32
    %488 = tpu.dynamic_rotate %430 by %c14_i32_156 dim 0 : vector<16x256xf32>, i32 -> vector<16x256xf32>
    %489 = vector.broadcast %12 : vector<1x256xf32> to vector<16x256xf32>
    %490 = arith.mulf %488, %489 : vector<16x256xf32>
    %491 = arith.addf %487, %490 : vector<16x256xf32>
    %492 = vector.broadcast %14 : vector<1x256xf32> to vector<16x256xf32>
    %493 = arith.mulf %470, %492 : vector<16x256xf32>
    %494 = arith.addf %491, %493 : vector<16x256xf32>
    %c15_i32_157 = arith.constant 15 : i32
    %495 = tpu.dynamic_rotate %470 by %c15_i32_157 dim 0 : vector<16x256xf32>, i32 -> vector<16x256xf32>
    %496 = vector.broadcast %16 : vector<1x256xf32> to vector<16x256xf32>
    %497 = arith.mulf %495, %496 : vector<16x256xf32>
    %498 = arith.addf %494, %497 : vector<16x256xf32>
    %c14_i32_158 = arith.constant 14 : i32
    %499 = tpu.dynamic_rotate %470 by %c14_i32_158 dim 0 : vector<16x256xf32>, i32 -> vector<16x256xf32>
    %500 = vector.broadcast %18 : vector<1x256xf32> to vector<16x256xf32>
    %501 = arith.mulf %499, %500 : vector<16x256xf32>
    %502 = arith.addf %498, %501 : vector<16x256xf32>
    %c0_159 = arith.constant 0 : index
    %c11_160 = arith.constant 11 : index
    %c0_161 = arith.constant 0 : index
    %c0_162 = arith.constant 0 : index
    %503 = vector.load %arg4[%c0_159, %c11_160, %c0_161, %c0_162] : memref<1x14x16x256xf32, #tpu.memory_space<vmem>>, vector<1x1x16x256xf32>
    %504 = vector.shape_cast %503 : vector<1x1x16x256xf32> to vector<16x256xf32>
    %505 = vector.shape_cast %502 : vector<16x256xf32> to vector<1x1x16x256xf32>
    tpu.vector_store %arg4[%c0_159, %c11_160, %c0_161, %c0_162], %505 {strides = array<i32>} : memref<1x14x16x256xf32, #tpu.memory_space<vmem>>, vector<1x1x16x256xf32>,
    %506 = arith.addf %466, %502 : vector<16x256xf32>
    %507 = arith.mulf %502, %502 : vector<16x256xf32>
    %508 = arith.addf %468, %507 : vector<16x256xf32>
    %c0_163 = arith.constant 0 : index
    %c13 = arith.constant 13 : index
    %c0_164 = arith.constant 0 : index
    %c0_165 = arith.constant 0 : index
    %509 = vector.load %arg0[%c0_163, %c13, %c0_164, %c0_165] : memref<1x14x16x256xf32, #tpu.memory_space<vmem>>, vector<1x1x16x256xf32>
    %510 = vector.shape_cast %509 : vector<1x1x16x256xf32> to vector<16x256xf32>
    %511 = vector.broadcast %2 : vector<1x256xf32> to vector<16x256xf32>
    %512 = arith.mulf %430, %511 : vector<16x256xf32>
    %c15_i32_166 = arith.constant 15 : i32
    %513 = tpu.dynamic_rotate %430 by %c15_i32_166 dim 0 : vector<16x256xf32>, i32 -> vector<16x256xf32>
    %514 = vector.broadcast %4 : vector<1x256xf32> to vector<16x256xf32>
    %515 = arith.mulf %513, %514 : vector<16x256xf32>
    %516 = arith.addf %512, %515 : vector<16x256xf32>
    %c14_i32_167 = arith.constant 14 : i32
    %517 = tpu.dynamic_rotate %430 by %c14_i32_167 dim 0 : vector<16x256xf32>, i32 -> vector<16x256xf32>
    %518 = vector.broadcast %6 : vector<1x256xf32> to vector<16x256xf32>
    %519 = arith.mulf %517, %518 : vector<16x256xf32>
    %520 = arith.addf %516, %519 : vector<16x256xf32>
    %521 = vector.broadcast %8 : vector<1x256xf32> to vector<16x256xf32>
    %522 = arith.mulf %470, %521 : vector<16x256xf32>
    %523 = arith.addf %520, %522 : vector<16x256xf32>
    %c15_i32_168 = arith.constant 15 : i32
    %524 = tpu.dynamic_rotate %470 by %c15_i32_168 dim 0 : vector<16x256xf32>, i32 -> vector<16x256xf32>
    %525 = vector.broadcast %10 : vector<1x256xf32> to vector<16x256xf32>
    %526 = arith.mulf %524, %525 : vector<16x256xf32>
    %527 = arith.addf %523, %526 : vector<16x256xf32>
    %c14_i32_169 = arith.constant 14 : i32
    %528 = tpu.dynamic_rotate %470 by %c14_i32_169 dim 0 : vector<16x256xf32>, i32 -> vector<16x256xf32>
    %529 = vector.broadcast %12 : vector<1x256xf32> to vector<16x256xf32>
    %530 = arith.mulf %528, %529 : vector<16x256xf32>
    %531 = arith.addf %527, %530 : vector<16x256xf32>
    %532 = vector.broadcast %14 : vector<1x256xf32> to vector<16x256xf32>
    %533 = arith.mulf %510, %532 : vector<16x256xf32>
    %534 = arith.addf %531, %533 : vector<16x256xf32>
    %c15_i32_170 = arith.constant 15 : i32
    %535 = tpu.dynamic_rotate %510 by %c15_i32_170 dim 0 : vector<16x256xf32>, i32 -> vector<16x256xf32>
    %536 = vector.broadcast %16 : vector<1x256xf32> to vector<16x256xf32>
    %537 = arith.mulf %535, %536 : vector<16x256xf32>
    %538 = arith.addf %534, %537 : vector<16x256xf32>
    %c14_i32_171 = arith.constant 14 : i32
    %539 = tpu.dynamic_rotate %510 by %c14_i32_171 dim 0 : vector<16x256xf32>, i32 -> vector<16x256xf32>
    %540 = vector.broadcast %18 : vector<1x256xf32> to vector<16x256xf32>
    %541 = arith.mulf %539, %540 : vector<16x256xf32>
    %542 = arith.addf %538, %541 : vector<16x256xf32>
    %c0_172 = arith.constant 0 : index
    %c12_173 = arith.constant 12 : index
    %c0_174 = arith.constant 0 : index
    %c0_175 = arith.constant 0 : index
    %543 = vector.load %arg4[%c0_172, %c12_173, %c0_174, %c0_175] : memref<1x14x16x256xf32, #tpu.memory_space<vmem>>, vector<1x1x16x256xf32>
    %544 = vector.shape_cast %543 : vector<1x1x16x256xf32> to vector<16x256xf32>
    %545 = vector.shape_cast %542 : vector<16x256xf32> to vector<1x1x16x256xf32>
    tpu.vector_store %arg4[%c0_172, %c12_173, %c0_174, %c0_175], %545 {strides = array<i32>} : memref<1x14x16x256xf32, #tpu.memory_space<vmem>>, vector<1x1x16x256xf32>,
    %546 = arith.addf %506, %542 : vector<16x256xf32>
    %547 = arith.mulf %542, %542 : vector<16x256xf32>
    %548 = arith.addf %508, %547 : vector<16x256xf32>
    %549 = vector.broadcast %2 : vector<1x256xf32> to vector<16x256xf32>
    %550 = arith.mulf %470, %549 : vector<16x256xf32>
    %c15_i32_176 = arith.constant 15 : i32
    %551 = tpu.dynamic_rotate %470 by %c15_i32_176 dim 0 : vector<16x256xf32>, i32 -> vector<16x256xf32>
    %552 = vector.broadcast %4 : vector<1x256xf32> to vector<16x256xf32>
    %553 = arith.mulf %551, %552 : vector<16x256xf32>
    %554 = arith.addf %550, %553 : vector<16x256xf32>
    %c14_i32_177 = arith.constant 14 : i32
    %555 = tpu.dynamic_rotate %470 by %c14_i32_177 dim 0 : vector<16x256xf32>, i32 -> vector<16x256xf32>
    %556 = vector.broadcast %6 : vector<1x256xf32> to vector<16x256xf32>
    %557 = arith.mulf %555, %556 : vector<16x256xf32>
    %558 = arith.addf %554, %557 : vector<16x256xf32>
    %559 = vector.broadcast %8 : vector<1x256xf32> to vector<16x256xf32>
    %560 = arith.mulf %510, %559 : vector<16x256xf32>
    %561 = arith.addf %558, %560 : vector<16x256xf32>
    %c15_i32_178 = arith.constant 15 : i32
    %562 = tpu.dynamic_rotate %510 by %c15_i32_178 dim 0 : vector<16x256xf32>, i32 -> vector<16x256xf32>
    %563 = vector.broadcast %10 : vector<1x256xf32> to vector<16x256xf32>
    %564 = arith.mulf %562, %563 : vector<16x256xf32>
    %565 = arith.addf %561, %564 : vector<16x256xf32>
    %c14_i32_179 = arith.constant 14 : i32
    %566 = tpu.dynamic_rotate %510 by %c14_i32_179 dim 0 : vector<16x256xf32>, i32 -> vector<16x256xf32>
    %567 = vector.broadcast %12 : vector<1x256xf32> to vector<16x256xf32>
    %568 = arith.mulf %566, %567 : vector<16x256xf32>
    %569 = arith.addf %565, %568 : vector<16x256xf32>
    %570 = vector.broadcast %14 : vector<1x256xf32> to vector<16x256xf32>
    %571 = arith.mulf %24, %570 : vector<16x256xf32>
    %572 = arith.addf %569, %571 : vector<16x256xf32>
    %c15_i32_180 = arith.constant 15 : i32
    %573 = tpu.dynamic_rotate %24 by %c15_i32_180 dim 0 : vector<16x256xf32>, i32 -> vector<16x256xf32>
    %574 = vector.broadcast %16 : vector<1x256xf32> to vector<16x256xf32>
    %575 = arith.mulf %573, %574 : vector<16x256xf32>
    %576 = arith.addf %572, %575 : vector<16x256xf32>
    %c14_i32_181 = arith.constant 14 : i32
    %577 = tpu.dynamic_rotate %24 by %c14_i32_181 dim 0 : vector<16x256xf32>, i32 -> vector<16x256xf32>
    %578 = vector.broadcast %18 : vector<1x256xf32> to vector<16x256xf32>
    %579 = arith.mulf %577, %578 : vector<16x256xf32>
    %580 = arith.addf %576, %579 : vector<16x256xf32>
    %c0_182 = arith.constant 0 : index
    %c13_183 = arith.constant 13 : index
    %c0_184 = arith.constant 0 : index
    %c0_185 = arith.constant 0 : index
    %581 = vector.load %arg4[%c0_182, %c13_183, %c0_184, %c0_185] : memref<1x14x16x256xf32, #tpu.memory_space<vmem>>, vector<1x1x16x256xf32>
    %582 = vector.shape_cast %581 : vector<1x1x16x256xf32> to vector<16x256xf32>
    %583 = vector.shape_cast %580 : vector<16x256xf32> to vector<1x1x16x256xf32>
    tpu.vector_store %arg4[%c0_182, %c13_183, %c0_184, %c0_185], %583 {strides = array<i32>} : memref<1x14x16x256xf32, #tpu.memory_space<vmem>>, vector<1x1x16x256xf32>,
    %584 = arith.addf %546, %580 : vector<16x256xf32>
    %585 = arith.mulf %580, %580 : vector<16x256xf32>
    %586 = arith.addf %548, %585 : vector<16x256xf32>
    %587 = vector.broadcast %23 : vector<16x1xf32> to vector<16x256xf32>
    %588 = arith.mulf %584, %587 : vector<16x256xf32>
    %cst_186 = arith.constant dense<0.000000e+00> : vector<256xf32>
    %589 = vector.multi_reduction <add>, %588, %cst_186 [0] : vector<16x256xf32> to vector<256xf32>
    %590 = vector.shape_cast %589 : vector<256xf32> to vector<1x256xf32>
    %591 = vector.broadcast %23 : vector<16x1xf32> to vector<16x256xf32>
    %592 = arith.mulf %586, %591 : vector<16x256xf32>
    %cst_187 = arith.constant dense<0.000000e+00> : vector<256xf32>
    %593 = vector.multi_reduction <add>, %592, %cst_187 [0] : vector<16x256xf32> to vector<256xf32>
    %594 = vector.shape_cast %593 : vector<256xf32> to vector<1x256xf32>
    %cst_188 = arith.constant 0.00510204071 : f32
    %595 = vector.broadcast %cst_188 : f32 to vector<1x256xf32>
    %596 = arith.mulf %590, %595 : vector<1x256xf32>
    %cst_189 = arith.constant 0.00510204071 : f32
    %597 = vector.broadcast %cst_189 : f32 to vector<1x256xf32>
    %598 = arith.mulf %594, %597 : vector<1x256xf32>
    %599 = arith.mulf %596, %596 : vector<1x256xf32>
    %600 = arith.subf %598, %599 : vector<1x256xf32>
    %cst_190 = arith.constant 0.000000e+00 : f32
    %601 = vector.broadcast %cst_190 : f32 to vector<1x256xf32>
    %602 = arith.maximumf %600, %601 : vector<1x256xf32>
    %cst_191 = arith.constant 1.000000e-03 : f32
    %603 = vector.broadcast %cst_191 : f32 to vector<1x256xf32>
    %604 = arith.addf %602, %603 : vector<1x256xf32>
    %605 = math.rsqrt %604 : vector<1x256xf32>
    %c0_192 = arith.constant 0 : index
    %c0_193 = arith.constant 0 : index
    %606 = vector.load %arg2[%c0_192, %c0_193] : memref<1x256xf32, #tpu.memory_space<vmem>>, vector<1x256xf32>
    %607 = arith.mulf %606, %605 : vector<1x256xf32>
    %c0_194 = arith.constant 0 : index
    %c0_195 = arith.constant 0 : index
    %608 = vector.load %arg3[%c0_194, %c0_195] : memref<1x256xf32, #tpu.memory_space<vmem>>, vector<1x256xf32>
    %609 = arith.mulf %596, %607 : vector<1x256xf32>
    %610 = arith.subf %608, %609 : vector<1x256xf32>
    %c0_196 = arith.constant 0 : index
    %c0_197 = arith.constant 0 : index
    %c0_198 = arith.constant 0 : index
    %c0_199 = arith.constant 0 : index
    %611 = vector.load %arg4[%c0_196, %c0_197, %c0_198, %c0_199] : memref<1x14x16x256xf32, #tpu.memory_space<vmem>>, vector<1x1x16x256xf32>
    %612 = vector.shape_cast %611 : vector<1x1x16x256xf32> to vector<16x256xf32>
    %613 = vector.broadcast %607 : vector<1x256xf32> to vector<16x256xf32>
    %614 = arith.mulf %612, %613 : vector<16x256xf32>
    %615 = vector.broadcast %610 : vector<1x256xf32> to vector<16x256xf32>
    %616 = arith.addf %614, %615 : vector<16x256xf32>
    %c0_200 = arith.constant 0 : index
    %c0_201 = arith.constant 0 : index
    %c0_202 = arith.constant 0 : index
    %c0_203 = arith.constant 0 : index
    %617 = vector.load %arg4[%c0_200, %c0_201, %c0_202, %c0_203] : memref<1x14x16x256xf32, #tpu.memory_space<vmem>>, vector<1x1x16x256xf32>
    %618 = vector.shape_cast %617 : vector<1x1x16x256xf32> to vector<16x256xf32>
    %619 = vector.shape_cast %616 : vector<16x256xf32> to vector<1x1x16x256xf32>
    tpu.vector_store %arg4[%c0_200, %c0_201, %c0_202, %c0_203], %619 {strides = array<i32>} : memref<1x14x16x256xf32, #tpu.memory_space<vmem>>, vector<1x1x16x256xf32>,
    %c0_204 = arith.constant 0 : index
    %c1_205 = arith.constant 1 : index
    %c0_206 = arith.constant 0 : index
    %c0_207 = arith.constant 0 : index
    %620 = vector.load %arg4[%c0_204, %c1_205, %c0_206, %c0_207] : memref<1x14x16x256xf32, #tpu.memory_space<vmem>>, vector<1x1x16x256xf32>
    %621 = vector.shape_cast %620 : vector<1x1x16x256xf32> to vector<16x256xf32>
    %622 = vector.broadcast %607 : vector<1x256xf32> to vector<16x256xf32>
    %623 = arith.mulf %621, %622 : vector<16x256xf32>
    %624 = vector.broadcast %610 : vector<1x256xf32> to vector<16x256xf32>
    %625 = arith.addf %623, %624 : vector<16x256xf32>
    %c0_208 = arith.constant 0 : index
    %c1_209 = arith.constant 1 : index
    %c0_210 = arith.constant 0 : index
    %c0_211 = arith.constant 0 : index
    %626 = vector.load %arg4[%c0_208, %c1_209, %c0_210, %c0_211] : memref<1x14x16x256xf32, #tpu.memory_space<vmem>>, vector<1x1x16x256xf32>
    %627 = vector.shape_cast %626 : vector<1x1x16x256xf32> to vector<16x256xf32>
    %628 = vector.shape_cast %625 : vector<16x256xf32> to vector<1x1x16x256xf32>
    tpu.vector_store %arg4[%c0_208, %c1_209, %c0_210, %c0_211], %628 {strides = array<i32>} : memref<1x14x16x256xf32, #tpu.memory_space<vmem>>, vector<1x1x16x256xf32>,
    %c0_212 = arith.constant 0 : index
    %c2_213 = arith.constant 2 : index
    %c0_214 = arith.constant 0 : index
    %c0_215 = arith.constant 0 : index
    %629 = vector.load %arg4[%c0_212, %c2_213, %c0_214, %c0_215] : memref<1x14x16x256xf32, #tpu.memory_space<vmem>>, vector<1x1x16x256xf32>
    %630 = vector.shape_cast %629 : vector<1x1x16x256xf32> to vector<16x256xf32>
    %631 = vector.broadcast %607 : vector<1x256xf32> to vector<16x256xf32>
    %632 = arith.mulf %630, %631 : vector<16x256xf32>
    %633 = vector.broadcast %610 : vector<1x256xf32> to vector<16x256xf32>
    %634 = arith.addf %632, %633 : vector<16x256xf32>
    %c0_216 = arith.constant 0 : index
    %c2_217 = arith.constant 2 : index
    %c0_218 = arith.constant 0 : index
    %c0_219 = arith.constant 0 : index
    %635 = vector.load %arg4[%c0_216, %c2_217, %c0_218, %c0_219] : memref<1x14x16x256xf32, #tpu.memory_space<vmem>>, vector<1x1x16x256xf32>
    %636 = vector.shape_cast %635 : vector<1x1x16x256xf32> to vector<16x256xf32>
    %637 = vector.shape_cast %634 : vector<16x256xf32> to vector<1x1x16x256xf32>
    tpu.vector_store %arg4[%c0_216, %c2_217, %c0_218, %c0_219], %637 {strides = array<i32>} : memref<1x14x16x256xf32, #tpu.memory_space<vmem>>, vector<1x1x16x256xf32>,
    %c0_220 = arith.constant 0 : index
    %c3_221 = arith.constant 3 : index
    %c0_222 = arith.constant 0 : index
    %c0_223 = arith.constant 0 : index
    %638 = vector.load %arg4[%c0_220, %c3_221, %c0_222, %c0_223] : memref<1x14x16x256xf32, #tpu.memory_space<vmem>>, vector<1x1x16x256xf32>
    %639 = vector.shape_cast %638 : vector<1x1x16x256xf32> to vector<16x256xf32>
    %640 = vector.broadcast %607 : vector<1x256xf32> to vector<16x256xf32>
    %641 = arith.mulf %639, %640 : vector<16x256xf32>
    %642 = vector.broadcast %610 : vector<1x256xf32> to vector<16x256xf32>
    %643 = arith.addf %641, %642 : vector<16x256xf32>
    %c0_224 = arith.constant 0 : index
    %c3_225 = arith.constant 3 : index
    %c0_226 = arith.constant 0 : index
    %c0_227 = arith.constant 0 : index
    %644 = vector.load %arg4[%c0_224, %c3_225, %c0_226, %c0_227] : memref<1x14x16x256xf32, #tpu.memory_space<vmem>>, vector<1x1x16x256xf32>
    %645 = vector.shape_cast %644 : vector<1x1x16x256xf32> to vector<16x256xf32>
    %646 = vector.shape_cast %643 : vector<16x256xf32> to vector<1x1x16x256xf32>
    tpu.vector_store %arg4[%c0_224, %c3_225, %c0_226, %c0_227], %646 {strides = array<i32>} : memref<1x14x16x256xf32, #tpu.memory_space<vmem>>, vector<1x1x16x256xf32>,
    %c0_228 = arith.constant 0 : index
    %c4_229 = arith.constant 4 : index
    %c0_230 = arith.constant 0 : index
    %c0_231 = arith.constant 0 : index
    %647 = vector.load %arg4[%c0_228, %c4_229, %c0_230, %c0_231] : memref<1x14x16x256xf32, #tpu.memory_space<vmem>>, vector<1x1x16x256xf32>
    %648 = vector.shape_cast %647 : vector<1x1x16x256xf32> to vector<16x256xf32>
    %649 = vector.broadcast %607 : vector<1x256xf32> to vector<16x256xf32>
    %650 = arith.mulf %648, %649 : vector<16x256xf32>
    %651 = vector.broadcast %610 : vector<1x256xf32> to vector<16x256xf32>
    %652 = arith.addf %650, %651 : vector<16x256xf32>
    %c0_232 = arith.constant 0 : index
    %c4_233 = arith.constant 4 : index
    %c0_234 = arith.constant 0 : index
    %c0_235 = arith.constant 0 : index
    %653 = vector.load %arg4[%c0_232, %c4_233, %c0_234, %c0_235] : memref<1x14x16x256xf32, #tpu.memory_space<vmem>>, vector<1x1x16x256xf32>
    %654 = vector.shape_cast %653 : vector<1x1x16x256xf32> to vector<16x256xf32>
    %655 = vector.shape_cast %652 : vector<16x256xf32> to vector<1x1x16x256xf32>
    tpu.vector_store %arg4[%c0_232, %c4_233, %c0_234, %c0_235], %655 {strides = array<i32>} : memref<1x14x16x256xf32, #tpu.memory_space<vmem>>, vector<1x1x16x256xf32>,
    %c0_236 = arith.constant 0 : index
    %c5_237 = arith.constant 5 : index
    %c0_238 = arith.constant 0 : index
    %c0_239 = arith.constant 0 : index
    %656 = vector.load %arg4[%c0_236, %c5_237, %c0_238, %c0_239] : memref<1x14x16x256xf32, #tpu.memory_space<vmem>>, vector<1x1x16x256xf32>
    %657 = vector.shape_cast %656 : vector<1x1x16x256xf32> to vector<16x256xf32>
    %658 = vector.broadcast %607 : vector<1x256xf32> to vector<16x256xf32>
    %659 = arith.mulf %657, %658 : vector<16x256xf32>
    %660 = vector.broadcast %610 : vector<1x256xf32> to vector<16x256xf32>
    %661 = arith.addf %659, %660 : vector<16x256xf32>
    %c0_240 = arith.constant 0 : index
    %c5_241 = arith.constant 5 : index
    %c0_242 = arith.constant 0 : index
    %c0_243 = arith.constant 0 : index
    %662 = vector.load %arg4[%c0_240, %c5_241, %c0_242, %c0_243] : memref<1x14x16x256xf32, #tpu.memory_space<vmem>>, vector<1x1x16x256xf32>
    %663 = vector.shape_cast %662 : vector<1x1x16x256xf32> to vector<16x256xf32>
    %664 = vector.shape_cast %661 : vector<16x256xf32> to vector<1x1x16x256xf32>
    tpu.vector_store %arg4[%c0_240, %c5_241, %c0_242, %c0_243], %664 {strides = array<i32>} : memref<1x14x16x256xf32, #tpu.memory_space<vmem>>, vector<1x1x16x256xf32>,
    %c0_244 = arith.constant 0 : index
    %c6_245 = arith.constant 6 : index
    %c0_246 = arith.constant 0 : index
    %c0_247 = arith.constant 0 : index
    %665 = vector.load %arg4[%c0_244, %c6_245, %c0_246, %c0_247] : memref<1x14x16x256xf32, #tpu.memory_space<vmem>>, vector<1x1x16x256xf32>
    %666 = vector.shape_cast %665 : vector<1x1x16x256xf32> to vector<16x256xf32>
    %667 = vector.broadcast %607 : vector<1x256xf32> to vector<16x256xf32>
    %668 = arith.mulf %666, %667 : vector<16x256xf32>
    %669 = vector.broadcast %610 : vector<1x256xf32> to vector<16x256xf32>
    %670 = arith.addf %668, %669 : vector<16x256xf32>
    %c0_248 = arith.constant 0 : index
    %c6_249 = arith.constant 6 : index
    %c0_250 = arith.constant 0 : index
    %c0_251 = arith.constant 0 : index
    %671 = vector.load %arg4[%c0_248, %c6_249, %c0_250, %c0_251] : memref<1x14x16x256xf32, #tpu.memory_space<vmem>>, vector<1x1x16x256xf32>
    %672 = vector.shape_cast %671 : vector<1x1x16x256xf32> to vector<16x256xf32>
    %673 = vector.shape_cast %670 : vector<16x256xf32> to vector<1x1x16x256xf32>
    tpu.vector_store %arg4[%c0_248, %c6_249, %c0_250, %c0_251], %673 {strides = array<i32>} : memref<1x14x16x256xf32, #tpu.memory_space<vmem>>, vector<1x1x16x256xf32>,
    %c0_252 = arith.constant 0 : index
    %c7_253 = arith.constant 7 : index
    %c0_254 = arith.constant 0 : index
    %c0_255 = arith.constant 0 : index
    %674 = vector.load %arg4[%c0_252, %c7_253, %c0_254, %c0_255] : memref<1x14x16x256xf32, #tpu.memory_space<vmem>>, vector<1x1x16x256xf32>
    %675 = vector.shape_cast %674 : vector<1x1x16x256xf32> to vector<16x256xf32>
    %676 = vector.broadcast %607 : vector<1x256xf32> to vector<16x256xf32>
    %677 = arith.mulf %675, %676 : vector<16x256xf32>
    %678 = vector.broadcast %610 : vector<1x256xf32> to vector<16x256xf32>
    %679 = arith.addf %677, %678 : vector<16x256xf32>
    %c0_256 = arith.constant 0 : index
    %c7_257 = arith.constant 7 : index
    %c0_258 = arith.constant 0 : index
    %c0_259 = arith.constant 0 : index
    %680 = vector.load %arg4[%c0_256, %c7_257, %c0_258, %c0_259] : memref<1x14x16x256xf32, #tpu.memory_space<vmem>>, vector<1x1x16x256xf32>
    %681 = vector.shape_cast %680 : vector<1x1x16x256xf32> to vector<16x256xf32>
    %682 = vector.shape_cast %679 : vector<16x256xf32> to vector<1x1x16x256xf32>
    tpu.vector_store %arg4[%c0_256, %c7_257, %c0_258, %c0_259], %682 {strides = array<i32>} : memref<1x14x16x256xf32, #tpu.memory_space<vmem>>, vector<1x1x16x256xf32>,
    %c0_260 = arith.constant 0 : index
    %c8_261 = arith.constant 8 : index
    %c0_262 = arith.constant 0 : index
    %c0_263 = arith.constant 0 : index
    %683 = vector.load %arg4[%c0_260, %c8_261, %c0_262, %c0_263] : memref<1x14x16x256xf32, #tpu.memory_space<vmem>>, vector<1x1x16x256xf32>
    %684 = vector.shape_cast %683 : vector<1x1x16x256xf32> to vector<16x256xf32>
    %685 = vector.broadcast %607 : vector<1x256xf32> to vector<16x256xf32>
    %686 = arith.mulf %684, %685 : vector<16x256xf32>
    %687 = vector.broadcast %610 : vector<1x256xf32> to vector<16x256xf32>
    %688 = arith.addf %686, %687 : vector<16x256xf32>
    %c0_264 = arith.constant 0 : index
    %c8_265 = arith.constant 8 : index
    %c0_266 = arith.constant 0 : index
    %c0_267 = arith.constant 0 : index
    %689 = vector.load %arg4[%c0_264, %c8_265, %c0_266, %c0_267] : memref<1x14x16x256xf32, #tpu.memory_space<vmem>>, vector<1x1x16x256xf32>
    %690 = vector.shape_cast %689 : vector<1x1x16x256xf32> to vector<16x256xf32>
    %691 = vector.shape_cast %688 : vector<16x256xf32> to vector<1x1x16x256xf32>
    tpu.vector_store %arg4[%c0_264, %c8_265, %c0_266, %c0_267], %691 {strides = array<i32>} : memref<1x14x16x256xf32, #tpu.memory_space<vmem>>, vector<1x1x16x256xf32>,
    %c0_268 = arith.constant 0 : index
    %c9_269 = arith.constant 9 : index
    %c0_270 = arith.constant 0 : index
    %c0_271 = arith.constant 0 : index
    %692 = vector.load %arg4[%c0_268, %c9_269, %c0_270, %c0_271] : memref<1x14x16x256xf32, #tpu.memory_space<vmem>>, vector<1x1x16x256xf32>
    %693 = vector.shape_cast %692 : vector<1x1x16x256xf32> to vector<16x256xf32>
    %694 = vector.broadcast %607 : vector<1x256xf32> to vector<16x256xf32>
    %695 = arith.mulf %693, %694 : vector<16x256xf32>
    %696 = vector.broadcast %610 : vector<1x256xf32> to vector<16x256xf32>
    %697 = arith.addf %695, %696 : vector<16x256xf32>
    %c0_272 = arith.constant 0 : index
    %c9_273 = arith.constant 9 : index
    %c0_274 = arith.constant 0 : index
    %c0_275 = arith.constant 0 : index
    %698 = vector.load %arg4[%c0_272, %c9_273, %c0_274, %c0_275] : memref<1x14x16x256xf32, #tpu.memory_space<vmem>>, vector<1x1x16x256xf32>
    %699 = vector.shape_cast %698 : vector<1x1x16x256xf32> to vector<16x256xf32>
    %700 = vector.shape_cast %697 : vector<16x256xf32> to vector<1x1x16x256xf32>
    tpu.vector_store %arg4[%c0_272, %c9_273, %c0_274, %c0_275], %700 {strides = array<i32>} : memref<1x14x16x256xf32, #tpu.memory_space<vmem>>, vector<1x1x16x256xf32>,
    %c0_276 = arith.constant 0 : index
    %c10_277 = arith.constant 10 : index
    %c0_278 = arith.constant 0 : index
    %c0_279 = arith.constant 0 : index
    %701 = vector.load %arg4[%c0_276, %c10_277, %c0_278, %c0_279] : memref<1x14x16x256xf32, #tpu.memory_space<vmem>>, vector<1x1x16x256xf32>
    %702 = vector.shape_cast %701 : vector<1x1x16x256xf32> to vector<16x256xf32>
    %703 = vector.broadcast %607 : vector<1x256xf32> to vector<16x256xf32>
    %704 = arith.mulf %702, %703 : vector<16x256xf32>
    %705 = vector.broadcast %610 : vector<1x256xf32> to vector<16x256xf32>
    %706 = arith.addf %704, %705 : vector<16x256xf32>
    %c0_280 = arith.constant 0 : index
    %c10_281 = arith.constant 10 : index
    %c0_282 = arith.constant 0 : index
    %c0_283 = arith.constant 0 : index
    %707 = vector.load %arg4[%c0_280, %c10_281, %c0_282, %c0_283] : memref<1x14x16x256xf32, #tpu.memory_space<vmem>>, vector<1x1x16x256xf32>
    %708 = vector.shape_cast %707 : vector<1x1x16x256xf32> to vector<16x256xf32>
    %709 = vector.shape_cast %706 : vector<16x256xf32> to vector<1x1x16x256xf32>
    tpu.vector_store %arg4[%c0_280, %c10_281, %c0_282, %c0_283], %709 {strides = array<i32>} : memref<1x14x16x256xf32, #tpu.memory_space<vmem>>, vector<1x1x16x256xf32>,
    %c0_284 = arith.constant 0 : index
    %c11_285 = arith.constant 11 : index
    %c0_286 = arith.constant 0 : index
    %c0_287 = arith.constant 0 : index
    %710 = vector.load %arg4[%c0_284, %c11_285, %c0_286, %c0_287] : memref<1x14x16x256xf32, #tpu.memory_space<vmem>>, vector<1x1x16x256xf32>
    %711 = vector.shape_cast %710 : vector<1x1x16x256xf32> to vector<16x256xf32>
    %712 = vector.broadcast %607 : vector<1x256xf32> to vector<16x256xf32>
    %713 = arith.mulf %711, %712 : vector<16x256xf32>
    %714 = vector.broadcast %610 : vector<1x256xf32> to vector<16x256xf32>
    %715 = arith.addf %713, %714 : vector<16x256xf32>
    %c0_288 = arith.constant 0 : index
    %c11_289 = arith.constant 11 : index
    %c0_290 = arith.constant 0 : index
    %c0_291 = arith.constant 0 : index
    %716 = vector.load %arg4[%c0_288, %c11_289, %c0_290, %c0_291] : memref<1x14x16x256xf32, #tpu.memory_space<vmem>>, vector<1x1x16x256xf32>
    %717 = vector.shape_cast %716 : vector<1x1x16x256xf32> to vector<16x256xf32>
    %718 = vector.shape_cast %715 : vector<16x256xf32> to vector<1x1x16x256xf32>
    tpu.vector_store %arg4[%c0_288, %c11_289, %c0_290, %c0_291], %718 {strides = array<i32>} : memref<1x14x16x256xf32, #tpu.memory_space<vmem>>, vector<1x1x16x256xf32>,
    %c0_292 = arith.constant 0 : index
    %c12_293 = arith.constant 12 : index
    %c0_294 = arith.constant 0 : index
    %c0_295 = arith.constant 0 : index
    %719 = vector.load %arg4[%c0_292, %c12_293, %c0_294, %c0_295] : memref<1x14x16x256xf32, #tpu.memory_space<vmem>>, vector<1x1x16x256xf32>
    %720 = vector.shape_cast %719 : vector<1x1x16x256xf32> to vector<16x256xf32>
    %721 = vector.broadcast %607 : vector<1x256xf32> to vector<16x256xf32>
    %722 = arith.mulf %720, %721 : vector<16x256xf32>
    %723 = vector.broadcast %610 : vector<1x256xf32> to vector<16x256xf32>
    %724 = arith.addf %722, %723 : vector<16x256xf32>
    %c0_296 = arith.constant 0 : index
    %c12_297 = arith.constant 12 : index
    %c0_298 = arith.constant 0 : index
    %c0_299 = arith.constant 0 : index
    %725 = vector.load %arg4[%c0_296, %c12_297, %c0_298, %c0_299] : memref<1x14x16x256xf32, #tpu.memory_space<vmem>>, vector<1x1x16x256xf32>
    %726 = vector.shape_cast %725 : vector<1x1x16x256xf32> to vector<16x256xf32>
    %727 = vector.shape_cast %724 : vector<16x256xf32> to vector<1x1x16x256xf32>
    tpu.vector_store %arg4[%c0_296, %c12_297, %c0_298, %c0_299], %727 {strides = array<i32>} : memref<1x14x16x256xf32, #tpu.memory_space<vmem>>, vector<1x1x16x256xf32>,
    %c0_300 = arith.constant 0 : index
    %c13_301 = arith.constant 13 : index
    %c0_302 = arith.constant 0 : index
    %c0_303 = arith.constant 0 : index
    %728 = vector.load %arg4[%c0_300, %c13_301, %c0_302, %c0_303] : memref<1x14x16x256xf32, #tpu.memory_space<vmem>>, vector<1x1x16x256xf32>
    %729 = vector.shape_cast %728 : vector<1x1x16x256xf32> to vector<16x256xf32>
    %730 = vector.broadcast %607 : vector<1x256xf32> to vector<16x256xf32>
    %731 = arith.mulf %729, %730 : vector<16x256xf32>
    %732 = vector.broadcast %610 : vector<1x256xf32> to vector<16x256xf32>
    %733 = arith.addf %731, %732 : vector<16x256xf32>
    %c0_304 = arith.constant 0 : index
    %c13_305 = arith.constant 13 : index
    %c0_306 = arith.constant 0 : index
    %c0_307 = arith.constant 0 : index
    %734 = vector.load %arg4[%c0_304, %c13_305, %c0_306, %c0_307] : memref<1x14x16x256xf32, #tpu.memory_space<vmem>>, vector<1x1x16x256xf32>
    %735 = vector.shape_cast %734 : vector<1x1x16x256xf32> to vector<16x256xf32>
    %736 = vector.shape_cast %733 : vector<16x256xf32> to vector<1x1x16x256xf32>
    tpu.vector_store %arg4[%c0_304, %c13_305, %c0_306, %c0_307], %736 {strides = array<i32>} : memref<1x14x16x256xf32, #tpu.memory_space<vmem>>, vector<1x1x16x256xf32>,
    return
  }
}

</mosaic_0001>

<bundles_post_ra>
// kernel: dwconv_bn.1
= control target key start
LH: loop header
LB: loop body
LE: loop exit
PB: predicated region body
PF: predicated region fallthrough
CT: control target
= control target key end

     0   :  { %v20_v0 = vlaneseq  ;;  %s5363_s1 = inlined_call_operand.vmem [shape: f32[3,3,256], index: 1, kind: input, shape index: {}]   ;;  %s5364_s0 = inlined_call_operand.vmem [shape: f32[1,14,16,256], index: 0, kind: input, shape index: {}]   ;;  %s5365_s4 = inlined_call_operand.vmem [shape: f32[1,14,16,256], index: 4, kind: output, shape index: {}]   ;;  %s5366_s2 = inlined_call_operand.vmem [shape: f32[1,256], index: 2, kind: input, shape index: {}]   ;;  %s5367_s3 = inlined_call_operand.vmem [shape: f32[1,256], index: 3, kind: input, shape index: {}]  }
   0x1   :  { %v2251_v2 = vld [vmem:[%s5363_s1] sm:$0x77]  ;;  %v2256_v3 = vld [vmem:[%s5363_s1 + $0x8] sm:$0x77]  ;;  %v2272_v7 = vld [vmem:[%s5364_s0 + $0x10] sm:$0xff] }
   0x2   :  { %v2246_v1 = vshrl.u32 %v20_v0, 7  ;;  %v2261_v4 = vld [vmem:[%s5364_s0] sm:$0xff]  ;;  %v2286_v12 = vld [vmem:[%s5363_s1 + $0x10] sm:$0x77]  ;;  %v134_v18 = vrot.slane %v2272_v7, 1  ;;  %v168_v23 = vrot.slane %v2272_v7, 2 }
   0x3   :  { %v132_v14 = vrot.slane %v2261_v4, 1  ;;  %v2294_v15 = vld [vmem:[%s5364_s0 + $0x20] sm:$0xff]  ;;  %v2308_v20 = vld [vmem:[%s5364_s0 + $0x30] sm:$0xff]  ;;  %v166_v22 = vrot.slane %v2261_v4, 2  ;;  %v2393_v56 = vld [vmem:[%s5364_s0 + $0x8] sm:$0xff] }
   0x4   :  { %v2264_v5 = vsub.s32 0, %v2246_v1  ;;  %v2267_v6 = vsub.s32 1, %v2246_v1  ;;  %v2275_v8 = vsub.s32 2, %v2246_v1  ;;  %vm59_vm0 = vcmp.lt.s32.totalorder %v2246_v1, 7 }
   0x5   :  { %vm82_vm1 = vcmp.lt.s32.totalorder %v2246_v1, 6  ;;  %v5374_v30 = vrot.slane %v2294_v15, 1  ;;  %v5373_v34 = vrot.slane %v2308_v20, 1  ;;  %v136_v35 = vsel %vm59_vm0, %v132_v14, %v134_v18 }
   0x6   :  { %5456 = vst [vmem:[#allocation2_spill] sm:$0xff] %v2264_v5  ;;  %5457 = vst [vmem:[#allocation3_spill] sm:$0xff] %v2267_v6  ;;  %v42_v9 = vrot.slane %v2251_v2, %v2264_v5  ;;  %v63_v10 = vrot.slane %v2251_v2, %v2267_v6  ;;  %v109_v11 = vrot.slane %v2256_v3, %v2264_v5  ;;  %v5371_v44 = vrot.slane %v2294_v15, 2 }
   0x7   :  { %v86_v13 = vrot.slane %v2251_v2, %v2275_v8  ;;  %v143_v19 = vrot.slane %v2256_v3, %v2267_v6  ;;  %v177_v24 = vrot.slane %v2256_v3, %v2275_v8  ;;  %v204_v28 = vrot.slane %v2286_v12, %v2264_v5 }
   0x8   :  { %v2297_v16 = vrot.slane %v42_v9, %v2264_v5  ;;  %v2300_v17 = vrot.slane %v63_v10, %v2267_v6  ;;  %v2320_v27 = vrot.slane %v109_v11, %v2264_v5  ;;  %v170_v36 = vsel %vm82_vm1, %v166_v22, %v168_v23  ;;  %v2410_v10 = vld [vmem:[%s5364_s0 + $0x18] sm:$0xff] }
   0x9   :  { %v2311_v21 = vrot.slane %v86_v13, %v2275_v8  ;;  %v2331_v33 = vrot.slane %v143_v19, %v2267_v6  ;;  %v2347_v37 = vrot.slane %v177_v24, %v2275_v8  ;;  %v238_v38 = vrot.slane %v2286_v12, %v2267_v6  ;;  %5458 = vst [vmem:[#allocation4_spill] sm:$0xff] %v2410_v10 }
   0xa   :  { %v57_v25 = vmul.f32 0.0, %v2297_v16  ;;  %v78_v26 = vmul.f32 0.0, %v2300_v17  ;;  %v124_v32 = vmul.f32 %v2320_v27, %v2261_v4  ;;  %v2355_v41 = vrot.slane %v204_v28, %v2264_v5 }
   0xb   :  { %v101_v29 = vmul.f32 0.0, %v2311_v21  ;;  %v158_v40 = vmul.f32 %v2331_v33, %v136_v35  ;;  %v2363_v42 = vsel %vm59_vm0, %v5374_v30, %v5373_v34  ;;  %v192_v43 = vmul.f32 %v2347_v37, %v170_v36 }
   0xc   :  { %v80_v31 = vadd.f32 %v78_v26, %v57_v25  ;;  %v5370_v45 = vrot.slane %v2308_v20, 2  ;;  %v272_v46 = vrot.slane %v2286_v12, %v2275_v8  ;;  %v219_v48 = vmul.f32 %v2294_v15, %v2355_v41 }
   0xd   :  { %v45_v49 = vsub.s32 4, %v2246_v1  ;;  %v66_v50 = vsub.s32 5, %v2246_v1  ;;  %v2376_v51 = vrot.slane %v238_v38, %v2267_v6  ;;  %v2387_v53 = vmul.f32 %v136_v35, %v2300_v17 }
   0xe   :  { %v2351_v39 = vadd.f32 %v101_v29, %v80_v31  ;;  %v2384_v52 = vsel %vm82_vm1, %v5371_v44, %v5370_v45  ;;  %v89_v54 = vsub.s32 6, %v2246_v1  ;;  %v2399_v60 = vrot.slane %v272_v46, %v2275_v8  ;;  %v2440_v46 = vld [vmem:[%s5364_s0 + $0x28] sm:$0xff] }
   0xf   :  { %v46_v57 = vrot.slane %v2251_v2, %v45_v49  ;;  %v67_v58 = vrot.slane %v2251_v2, %v66_v50  ;;  %v113_v59 = vrot.slane %v2256_v3, %v45_v49  ;;  %v422_v61 = vmul.f32 %v2294_v15, %v2297_v16 }
  0x10   :  { %v128_v47 = vadd.f32 %v124_v32, %v2351_v39  ;;  %v90_v62 = vrot.slane %v2251_v2, %v89_v54  ;;  %v147_v63 = vrot.slane %v2256_v3, %v66_v50  ;;  %v253_v9 = vmul.f32 %v2376_v51, %v2363_v42 }
  0x11   :  { %v2413_v11 = vrot.slane %v46_v57, %v2264_v5  ;;  %v2416_v13 = vrot.slane %v67_v58, %v2267_v6  ;;  %v287_v2 = vmul.f32 %v2399_v60, %v2384_v52  ;;  %v426_v19 = vmul.f32 %v2363_v42, %v2300_v17  ;;  %v2448_v57 = vld [vmem:[%s5364_s0 + $0x38] sm:$0xff] }
  0x12   :  { %v162_v55 = vadd.f32 %v158_v40, %v128_v47  ;;  %v2423_v24 = vrot.slane %v90_v62, %v2275_v8  ;;  %v5369_v25 = vrot.slane %v2393_v56, 1  ;;  %v2429_v31 = vrot.slane %v113_v59, %v2264_v5 }
  0x13   :  { %v58_v28 = vmul.f32 0.0, %v2413_v11  ;;  %v79_v29 = vmul.f32 0.0, %v2416_v13  ;;  %v5368_v35 = vrot.slane %v2410_v10, 1  ;;  %v2434_v38 = vrot.slane %v147_v63, %v2267_v6 }
  0x14   :  { %v196_v0 = vadd.f32 %v192_v43, %v162_v55  ;;  %5459 = vst [vmem:[#allocation5_spill] sm:$0xff] %v2423_v24  ;;  %v102_v32 = vmul.f32 0.0, %v2423_v24  ;;  %v181_v40 = vrot.slane %v2256_v3, %v89_v54  ;;  %v208_v55 = vrot.slane %v2286_v12, %v45_v49 }
  0x15   :  { %v81_v47 = vadd.f32 %v79_v29, %v58_v28  ;;  %v137_v3 = vsel %vm59_vm0, %v5369_v25, %v5368_v35  ;;  %v167_v58 = vrot.slane %v2393_v56, 2  ;;  %v169_v59 = vrot.slane %v2410_v10, 2 }
  0x16   :  { %v223_v26 = vadd.f32 %v219_v48, %v196_v0  ;;  %v125_v48 = vmul.f32 %v2429_v31, %v2393_v56  ;;  %v242_v62 = vrot.slane %v2286_v12, %v66_v50  ;;  %v159_v0 = vmul.f32 %v2434_v38, %v137_v3 }
  0x17   :  { %v104_v49 = vadd.f32 %v102_v32, %v81_v47  ;;  %v171_v28 = vsel %vm82_vm1, %v167_v58, %v169_v59  ;;  %v5372_v29 = vrot.slane %v2440_v46, 1  ;;  %v276_v35 = vrot.slane %v2286_v12, %v89_v54 }
  0x18   :  { %v257_v43 = vadd.f32 %v253_v9, %v223_v26  ;;  %v2463_v9 = vrot.slane %v181_v40, %v2275_v8  ;;  %v2466_v26 = vmul.f32 %v170_v36, %v2311_v21  ;;  %v2478_v32 = vrot.slane %v208_v55, %v2264_v5 }
  0x19   :  { %v129_v50 = vadd.f32 %v125_v48, %v104_v49  ;;  %v230_v36 = vrot.slane %v2448_v57, 1  ;;  %v434_v40 = vmul.f32 %v2384_v52, %v2311_v21  ;;  %v262_v12 = vrot.slane %v2440_v46, 2 }
  0x1a   :  { %v2459_v63 = vadd.f32 %v287_v2, %v257_v43  ;;  %5461 = vst [vmem:[#allocation7_spill] sm:$0xff] %v2463_v9  ;;  %v193_v2 = vmul.f32 %v2463_v9, %v171_v28  ;;  %5462 = vst [vmem:[#allocation8_spill] sm:$0xff] %v2478_v32  ;;  %v2484_v43 = vrot.slane %v242_v62, %v2267_v6  ;;  %v264_v54 = vrot.slane %v2448_v57, 2 }
  0x1b   :  { %v430_v47 = vadd.f32 %v426_v19, %v422_v61  ;;  %v163_v25 = vadd.f32 %v159_v0, %v129_v50  ;;  %v220_v48 = vmul.f32 %v2440_v46, %v2478_v32  ;;  %v232_v55 = vsel %vm59_vm0, %v5372_v29, %v230_v36 }
  0x1c   :  { %5460 = vst [vmem:[#allocation6_spill] sm:$0xff] %v2459_v63  ;;  %295 = vst [vmem:[%s5365_s4] sm:$0xff] %v2459_v63  ;;  %v254_v45 = vmul.f32 %v2484_v43, %v232_v55  ;;  %v266_v62 = vsel %vm82_vm1, %v262_v12, %v264_v54  ;;  %v2498_v44 = vrot.slane %v276_v35, %v2275_v8  ;;  %v5465_v5 = vrot.slane %v2294_v15, 1 }
  0x1d   :  { %v126_v61 = vmul.f32 %v2320_v27, %v2272_v7  ;;  %v197_v19 = vadd.f32 %v193_v2, %v163_v25  ;;  %v423_v0 = vmul.f32 %v2440_v46, %v2413_v11  ;;  %v138_v50 = vsel %vm59_vm0, %v134_v18, %v132_v14 }
  0x1e   :  { %v172_v8 = vsel %vm82_vm1, %v168_v23, %v166_v22  ;;  %v427_v35 = vmul.f32 %v232_v55, %v2416_v13  ;;  %v160_v2 = vmul.f32 %v2331_v33, %v138_v50  ;;  %v2522_v34 = vmul.f32 %v2363_v42, %v2331_v33 }
  0x1f   :  { %v130_v25 = vadd.f32 %v126_v61, %v2351_v39  ;;  %v194_v29 = vmul.f32 %v2347_v37, %v172_v8  ;;  %v2526_v14 = vmul.f32 %v2384_v52, %v2347_v37  ;;  %v224_v18 = vadd.f32 %v220_v48, %v197_v19 }
  0x20   :  { %v288_v30 = vmul.f32 %v2498_v44, %v266_v62  ;;  %v2531_v22 = vmul.f32 %v2459_v63, %v2459_v63  ;;  %v2533_v23 = vadd.f32 %v434_v40, %v430_v47  ;;  %v221_v61 = vmul.f32 %v2308_v20, %v2355_v41 }
  0x21   :  { %v164_v39 = vadd.f32 %v160_v2, %v130_v25  ;;  %v258_v6 = vadd.f32 %v254_v45, %v224_v18  ;;  %v435_v42 = vmul.f32 %v266_v62, %v2423_v24  ;;  %v5466_v52 = vrot.slane %v2308_v20, 1 }
  0x22   :  { %5463 = vst [vmem:[#allocation9_spill] sm:$0xff] %v2531_v22  ;;  %5464 = vst [vmem:[#allocation10_spill] sm:$0xff] %v2533_v23  ;;  %v5467_v19 = vrot.slane %v2294_v15, 2  ;;  %v5468_v22 = vrot.slane %v2308_v20, 2  ;;  %v431_v47 = vadd.f32 %v427_v35, %v423_v0  ;;  %v424_v23 = vmul.f32 %v2308_v20, %v2297_v16 }
  0x23   :  { %v233_v48 = vsel %vm59_vm0, %v5466_v52, %v5465_v5  ;;  %v198_v25 = vadd.f32 %v194_v29, %v164_v39  ;;  %v2552_v18 = vadd.f32 %v288_v30, %v258_v6  ;;  %v127_v5 = vmul.f32 %v2429_v31, %v2410_v10 }
  0x24   :  { %v267_v40 = vsel %vm82_vm1, %v5468_v22, %v5467_v19  ;;  %v255_v45 = vmul.f32 %v2376_v51, %v233_v48  ;;  %v5469_v52 = vrot.slane %v2393_v56, 1  ;;  %v5470_v63 = vrot.slane %v2410_v10, 1 }
  0x25   :  { %v289_v2 = vmul.f32 %v2399_v60, %v267_v40  ;;  %v225_v29 = vadd.f32 %v221_v61, %v198_v25  ;;  %v428_v35 = vmul.f32 %v233_v48, %v2300_v17  ;;  %v173_v6 = vsel %vm82_vm1, %v169_v59, %v167_v58  ;;  %296 = vst [vmem:[%s5365_s4 + $0x8] sm:$0xff] %v2552_v18 }
  0x26   :  { %v139_v0 = vsel %vm59_vm0, %v5470_v63, %v5469_v52  ;;  %v321_v30 = vmul.f32 %v137_v3, %v2416_v13  ;;  %v329_v39 = vmul.f32 %v171_v28, %v2423_v24  ;;  %v131_v19 = vadd.f32 %v127_v5, %v104_v49 }
  0x27   :  { %v161_v22 = vmul.f32 %v2434_v38, %v139_v0  ;;  %v195_v63 = vmul.f32 %v2463_v9, %v173_v6  ;;  %v2576_v61 = vmul.f32 %v232_v55, %v2434_v38  ;;  %v2579_v25 = vmul.f32 %v266_v62, %v2463_v9 }
  0x28   :  { %v259_v52 = vadd.f32 %v255_v45, %v225_v29  ;;  %v2582_v58 = vmul.f32 %v138_v50, %v2300_v17  ;;  %v2584_v59 = vadd.f32 %v435_v42, %v431_v47  ;;  %v2587_v10 = vmul.f32 %v172_v8, %v2311_v21  ;;  %v2604_v47 = vld [vmem:[%s5364_s0 + $0x40] sm:$0xff] }
  0x29   :  { %v165_v3 = vadd.f32 %v161_v22, %v131_v19  ;;  %v222_v49 = vmul.f32 %v2448_v57, %v2478_v32  ;;  %v432_v55 = vadd.f32 %v428_v35, %v424_v23  ;;  %v436_v5 = vmul.f32 %v267_v40, %v2311_v21  ;;  %v2609_v23 = vld [vmem:[%s5364_s0 + $0x50] sm:$0xff] }
  0x2a   :  { %5471 = vst [vmem:[#allocation11_spill] sm:$0xff] %v2584_v59  ;;  %v2591_v28 = vadd.f32 %v289_v2, %v259_v52  ;;  %v5473_v62 = vrot.slane %v2440_v46, 1  ;;  %v268_v8 = vsel %vm82_vm1, %v264_v54, %v262_v12  ;;  %v316_v2 = vmul.f32 %v2297_v16, %v2261_v4 }
  0x2b   :  { %v199_v45 = vadd.f32 %v195_v63, %v165_v3  ;;  %v2621_v12 = vmul.f32 %v267_v40, %v2347_v37  ;;  %v290_v54 = vmul.f32 %v2498_v44, %v268_v8  ;;  %v425_v29 = vmul.f32 %v2448_v57, %v2413_v11 }
  0x2c   :  { %5472 = vst [vmem:[#allocation12_spill] sm:$0xff] %v2591_v28  ;;  %v234_v50 = vsel %vm59_vm0, %v230_v36, %v5473_v62  ;;  %297 = vst [vmem:[%s5365_s4 + $0x10] sm:$0xff] %v2591_v28  ;;  %v2618_v36 = vmul.f32 %v233_v48, %v2331_v33  ;;  %v324_v4 = vadd.f32 %v2387_v53, %v316_v2  ;;  %v5382_v40 = vrot.slane %v2604_v47, 1 }
  0x2d   :  { %v256_v42 = vmul.f32 %v2484_v43, %v234_v50  ;;  %v226_v35 = vadd.f32 %v222_v49, %v199_v45  ;;  %v429_v22 = vmul.f32 %v234_v50, %v2416_v13  ;;  %v336_v19 = vmul.f32 %v2294_v15, %v2320_v27 }
  0x2e   :  { %v2632_v48 = vmul.f32 %v2552_v18, %v2552_v18  ;;  %v5381_v63 = vrot.slane %v2609_v23, 1  ;;  %v317_v52 = vmul.f32 %v2413_v11, %v2393_v56  ;;  %v2638_v3 = vadd.f32 %v436_v5, %v432_v55 }
  0x2f   :  { %v260_v49 = vadd.f32 %v256_v42, %v226_v35  ;;  %v2641_v62 = vmul.f32 %v139_v0, %v2416_v13  ;;  %v332_v53 = vadd.f32 %v2466_v26, %v324_v4  ;;  %v2645_v15 = vmul.f32 %v173_v6, %v2423_v24  ;;  %v2667_v42 = vld [vmem:[%s5364_s0 + $0x48] sm:$0xff]  ;;  %v2672_v35 = vld [vmem:[%s5364_s0 + $0x58] sm:$0xff] }
  0x30   :  { %5474 = vst [vmem:[#allocation13_spill] sm:$0xff] %v2638_v3  ;;  %v2648_v45 = vmul.f32 %v234_v50, %v2434_v38  ;;  %v2651_v2 = vmul.f32 %v268_v8, %v2463_v9  ;;  %v372_v56 = vsel %vm59_vm0, %v5382_v40, %v5381_v63  ;;  %v433_v55 = vadd.f32 %v429_v22, %v425_v29 }
  0x31   :  { %v2659_v0 = vadd.f32 %v290_v54, %v260_v49  ;;  %v437_v26 = vmul.f32 %v268_v8, %v2423_v24  ;;  %v340_v6 = vadd.f32 %v336_v19, %v332_v53  ;;  %v384_v5 = vrot.slane %v2604_v47, 2 }
  0x32   :  { %v386_v50 = vrot.slane %v2609_v23, 2  ;;  %v325_v54 = vadd.f32 %v321_v30, %v317_v52  ;;  %v337_v29 = vmul.f32 %v2440_v46, %v2429_v31  ;;  %v360_v22 = vmul.f32 %v2604_v47, %v2355_v41 }
  0x33   :  { %5475 = vst [vmem:[#allocation14_spill] sm:$0xff] %v2659_v0  ;;  %298 = vst [vmem:[%s5365_s4 + $0x18] sm:$0xff] %v2659_v0  ;;  %v348_v8 = vadd.f32 %v2522_v34, %v340_v6  ;;  %v528_v4 = vmul.f32 %v2604_v47, %v2297_v16  ;;  %v532_v19 = vmul.f32 %v372_v56, %v2300_v17  ;;  %v369_v53 = vrot.slane %v2667_v42, 1 }
  0x34   :  { %v2688_v30 = vmul.f32 %v2591_v28, %v2591_v28  ;;  %v376_v46 = vmul.f32 %v372_v56, %v2376_v51  ;;  %v388_v52 = vsel %vm82_vm1, %v384_v5, %v386_v50  ;;  %v333_v49 = vadd.f32 %v329_v39, %v325_v54 }
  0x35   :  { %v356_v34 = vadd.f32 %v2526_v14, %v348_v8  ;;  %v371_v6 = vrot.slane %v2672_v35, 1  ;;  %v318_v63 = vmul.f32 %v2297_v16, %v2272_v7  ;;  %v2698_v40 = vadd.f32 %v437_v26, %v433_v55 }
  0x36   :  { %5476 = vst [vmem:[#allocation15_spill] sm:$0xff] %v2688_v30  ;;  %v392_v3 = vmul.f32 %v388_v52, %v2399_v60  ;;  %v2702_v59 = vmul.f32 %v372_v56, %v2331_v33  ;;  %v341_v30 = vadd.f32 %v337_v29, %v333_v49  ;;  %v2705_v39 = vmul.f32 %v388_v52, %v2347_v37 }
  0x37   :  { %5477 = vst [vmem:[#allocation16_spill] sm:$0xff] %v2698_v40  ;;  %v364_v28 = vadd.f32 %v360_v22, %v356_v34  ;;  %v536_v14 = vadd.f32 %v532_v19, %v528_v4  ;;  %v373_v54 = vsel %vm59_vm0, %v369_v53, %v371_v6  ;;  %v540_v8 = vmul.f32 %v388_v52, %v2311_v21 }
  0x38   :  { %v349_v7 = vadd.f32 %v2576_v61, %v341_v30  ;;  %v361_v55 = vmul.f32 %v2667_v42, %v2478_v32  ;;  %v385_v26 = vrot.slane %v2667_v42, 2  ;;  %v387_v29 = vrot.slane %v2672_v35, 2 }
  0x39   :  { %v380_v56 = vadd.f32 %v376_v46, %v364_v28  ;;  %v326_v22 = vadd.f32 %v2582_v58, %v318_v63  ;;  %v338_v4 = vmul.f32 %v2308_v20, %v2320_v27  ;;  %v377_v49 = vmul.f32 %v373_v54, %v2484_v43 }
  0x3a   :  { %v357_v19 = vadd.f32 %v2579_v25, %v349_v7  ;;  %v529_v61 = vmul.f32 %v2667_v42, %v2413_v11  ;;  %v533_v30 = vmul.f32 %v373_v54, %v2416_v13  ;;  %v2725_v52 = vmul.f32 %v2659_v0, %v2659_v0  ;;  %v5480_v7 = vld [vmem:[#allocation6_spill] sm:$0xff] }
  0x3b   :  { %v396_v28 = vadd.f32 %v392_v3, %v380_v56  ;;  %v389_v58 = vsel %vm82_vm1, %v385_v26, %v387_v29  ;;  %v334_v63 = vadd.f32 %v2587_v10, %v326_v22  ;;  %v2730_v20 = vadd.f32 %v540_v8, %v536_v14  ;;  %v5481_v22 = vld [vmem:[#allocation4_spill] sm:$0xff] }
  0x3c   :  { %5478 = vst [vmem:[#allocation17_spill] sm:$0xff] %v2725_v52  ;;  %v365_v25 = vadd.f32 %v361_v55, %v357_v19  ;;  %v393_v46 = vmul.f32 %v389_v58, %v2498_v44  ;;  %v362_v34 = vmul.f32 %v2609_v23, %v2355_v41  ;;  %v2742_v56 = vmul.f32 %v373_v54, %v2434_v38 }
  0x3d   :  { %5479 = vst [vmem:[#allocation18_spill] sm:$0xff] %v2730_v20  ;;  %2013 = vst [vmem:[%s5365_s4 + $0x20] sm:$0xff] %v396_v28  ;;  %v2739_v40 = vadd.f32 %v396_v28, %v5480_v7  ;;  %v409_v3 = vmul.f32 %v396_v28, %v396_v28  ;;  %v342_v10 = vadd.f32 %v338_v4, %v334_v63  ;;  %v5482_v20 = vld [vmem:[#allocation9_spill] sm:$0xff]  ;;  %v5483_v28 = vrot.slane %v2604_v47, 1 }
  0x3e   :  { %v381_v14 = vadd.f32 %v377_v49, %v365_v25  ;;  %v537_v8 = vadd.f32 %v533_v30, %v529_v61  ;;  %v541_v55 = vmul.f32 %v389_v58, %v2423_v24  ;;  %v319_v19 = vmul.f32 %v2413_v11, %v5481_v22 }
  0x3f   :  { %v2748_v52 = vadd.f32 %v409_v3, %v5482_v20  ;;  %v2751_v0 = vmul.f32 %v389_v58, %v2463_v9  ;;  %v350_v7 = vadd.f32 %v2618_v36, %v342_v10  ;;  %v5484_v54 = vrot.slane %v2609_v23, 1 }
  0x40   :  { %v397_v49 = vadd.f32 %v393_v46, %v381_v14  ;;  %v390_v61 = vsel %vm82_vm1, %v386_v50, %v384_v5  ;;  %v327_v30 = vadd.f32 %v2641_v62, %v319_v19  ;;  %v339_v63 = vmul.f32 %v2448_v57, %v2429_v31 }
  0x41   :  { %v374_v4 = vsel %vm59_vm0, %v5484_v54, %v5483_v28  ;;  %v358_v58 = vadd.f32 %v2621_v12, %v350_v7  ;;  %v394_v20 = vmul.f32 %v390_v61, %v2399_v60  ;;  %v2777_v50 = vadd.f32 %v541_v55, %v537_v8 }
  0x42   :  { %v378_v36 = vmul.f32 %v374_v4, %v2376_v51  ;;  %v2769_v25 = vmul.f32 %v374_v4, %v2331_v33  ;;  %2014 = vst [vmem:[%s5365_s4 + $0x28] sm:$0xff] %v397_v49  ;;  %v2775_v5 = vadd.f32 %v397_v49, %v2552_v18  ;;  %v410_v62 = vmul.f32 %v397_v49, %v397_v49 }
  0x43   :  { %5485 = vst [vmem:[#allocation6_spill] sm:$0xff] %v2777_v50  ;;  %v335_v57 = vadd.f32 %v2645_v15, %v327_v30  ;;  %v366_v12 = vadd.f32 %v362_v34, %v358_v58  ;;  %v2781_v46 = vmul.f32 %v390_v61, %v2347_v37  ;;  %v530_v3 = vmul.f32 %v2609_v23, %v2297_v16  ;;  %v2796_v15 = vld [vmem:[%s5364_s0 + $0x60] sm:$0xff]  ;;  %v2801_v34 = vld [vmem:[%s5364_s0 + $0x70] sm:$0xff] }
  0x44   :  { %v2787_v10 = vsel %vm59_vm0, %v371_v6, %v369_v53  ;;  %v2790_v14 = vadd.f32 %v410_v62, %v2632_v48  ;;  %v534_v18 = vmul.f32 %v374_v4, %v2300_v17  ;;  %v442_v53 = vmul.f32 %v2604_v47, %v2320_v27  ;;  %v5486_v47 = vld [vmem:[#allocation10_spill] sm:$0xff] }
  0x45   :  { %v343_v8 = vadd.f32 %v339_v63, %v335_v57  ;;  %v382_v6 = vadd.f32 %v378_v36, %v366_v12  ;;  %v363_v48 = vmul.f32 %v2672_v35, %v2478_v32  ;;  %v379_v55 = vmul.f32 %v2787_v10, %v2484_v43  ;;  %v5487_v36 = vld [vmem:[#allocation12_spill] sm:$0xff] }
  0x46   :  { %v2811_v22 = vsel %vm82_vm1, %v387_v29, %v385_v26  ;;  %v531_v7 = vmul.f32 %v2672_v35, %v2413_v11  ;;  %v535_v28 = vmul.f32 %v2787_v10, %v2416_v13  ;;  %v446_v54 = vadd.f32 %v442_v53, %v5486_v47  ;;  %v2848_v53 = vld [vmem:[%s5364_s0 + $0x68] sm:$0xff] }
  0x47   :  { %v351_v19 = vadd.f32 %v2648_v45, %v343_v8  ;;  %v398_v4 = vadd.f32 %v394_v20, %v382_v6  ;;  %v466_v49 = vmul.f32 %v2796_v15, %v2355_v41  ;;  %v5386_v30 = vrot.slane %v2796_v15, 1  ;;  %v2853_v6 = vld [vmem:[%s5364_s0 + $0x78] sm:$0xff] }
  0x48   :  { %v5385_v63 = vrot.slane %v2801_v34, 1  ;;  %v454_v45 = vadd.f32 %v2702_v59, %v446_v54  ;;  %v490_v29 = vrot.slane %v2796_v15, 2  ;;  %v443_v58 = vmul.f32 %v2667_v42, %v2429_v31 }
  0x49   :  { %v359_v26 = vadd.f32 %v2651_v2, %v351_v19  ;;  %2015 = vst [vmem:[%s5365_s4 + $0x30] sm:$0xff] %v398_v4  ;;  %v2832_v20 = vadd.f32 %v398_v4, %v5487_v36  ;;  %v411_v62 = vmul.f32 %v398_v4, %v398_v4  ;;  %v5391_v2 = vrot.slane %v2801_v34, 2  ;;  %v5488_v19 = vld [vmem:[#allocation15_spill] sm:$0xff] }
  0x4a   :  { %v478_v59 = vsel %vm59_vm0, %v5386_v30, %v5385_v63  ;;  %v395_v42 = vmul.f32 %v2811_v22, %v2498_v44  ;;  %v462_v12 = vadd.f32 %v2705_v39, %v454_v45  ;;  %v542_v54 = vmul.f32 %v390_v61, %v2311_v21  ;;  %v5489_v36 = vld [vmem:[#allocation11_spill] sm:$0xff] }
  0x4b   :  { %v367_v57 = vadd.f32 %v363_v48, %v359_v26  ;;  %v482_v8 = vmul.f32 %v478_v59, %v2376_v51  ;;  %v2856_v47 = vadd.f32 %v411_v62, %v5488_v19  ;;  %v538_v48 = vadd.f32 %v534_v18, %v530_v3 }
  0x4c   :  { %v494_v39 = vsel %vm82_vm1, %v490_v29, %v5391_v2  ;;  %v470_v26 = vadd.f32 %v466_v49, %v462_v12  ;;  %v447_v63 = vadd.f32 %v443_v58, %v5489_v36  ;;  %v539_v30 = vadd.f32 %v535_v28, %v531_v7  ;;  %v5491_v36 = vld [vmem:[#allocation17_spill] sm:$0xff] }
  0x4d   :  { %v383_v4 = vadd.f32 %v379_v55, %v367_v57  ;;  %v498_v45 = vmul.f32 %v494_v39, %v2399_v60  ;;  %v543_v62 = vmul.f32 %v2811_v22, %v2423_v24  ;;  %v5390_v3 = vrot.slane %v2848_v53, 1 }
  0x4e   :  { %v5387_v61 = vrot.slane %v2853_v6, 1  ;;  %v486_v19 = vadd.f32 %v482_v8, %v470_v26  ;;  %v455_v50 = vadd.f32 %v2742_v56, %v447_v63  ;;  %v467_v55 = vmul.f32 %v2848_v53, %v2478_v32  ;;  %v5490_v56 = vld [vmem:[#allocation14_spill] sm:$0xff] }
  0x4f   :  { %v399_v18 = vadd.f32 %v395_v42, %v383_v4  ;;  %v5389_v28 = vrot.slane %v2848_v53, 2  ;;  %v5388_v49 = vrot.slane %v2853_v6, 2  ;;  %v444_v58 = vmul.f32 %v2609_v23, %v2320_v27 }
  0x50   :  { %v479_v7 = vsel %vm59_vm0, %v5390_v3, %v5387_v61  ;;  %v502_v42 = vadd.f32 %v498_v45, %v486_v19  ;;  %v463_v12 = vadd.f32 %v2751_v0, %v455_v50  ;;  %v634_v8 = vmul.f32 %v2796_v15, %v2297_v16 }
  0x51   :  { %2016 = vst [vmem:[%s5365_s4 + $0x38] sm:$0xff] %v399_v18  ;;  %v2888_v63 = vadd.f32 %v399_v18, %v5490_v56  ;;  %v412_v57 = vmul.f32 %v399_v18, %v399_v18  ;;  %v638_v4 = vmul.f32 %v478_v59, %v2300_v17  ;;  %v483_v26 = vmul.f32 %v479_v7, %v2484_v43 }
  0x52   :  { %v495_v23 = vsel %vm82_vm1, %v5389_v28, %v5388_v49  ;;  %2021 = vst [vmem:[%s5365_s4 + $0x40] sm:$0xff] %v502_v42  ;;  %v2908_v0 = vadd.f32 %v502_v42, %v2739_v40  ;;  %v515_v50 = vmul.f32 %v502_v42, %v502_v42  ;;  %v471_v45 = vadd.f32 %v467_v55, %v463_v12  ;;  %v5492_v40 = vld [vmem:[#allocation13_spill] sm:$0xff] }
  0x53   :  { %v2902_v56 = vadd.f32 %v412_v57, %v5491_v36  ;;  %v2910_v18 = vadd.f32 %v542_v54, %v538_v48  ;;  %v499_v19 = vmul.f32 %v495_v23, %v2498_v44  ;;  %v635_v61 = vmul.f32 %v2848_v53, %v2413_v11 }
  0x54   :  { %v639_v49 = vmul.f32 %v479_v7, %v2416_v13  ;;  %v453_v57 = vmul.f32 %v2787_v10, %v2434_v38  ;;  %v2919_v36 = vadd.f32 %v515_v50, %v2748_v52  ;;  %v487_v28 = vadd.f32 %v483_v26, %v471_v45 }
  0x55   :  { %v448_v3 = vadd.f32 %v444_v58, %v5492_v40  ;;  %v461_v48 = vmul.f32 %v2811_v22, %v2463_v9  ;;  %v2924_v54 = vadd.f32 %v543_v62, %v539_v30  ;;  %v642_v55 = vadd.f32 %v638_v4, %v634_v8 }
  0x56   :  { %v646_v42 = vmul.f32 %v494_v39, %v2311_v21  ;;  %v503_v12 = vadd.f32 %v499_v19, %v487_v28  ;;  %v468_v10 = vmul.f32 %v2801_v34, %v2355_v41  ;;  %v5493_v52 = vrot.slane %v2796_v15, 1 }
  0x57   :  { %v456_v2 = vadd.f32 %v2769_v25, %v448_v3  ;;  %v5494_v26 = vrot.slane %v2801_v34, 1  ;;  %v556_v22 = vmul.f32 %v478_v59, %v2331_v33  ;;  %v643_v30 = vadd.f32 %v639_v49, %v635_v61 }
  0x58   :  { %v647_v62 = vmul.f32 %v495_v23, %v2423_v24  ;;  %2022 = vst [vmem:[%s5365_s4 + $0x48] sm:$0xff] %v503_v12  ;;  %v2943_v25 = vadd.f32 %v503_v12, %v2775_v5  ;;  %v516_v3 = vmul.f32 %v503_v12, %v503_v12  ;;  %v445_v4 = vmul.f32 %v2672_v35, %v2429_v31  ;;  %v5496_v35 = vld [vmem:[#allocation16_spill] sm:$0xff] }
  0x59   :  { %v480_v58 = vsel %vm59_vm0, %v5494_v26, %v5493_v52  ;;  %v464_v28 = vadd.f32 %v2781_v46, %v456_v2  ;;  %v564_v59 = vmul.f32 %v494_v39, %v2347_v37  ;;  %v2949_v61 = vadd.f32 %v646_v42, %v642_v55 }
  0x5a   :  { %v484_v8 = vmul.f32 %v480_v58, %v2376_v51  ;;  %v557_v49 = vmul.f32 %v479_v7, %v2434_v38  ;;  %v5495_v50 = vrot.slane %v2801_v34, 2  ;;  %v2959_v45 = vadd.f32 %v516_v3, %v2790_v14 }
  0x5b   :  { %v472_v46 = vadd.f32 %v468_v10, %v464_v28  ;;  %v449_v19 = vadd.f32 %v445_v4, %v5496_v35  ;;  %v565_v39 = vmul.f32 %v495_v23, %v2463_v9  ;;  %v2964_v40 = vadd.f32 %v647_v62, %v643_v30  ;;  %v2977_v10 = vld [vmem:[%s5364_s0 + $0x80] sm:$0xff] }
  0x5c   :  { %v496_v5 = vsel %vm82_vm1, %v5495_v50, %v490_v29  ;;  %v636_v7 = vmul.f32 %v2801_v34, %v2297_v16  ;;  %v640_v55 = vmul.f32 %v480_v58, %v2300_v17  ;;  %v2970_v29 = vmul.f32 %v480_v58, %v2331_v33  ;;  %v2994_v58 = vld [vmem:[%s5364_s0 + $0x90] sm:$0xff] }
  0x5d   :  { %v500_v2 = vmul.f32 %v496_v5, %v2399_v60  ;;  %5497 = vst [vmem:[#allocation4_spill] sm:$0xff] %v2964_v40  ;;  %v488_v42 = vadd.f32 %v484_v8, %v472_v46  ;;  %v457_v14 = vadd.f32 %v453_v57, %v449_v19  ;;  %v469_v12 = vmul.f32 %v2853_v6, %v2478_v32  ;;  %v5502_v19 = vld [vmem:[#allocation18_spill] sm:$0xff] }
  0x5e   :  { %v2980_v23 = vmul.f32 %v496_v5, %v2347_v37  ;;  %v648_v52 = vmul.f32 %v496_v5, %v2311_v21  ;;  %v5498_v26 = vrot.slane %v2848_v53, 1  ;;  %v5499_v30 = vrot.slane %v2853_v6, 1 }
  0x5f   :  { %v548_v62 = vmul.f32 %v2796_v15, %v2320_v27  ;;  %v504_v8 = vadd.f32 %v500_v2, %v488_v42  ;;  %v465_v3 = vadd.f32 %v461_v48, %v457_v14  ;;  %v5500_v4 = vrot.slane %v2848_v53, 2 }
  0x60   :  { %v2989_v57 = vsel %vm59_vm0, %v5499_v30, %v5498_v26  ;;  %v5501_v50 = vrot.slane %v2853_v6, 2  ;;  %v644_v46 = vadd.f32 %v640_v55, %v636_v7  ;;  %v5393_v30 = vrot.slane %v2977_v10, 1 }
  0x61   :  { %v485_v28 = vmul.f32 %v2989_v57, %v2484_v43  ;;  %v552_v26 = vadd.f32 %v548_v62, %v5502_v19  ;;  %2023 = vst [vmem:[%s5365_s4 + $0x50] sm:$0xff] %v504_v8  ;;  %v3013_v15 = vadd.f32 %v504_v8, %v2832_v20  ;;  %v517_v48 = vmul.f32 %v504_v8, %v504_v8 }
  0x62   :  { %v497_v5 = vsel %vm82_vm1, %v5501_v50, %v5500_v4  ;;  %v473_v2 = vadd.f32 %v469_v12, %v465_v3  ;;  %v5392_v42 = vrot.slane %v2994_v58, 1  ;;  %v572_v7 = vmul.f32 %v2977_v10, %v2355_v41  ;;  %v3034_v12 = vld [vmem:[%s5364_s0 + $0x88] sm:$0xff] }
  0x63   :  { %v501_v35 = vmul.f32 %v497_v5, %v2498_v44  ;;  %v560_v14 = vadd.f32 %v556_v22, %v552_v26  ;;  %v5395_v55 = vrot.slane %v2977_v10, 2  ;;  %v549_v62 = vmul.f32 %v2848_v53, %v2429_v31  ;;  %v3039_v53 = vld [vmem:[%s5364_s0 + $0x98] sm:$0xff] }
  0x64   :  { %v3022_v4 = vadd.f32 %v517_v48, %v2856_v47  ;;  %v489_v50 = vadd.f32 %v485_v28, %v473_v2  ;;  %v584_v20 = vsel %vm59_vm0, %v5393_v30, %v5392_v42  ;;  %v5394_v22 = vrot.slane %v2994_v58, 2  ;;  %v5503_v2 = vld [vmem:[#allocation6_spill] sm:$0xff] }
  0x65   :  { %v637_v47 = vmul.f32 %v2853_v6, %v2413_v11  ;;  %v641_v8 = vmul.f32 %v2989_v57, %v2416_v13  ;;  %v568_v3 = vadd.f32 %v564_v59, %v560_v14  ;;  %v588_v28 = vmul.f32 %v584_v20, %v2376_v51 }
  0x66   :  { %v505_v19 = vadd.f32 %v501_v35, %v489_v50  ;;  %v600_v26 = vsel %vm82_vm1, %v5395_v55, %v5394_v22  ;;  %v740_v48 = vmul.f32 %v2977_v10, %v2297_v16  ;;  %v553_v42 = vadd.f32 %v549_v62, %v5503_v2 }
  0x67   :  { %v576_v30 = vadd.f32 %v572_v7, %v568_v3  ;;  %v604_v40 = vmul.f32 %v600_v26, %v2399_v60  ;;  %v5397_v59 = vrot.slane %v3034_v12, 1  ;;  %v5396_v14 = vrot.slane %v3039_v53, 1 }
  0x68   :  { %2024 = vst [vmem:[%s5365_s4 + $0x58] sm:$0xff] %v505_v19  ;;  %v3062_v35 = vadd.f32 %v505_v19, %v2888_v63  ;;  %v518_v50 = vmul.f32 %v505_v19, %v505_v19  ;;  %v561_v22 = vadd.f32 %v557_v49, %v553_v42  ;;  %v573_v55 = vmul.f32 %v3034_v12, %v2478_v32 }
  0x69   :  { %v592_v62 = vadd.f32 %v588_v28, %v576_v30  ;;  %v585_v7 = vsel %vm59_vm0, %v5397_v59, %v5396_v14  ;;  %v5399_v3 = vrot.slane %v3034_v12, 2  ;;  %v5398_v2 = vrot.slane %v3039_v53, 2 }
  0x6a   :  { %5504 = vst [vmem:[#allocation9_spill] sm:$0xff] %v3062_v35  ;;  %v3075_v63 = vadd.f32 %v518_v50, %v2902_v56  ;;  %v744_v49 = vmul.f32 %v584_v20, %v2300_v17  ;;  %v569_v42 = vadd.f32 %v565_v39, %v561_v22  ;;  %v589_v19 = vmul.f32 %v585_v7, %v2484_v43 }
  0x6b   :  { %v645_v30 = vadd.f32 %v641_v8, %v637_v47  ;;  %v649_v28 = vmul.f32 %v497_v5, %v2423_v24  ;;  %v608_v35 = vadd.f32 %v604_v40, %v592_v62  ;;  %v601_v14 = vsel %vm82_vm1, %v5399_v3, %v5398_v2 }
  0x6c   :  { %v3086_v59 = vadd.f32 %v648_v52, %v644_v46  ;;  %v577_v56 = vadd.f32 %v573_v55, %v569_v42  ;;  %v605_v50 = vmul.f32 %v601_v14, %v2498_v44  ;;  %v741_v39 = vmul.f32 %v3034_v12, %v2413_v11 }
  0x6d   :  { %2029 = vst [vmem:[%s5365_s4 + $0x60] sm:$0xff] %v608_v35  ;;  %v3095_v40 = vadd.f32 %v608_v35, %v2908_v0  ;;  %v621_v22 = vmul.f32 %v608_v35, %v608_v35  ;;  %v745_v47 = vmul.f32 %v585_v7, %v2416_v13  ;;  %v550_v52 = vmul.f32 %v2801_v34, %v2320_v27 }
  0x6e   :  { %5505 = vst [vmem:[#allocation10_spill] sm:$0xff] %v3086_v59  ;;  %v559_v46 = vmul.f32 %v2989_v57, %v2434_v38  ;;  %v748_v55 = vadd.f32 %v744_v49, %v740_v48  ;;  %v752_v8 = vmul.f32 %v600_v26, %v2311_v21  ;;  %v593_v62 = vadd.f32 %v589_v19, %v577_v56 }
  0x6f   :  { %v567_v42 = vmul.f32 %v497_v5, %v2463_v9  ;;  %v3104_v2 = vadd.f32 %v649_v28, %v645_v30  ;;  %v3107_v0 = vadd.f32 %v621_v22, %v2919_v36  ;;  %v554_v35 = vadd.f32 %v550_v52, %v2910_v18 }
  0x70   :  { %v662_v3 = vmul.f32 %v584_v20, %v2331_v33  ;;  %v670_v34 = vmul.f32 %v600_v26, %v2347_v37  ;;  %v609_v59 = vadd.f32 %v605_v50, %v593_v62  ;;  %v753_v57 = vmul.f32 %v601_v14, %v2423_v24 }
  0x71   :  { %v749_v48 = vadd.f32 %v745_v47, %v741_v39  ;;  %v562_v49 = vadd.f32 %v2970_v29, %v554_v35  ;;  %v574_v5 = vmul.f32 %v2994_v58, %v2355_v41  ;;  %v5506_v19 = vrot.slane %v2977_v10, 1 }
  0x72   :  { %v5507_v36 = vrot.slane %v2994_v58, 1  ;;  %v3122_v30 = vadd.f32 %v752_v8, %v748_v55  ;;  %2030 = vst [vmem:[%s5365_s4 + $0x68] sm:$0xff] %v609_v59  ;;  %v3128_v20 = vadd.f32 %v609_v59, %v2943_v25  ;;  %v622_v29 = vmul.f32 %v609_v59, %v609_v59 }
  0x73   :  { %v551_v26 = vmul.f32 %v2853_v6, %v2429_v31  ;;  %v663_v28 = vmul.f32 %v585_v7, %v2434_v38  ;;  %v570_v56 = vadd.f32 %v2980_v23, %v562_v49  ;;  %v5508_v39 = vrot.slane %v2977_v10, 2 }
  0x74   :  { %v586_v18 = vsel %vm59_vm0, %v5507_v36, %v5506_v19  ;;  %v5509_v22 = vrot.slane %v2994_v58, 2  ;;  %v3142_v25 = vadd.f32 %v622_v29, %v2959_v45  ;;  %v742_v59 = vmul.f32 %v2994_v58, %v2297_v16 }
  0x75   :  { %v590_v50 = vmul.f32 %v586_v18, %v2376_v51  ;;  %v746_v6 = vmul.f32 %v586_v18, %v2300_v17  ;;  %v555_v7 = vadd.f32 %v551_v26, %v2924_v54  ;;  %v671_v23 = vmul.f32 %v601_v14, %v2463_v9 }
  0x76   :  { %v602_v47 = vsel %vm82_vm1, %v5509_v22, %v5508_v39  ;;  %v3149_v52 = vadd.f32 %v753_v57, %v749_v48  ;;  %v578_v55 = vadd.f32 %v574_v5, %v570_v56  ;;  %v3153_v62 = vmul.f32 %v586_v18, %v2331_v33  ;;  %v3172_v5 = vld [vmem:[%s5364_s0 + $0xa0] sm:$0xff] }
  0x77   :  { %v606_v8 = vmul.f32 %v602_v47, %v2399_v60  ;;  %v3156_v45 = vmul.f32 %v602_v47, %v2347_v37  ;;  %v563_v35 = vadd.f32 %v559_v46, %v555_v7  ;;  %v575_v49 = vmul.f32 %v3039_v53, %v2478_v32  ;;  %v3177_v46 = vld [vmem:[%s5364_s0 + $0xb0] sm:$0xff] }
  0x78   :  { %v594_v19 = vadd.f32 %v590_v50, %v578_v55  ;;  %v754_v54 = vmul.f32 %v602_v47, %v2311_v21  ;;  %v5510_v14 = vrot.slane %v3034_v12, 1  ;;  %v5511_v57 = vrot.slane %v3039_v53, 1 }
  0x79   :  { %v654_v36 = vmul.f32 %v2977_v10, %v2320_v27  ;;  %v750_v18 = vadd.f32 %v746_v6, %v742_v59  ;;  %v571_v29 = vadd.f32 %v567_v42, %v563_v35  ;;  %v5512_v56 = vrot.slane %v3034_v12, 2 }
  0x7a   :  { %v3167_v48 = vsel %vm59_vm0, %v5511_v57, %v5510_v14  ;;  %v5513_v50 = vrot.slane %v3039_v53, 2  ;;  %v610_v22 = vadd.f32 %v606_v8, %v594_v19  ;;  %v743_v7 = vmul.f32 %v3039_v53, %v2413_v11 }
  0x7b   :  { %v591_v26 = vmul.f32 %v3167_v48, %v2484_v43  ;;  %v658_v10 = vadd.f32 %v654_v36, %v2949_v61  ;;  %v579_v59 = vadd.f32 %v575_v49, %v571_v29  ;;  %v5403_v42 = vrot.slane %v3172_v5, 1 }
  0x7c   :  { %v603_v39 = vsel %vm82_vm1, %v5513_v50, %v5512_v56  ;;  %v5400_v6 = vrot.slane %v3177_v46, 1  ;;  %v655_v55 = vmul.f32 %v3034_v12, %v2429_v31  ;;  %2031 = vst [vmem:[%s5365_s4 + $0x70] sm:$0xff] %v610_v22  ;;  %v3201_v8 = vadd.f32 %v610_v22, %v3013_v15  ;;  %v3216_v15 = vld [vmem:[%s5364_s0 + $0xa8] sm:$0xff] }
  0x7d   :  { %v607_v47 = vmul.f32 %v603_v39, %v2498_v44  ;;  %v623_v35 = vmul.f32 %v610_v22, %v610_v22  ;;  %v666_v19 = vadd.f32 %v662_v3, %v658_v10  ;;  %v678_v61 = vmul.f32 %v3172_v5, %v2355_v41  ;;  %v3221_v3 = vld [vmem:[%s5364_s0 + $0xb8] sm:$0xff] }
  0x7e   :  { %v595_v49 = vadd.f32 %v591_v26, %v579_v59  ;;  %v690_v12 = vsel %vm59_vm0, %v5403_v42, %v5400_v6  ;;  %v5402_v14 = vrot.slane %v3172_v5, 2  ;;  %v5401_v57 = vrot.slane %v3177_v46, 2  ;;  %v5514_v59 = vld [vmem:[#allocation4_spill] sm:$0xff] }
  0x7f   :  { %v3224_v36 = vadd.f32 %v623_v35, %v3022_v4  ;;  %v747_v29 = vmul.f32 %v3167_v48, %v2416_v13  ;;  %v674_v26 = vadd.f32 %v670_v34, %v666_v19  ;;  %v694_v56 = vmul.f32 %v690_v12, %v2376_v51 }
  0x80   :  { %v611_v50 = vadd.f32 %v607_v47, %v595_v49  ;;  %v706_v22 = vsel %vm82_vm1, %v5402_v14, %v5401_v57  ;;  %v846_v10 = vmul.f32 %v3172_v5, %v2297_v16  ;;  %v659_v4 = vadd.f32 %v655_v55, %v5514_v59  ;;  %v5515_v47 = vld [vmem:[#allocation9_spill] sm:$0xff] }
  0x81   :  { %v682_v35 = vadd.f32 %v678_v61, %v674_v26  ;;  %v710_v6 = vmul.f32 %v706_v22, %v2399_v60  ;;  %v5405_v34 = vrot.slane %v3216_v15, 1  ;;  %v5404_v19 = vrot.slane %v3221_v3, 1 }
  0x82   :  { %2032 = vst [vmem:[%s5365_s4 + $0x78] sm:$0xff] %v611_v50  ;;  %v3245_v49 = vadd.f32 %v611_v50, %v5515_v47  ;;  %v624_v57 = vmul.f32 %v611_v50, %v611_v50  ;;  %v667_v14 = vadd.f32 %v663_v28, %v659_v4  ;;  %v679_v42 = vmul.f32 %v3216_v15, %v2478_v32 }
  0x83   :  { %v698_v55 = vadd.f32 %v694_v56, %v682_v35  ;;  %v691_v61 = vsel %vm59_vm0, %v5405_v34, %v5404_v19  ;;  %v5407_v26 = vrot.slane %v3216_v15, 2  ;;  %v5406_v59 = vrot.slane %v3221_v3, 2 }
  0x84   :  { %5516 = vst [vmem:[#allocation12_spill] sm:$0xff] %v3245_v49  ;;  %v3258_v47 = vadd.f32 %v624_v57, %v3075_v63  ;;  %v850_v28 = vmul.f32 %v690_v12, %v2300_v17  ;;  %v675_v50 = vadd.f32 %v671_v23, %v667_v14  ;;  %v695_v4 = vmul.f32 %v691_v61, %v2484_v43 }
  0x85   :  { %v751_v56 = vadd.f32 %v747_v29, %v743_v7  ;;  %v755_v35 = vmul.f32 %v603_v39, %v2423_v24  ;;  %v714_v49 = vadd.f32 %v710_v6, %v698_v55  ;;  %v707_v19 = vsel %vm82_vm1, %v5407_v26, %v5406_v59 }
  0x86   :  { %v3269_v34 = vadd.f32 %v754_v54, %v750_v18  ;;  %v683_v63 = vadd.f32 %v679_v42, %v675_v50  ;;  %v711_v57 = vmul.f32 %v707_v19, %v2498_v44  ;;  %v847_v23 = vmul.f32 %v3216_v15, %v2413_v11 }
  0x87   :  { %2037 = vst [vmem:[%s5365_s4 + $0x80] sm:$0xff] %v714_v49  ;;  %v3278_v7 = vadd.f32 %v714_v49, %v3095_v40  ;;  %v727_v6 = vmul.f32 %v714_v49, %v714_v49  ;;  %v851_v14 = vmul.f32 %v691_v61, %v2416_v13  ;;  %v656_v54 = vmul.f32 %v2994_v58, %v2320_v27  ;;  %v5519_v49 = vld [vmem:[#allocation10_spill] sm:$0xff] }
  0x88   :  { %5517 = vst [vmem:[#allocation15_spill] sm:$0xff] %v3269_v34  ;;  %v665_v18 = vmul.f32 %v3167_v48, %v2434_v38  ;;  %v854_v42 = vadd.f32 %v850_v28, %v846_v10  ;;  %v858_v29 = vmul.f32 %v706_v22, %v2311_v21  ;;  %v699_v55 = vadd.f32 %v695_v4, %v683_v63 }
  0x89   :  { %5518 = vst [vmem:[#allocation11_spill] sm:$0xff] %v3278_v7  ;;  %v673_v50 = vmul.f32 %v603_v39, %v2463_v9  ;;  %v3287_v59 = vadd.f32 %v755_v35, %v751_v56  ;;  %v3290_v40 = vadd.f32 %v727_v6, %v3107_v0  ;;  %v660_v26 = vadd.f32 %v656_v54, %v5519_v49 }
  0x8a   :  { %v768_v34 = vmul.f32 %v690_v12, %v2331_v33  ;;  %v776_v58 = vmul.f32 %v706_v22, %v2347_v37  ;;  %v715_v7 = vadd.f32 %v711_v57, %v699_v55  ;;  %v859_v48 = vmul.f32 %v707_v19, %v2423_v24 }
  0x8b   :  { %v855_v10 = vadd.f32 %v851_v14, %v847_v23  ;;  %v668_v28 = vadd.f32 %v3153_v62, %v660_v26  ;;  %v680_v39 = vmul.f32 %v3177_v46, %v2355_v41  ;;  %v5520_v4 = vrot.slane %v3172_v5, 1 }
  0x8c   :  { %v5521_v0 = vrot.slane %v3177_v46, 1  ;;  %v3305_v35 = vadd.f32 %v858_v29, %v854_v42  ;;  %2038 = vst [vmem:[%s5365_s4 + $0x88] sm:$0xff] %v715_v7  ;;  %v3311_v12 = vadd.f32 %v715_v7, %v3128_v20  ;;  %v728_v62 = vmul.f32 %v715_v7, %v715_v7 }
  0x8d   :  { %v657_v22 = vmul.f32 %v3039_v53, %v2429_v31  ;;  %v769_v26 = vmul.f32 %v691_v61, %v2434_v38  ;;  %v676_v63 = vadd.f32 %v3156_v45, %v668_v28  ;;  %v5522_v23 = vrot.slane %v3172_v5, 2 }
  0x8e   :  { %v692_v56 = vsel %vm59_vm0, %v5521_v0, %v5520_v4  ;;  %v5523_v6 = vrot.slane %v3177_v46, 2  ;;  %v3325_v20 = vadd.f32 %v728_v62, %v3142_v25  ;;  %v848_v7 = vmul.f32 %v3177_v46, %v2297_v16 }
  0x8f   :  { %v696_v57 = vmul.f32 %v692_v56, %v2376_v51  ;;  %v852_v53 = vmul.f32 %v692_v56, %v2300_v17  ;;  %v661_v61 = vadd.f32 %v657_v22, %v3104_v2  ;;  %v777_v45 = vmul.f32 %v707_v19, %v2463_v9 }
  0x90   :  { %v708_v14 = vsel %vm82_vm1, %v5523_v6, %v5522_v23  ;;  %v3332_v54 = vadd.f32 %v859_v48, %v855_v10  ;;  %v684_v42 = vadd.f32 %v680_v39, %v676_v63  ;;  %v3336_v55 = vmul.f32 %v692_v56, %v2331_v33  ;;  %v3355_v39 = vld [vmem:[%s5364_s0 + $0xc0] sm:$0xff] }
  0x91   :  { %v712_v29 = vmul.f32 %v708_v14, %v2399_v60  ;;  %v3339_v25 = vmul.f32 %v708_v14, %v2347_v37  ;;  %v669_v49 = vadd.f32 %v665_v18, %v661_v61  ;;  %v681_v28 = vmul.f32 %v3221_v3, %v2478_v32  ;;  %v3360_v18 = vld [vmem:[%s5364_s0 + $0xd0] sm:$0xff] }
  0x92   :  { %v700_v4 = vadd.f32 %v696_v57, %v684_v42  ;;  %v860_v2 = vmul.f32 %v708_v14, %v2311_v21  ;;  %v5524_v19 = vrot.slane %v3216_v15, 1  ;;  %v5525_v48 = vrot.slane %v3221_v3, 1 }
  0x93   :  { %v760_v0 = vmul.f32 %v3172_v5, %v2320_v27  ;;  %v856_v56 = vadd.f32 %v852_v53, %v848_v7  ;;  %v677_v62 = vadd.f32 %v673_v50, %v669_v49  ;;  %v5526_v63 = vrot.slane %v3216_v15, 2 }
  0x94   :  { %v3350_v10 = vsel %vm59_vm0, %v5525_v48, %v5524_v19  ;;  %v5527_v57 = vrot.slane %v3221_v3, 2  ;;  %v716_v6 = vadd.f32 %v712_v29, %v700_v4  ;;  %v849_v61 = vmul.f32 %v3221_v3, %v2413_v11 }
  0x95   :  { %v697_v22 = vmul.f32 %v3350_v10, %v2484_v43  ;;  %v764_v5 = vadd.f32 %v760_v0, %v3122_v30  ;;  %v685_v7 = vadd.f32 %v681_v28, %v677_v62  ;;  %v5411_v50 = vrot.slane %v3355_v39, 1 }
  0x96   :  { %v709_v23 = vsel %vm82_vm1, %v5527_v57, %v5526_v63  ;;  %v5410_v53 = vrot.slane %v3360_v18, 1  ;;  %v761_v42 = vmul.f32 %v3216_v15, %v2429_v31  ;;  %2039 = vst [vmem:[%s5365_s4 + $0x90] sm:$0xff] %v716_v6  ;;  %v3384_v29 = vadd.f32 %v716_v6, %v3201_v8  ;;  %v3399_v8 = vld [vmem:[%s5364_s0 + $0xc8] sm:$0xff] }
  0x97   :  { %v713_v14 = vmul.f32 %v709_v23, %v2498_v44  ;;  %v729_v49 = vmul.f32 %v716_v6, %v716_v6  ;;  %v772_v4 = vadd.f32 %v768_v34, %v764_v5  ;;  %v784_v30 = vmul.f32 %v3355_v39, %v2355_v41  ;;  %v3404_v34 = vld [vmem:[%s5364_s0 + $0xd8] sm:$0xff] }
  0x98   :  { %v701_v28 = vadd.f32 %v697_v22, %v685_v7  ;;  %v796_v15 = vsel %vm59_vm0, %v5411_v50, %v5410_v53  ;;  %v5409_v19 = vrot.slane %v3355_v39, 2  ;;  %v5408_v48 = vrot.slane %v3360_v18, 2 }
  0x99   :  { %v3407_v0 = vadd.f32 %v729_v49, %v3224_v36  ;;  %v853_v62 = vmul.f32 %v3350_v10, %v2416_v13  ;;  %v780_v22 = vadd.f32 %v776_v58, %v772_v4  ;;  %v800_v63 = vmul.f32 %v796_v15, %v2376_v51 }
  0x9a   :  { %v717_v57 = vadd.f32 %v713_v14, %v701_v28  ;;  %v812_v6 = vsel %vm82_vm1, %v5409_v19, %v5408_v48  ;;  %v952_v5 = vmul.f32 %v3355_v39, %v2297_v16  ;;  %v765_v36 = vadd.f32 %v761_v42, %v3149_v52  ;;  %v5528_v14 = vld [vmem:[#allocation12_spill] sm:$0xff] }
  0x9b   :  { %v788_v7 = vadd.f32 %v784_v30, %v780_v22  ;;  %v816_v49 = vmul.f32 %v812_v6, %v2399_v60  ;;  %v5413_v58 = vrot.slane %v3399_v8, 1  ;;  %v5412_v4 = vrot.slane %v3404_v34, 1 }
  0x9c   :  { %2040 = vst [vmem:[%s5365_s4 + $0x98] sm:$0xff] %v717_v57  ;;  %v3428_v28 = vadd.f32 %v717_v57, %v5528_v14  ;;  %v730_v48 = vmul.f32 %v717_v57, %v717_v57  ;;  %v773_v19 = vadd.f32 %v769_v26, %v765_v36  ;;  %v785_v53 = vmul.f32 %v3399_v8, %v2478_v32 }
  0x9d   :  { %v804_v52 = vadd.f32 %v800_v63, %v788_v7  ;;  %v797_v42 = vsel %vm59_vm0, %v5413_v58, %v5412_v4  ;;  %v5415_v30 = vrot.slane %v3399_v8, 2  ;;  %v5414_v22 = vrot.slane %v3404_v34, 2 }
  0x9e   :  { %v3441_v14 = vadd.f32 %v730_v48, %v3258_v47  ;;  %v956_v26 = vmul.f32 %v796_v15, %v2300_v17  ;;  %v781_v57 = vadd.f32 %v777_v45, %v773_v19  ;;  %v801_v36 = vmul.f32 %v797_v42, %v2484_v43 }
  0x9f   :  { %v857_v63 = vadd.f32 %v853_v62, %v849_v61  ;;  %v861_v7 = vmul.f32 %v709_v23, %v2423_v24  ;;  %v820_v50 = vadd.f32 %v816_v49, %v804_v52  ;;  %v813_v4 = vsel %vm82_vm1, %v5415_v30, %v5414_v22  ;;  %v5531_v61 = vld [vmem:[#allocation11_spill] sm:$0xff] }
  0xa0   :  { %5529 = vst [vmem:[#allocation14_spill] sm:$0xff] %v3441_v14  ;;  %v3452_v58 = vadd.f32 %v860_v2, %v856_v56  ;;  %v789_v47 = vadd.f32 %v785_v53, %v781_v57  ;;  %v817_v48 = vmul.f32 %v813_v4, %v2498_v44  ;;  %v953_v45 = vmul.f32 %v3399_v8, %v2413_v11 }
  0xa1   :  { %2045 = vst [vmem:[%s5365_s4 + $0xa0] sm:$0xff] %v820_v50  ;;  %v3461_v19 = vadd.f32 %v820_v50, %v5531_v61  ;;  %v833_v62 = vmul.f32 %v820_v50, %v820_v50  ;;  %v957_v49 = vmul.f32 %v797_v42, %v2416_v13  ;;  %v762_v2 = vmul.f32 %v3177_v46, %v2320_v27  ;;  %v5533_v50 = vld [vmem:[#allocation15_spill] sm:$0xff] }
  0xa2   :  { %5530 = vst [vmem:[#allocation17_spill] sm:$0xff] %v3452_v58  ;;  %v771_v56 = vmul.f32 %v3350_v10, %v2434_v38  ;;  %v960_v53 = vadd.f32 %v956_v26, %v952_v5  ;;  %v964_v52 = vmul.f32 %v812_v6, %v2311_v21  ;;  %v805_v57 = vadd.f32 %v801_v36, %v789_v47 }
  0xa3   :  { %5532 = vst [vmem:[#allocation13_spill] sm:$0xff] %v3461_v19  ;;  %v779_v22 = vmul.f32 %v709_v23, %v2463_v9  ;;  %v3470_v30 = vadd.f32 %v861_v7, %v857_v63  ;;  %v3473_v61 = vadd.f32 %v833_v62, %v3290_v40  ;;  %v766_v58 = vadd.f32 %v762_v2, %v5533_v50 }
  0xa4   :  { %v874_v19 = vmul.f32 %v796_v15, %v2331_v33  ;;  %v882_v46 = vmul.f32 %v812_v6, %v2347_v37  ;;  %v821_v14 = vadd.f32 %v817_v48, %v805_v57  ;;  %v965_v10 = vmul.f32 %v813_v4, %v2423_v24 }
  0xa5   :  { %v961_v5 = vadd.f32 %v957_v49, %v953_v45  ;;  %v774_v26 = vadd.f32 %v3336_v55, %v766_v58  ;;  %v786_v23 = vmul.f32 %v3360_v18, %v2355_v41  ;;  %v5534_v36 = vrot.slane %v3355_v39, 1 }
  0xa6   :  { %v5535_v40 = vrot.slane %v3360_v18, 1  ;;  %v3488_v7 = vadd.f32 %v964_v52, %v960_v53  ;;  %2046 = vst [vmem:[%s5365_s4 + $0xa8] sm:$0xff] %v821_v14  ;;  %v3494_v15 = vadd.f32 %v821_v14, %v3311_v12  ;;  %v834_v55 = vmul.f32 %v821_v14, %v821_v14 }
  0xa7   :  { %v763_v6 = vmul.f32 %v3221_v3, %v2429_v31  ;;  %v875_v58 = vmul.f32 %v797_v42, %v2434_v38  ;;  %v782_v47 = vadd.f32 %v3339_v25, %v774_v26  ;;  %v5536_v45 = vrot.slane %v3355_v39, 2 }
  0xa8   :  { %v798_v63 = vsel %vm59_vm0, %v5535_v40, %v5534_v36  ;;  %v5537_v62 = vrot.slane %v3360_v18, 2  ;;  %v3508_v12 = vadd.f32 %v834_v55, %v3325_v20  ;;  %v954_v14 = vmul.f32 %v3360_v18, %v2297_v16 }
  0xa9   :  { %v802_v48 = vmul.f32 %v798_v63, %v2376_v51  ;;  %v958_v3 = vmul.f32 %v798_v63, %v2300_v17  ;;  %v767_v42 = vadd.f32 %v763_v6, %v3287_v59  ;;  %v883_v25 = vmul.f32 %v813_v4, %v2463_v9 }
  0xaa   :  { %v814_v49 = vsel %vm82_vm1, %v5537_v62, %v5536_v45  ;;  %v3515_v2 = vadd.f32 %v965_v10, %v961_v5  ;;  %v790_v53 = vadd.f32 %v786_v23, %v782_v47  ;;  %v3519_v57 = vmul.f32 %v798_v63, %v2331_v33  ;;  %v3538_v23 = vld [vmem:[%s5364_s0 + $0xe0] sm:$0xff] }
  0xab   :  { %v818_v52 = vmul.f32 %v814_v49, %v2399_v60  ;;  %v3522_v20 = vmul.f32 %v814_v49, %v2347_v37  ;;  %v775_v50 = vadd.f32 %v771_v56, %v767_v42  ;;  %v787_v26 = vmul.f32 %v3404_v34, %v2478_v32  ;;  %v3543_v56 = vld [vmem:[%s5364_s0 + $0xf0] sm:$0xff] }
  0xac   :  { %v806_v36 = vadd.f32 %v802_v48, %v790_v53  ;;  %v966_v59 = vmul.f32 %v814_v49, %v2311_v21  ;;  %v5538_v4 = vrot.slane %v3399_v8, 1  ;;  %v5539_v10 = vrot.slane %v3404_v34, 1 }
  0xad   :  { %v866_v40 = vmul.f32 %v3355_v39, %v2320_v27  ;;  %v962_v63 = vadd.f32 %v958_v3, %v954_v14  ;;  %v783_v55 = vadd.f32 %v779_v22, %v775_v50  ;;  %v5540_v47 = vrot.slane %v3399_v8, 2 }
  0xae   :  { %v3533_v5 = vsel %vm59_vm0, %v5539_v10, %v5538_v4  ;;  %v5541_v48 = vrot.slane %v3404_v34, 2  ;;  %v822_v62 = vadd.f32 %v818_v52, %v806_v36  ;;  %v955_v42 = vmul.f32 %v3404_v34, %v2413_v11 }
  0xaf   :  { %v803_v6 = vmul.f32 %v3533_v5, %v2484_v43  ;;  %v870_v39 = vadd.f32 %v866_v40, %v3305_v35  ;;  %v791_v14 = vadd.f32 %v787_v26, %v783_v55  ;;  %v5419_v22 = vrot.slane %v3538_v23, 1 }
  0xb0   :  { %v815_v45 = vsel %vm82_vm1, %v5541_v48, %v5540_v47  ;;  %v5418_v3 = vrot.slane %v3543_v56, 1  ;;  %v867_v53 = vmul.f32 %v3399_v8, %v2429_v31  ;;  %2047 = vst [vmem:[%s5365_s4 + $0xb0] sm:$0xff] %v822_v62  ;;  %v3567_v52 = vadd.f32 %v822_v62, %v3384_v29  ;;  %v3582_v29 = vld [vmem:[%s5364_s0 + $0xe8] sm:$0xff] }
  0xb1   :  { %v819_v49 = vmul.f32 %v815_v45, %v2498_v44  ;;  %v835_v50 = vmul.f32 %v822_v62, %v822_v62  ;;  %v878_v36 = vadd.f32 %v874_v19, %v870_v39  ;;  %v890_v35 = vmul.f32 %v3538_v23, %v2355_v41  ;;  %v3587_v19 = vld [vmem:[%s5364_s0 + $0xf8] sm:$0xff] }
  0xb2   :  { %v807_v26 = vadd.f32 %v803_v6, %v791_v14  ;;  %v902_v8 = vsel %vm59_vm0, %v5419_v22, %v5418_v3  ;;  %v5417_v4 = vrot.slane %v3538_v23, 2  ;;  %v5416_v10 = vrot.slane %v3543_v56, 2  ;;  %v5542_v3 = vld [vmem:[#allocation14_spill] sm:$0xff] }
  0xb3   :  { %v3590_v40 = vadd.f32 %v835_v50, %v3407_v0  ;;  %v959_v55 = vmul.f32 %v3533_v5, %v2416_v13  ;;  %v886_v6 = vadd.f32 %v882_v46, %v878_v36  ;;  %v906_v47 = vmul.f32 %v902_v8, %v2376_v51 }
  0xb4   :  { %v823_v48 = vadd.f32 %v819_v49, %v807_v26  ;;  %v918_v62 = vsel %vm82_vm1, %v5417_v4, %v5416_v10  ;;  %v1058_v39 = vmul.f32 %v3538_v23, %v2297_v16  ;;  %v871_v0 = vadd.f32 %v867_v53, %v3332_v54 }
  0xb5   :  { %v894_v14 = vadd.f32 %v890_v35, %v886_v6  ;;  %v922_v50 = vmul.f32 %v918_v62, %v2399_v60  ;;  %v5421_v46 = vrot.slane %v3582_v29, 1  ;;  %v5420_v36 = vrot.slane %v3587_v19, 1 }
  0xb6   :  { %2048 = vst [vmem:[%s5365_s4 + $0xb8] sm:$0xff] %v823_v48  ;;  %v3611_v49 = vadd.f32 %v823_v48, %v3428_v28  ;;  %v836_v26 = vmul.f32 %v823_v48, %v823_v48  ;;  %v879_v10 = vadd.f32 %v875_v58, %v871_v0  ;;  %v891_v4 = vmul.f32 %v3582_v29, %v2478_v32 }
  0xb7   :  { %v910_v54 = vadd.f32 %v906_v47, %v894_v14  ;;  %v903_v53 = vsel %vm59_vm0, %v5421_v46, %v5420_v36  ;;  %v5423_v35 = vrot.slane %v3582_v29, 2  ;;  %v5422_v6 = vrot.slane %v3587_v19, 2 }
  0xb8   :  { %v3624_v28 = vadd.f32 %v836_v26, %v5542_v3  ;;  %v1062_v58 = vmul.f32 %v902_v8, %v2300_v17  ;;  %v887_v48 = vadd.f32 %v883_v25, %v879_v10  ;;  %v907_v0 = vmul.f32 %v903_v53, %v2484_v43 }
  0xb9   :  { %v963_v47 = vadd.f32 %v959_v55, %v955_v42  ;;  %v967_v14 = vmul.f32 %v815_v45, %v2423_v24  ;;  %v926_v22 = vadd.f32 %v922_v50, %v910_v54  ;;  %v919_v36 = vsel %vm82_vm1, %v5423_v35, %v5422_v6  ;;  %v5545_v42 = vld [vmem:[#allocation13_spill] sm:$0xff] }
  0xba   :  { %5543 = vst [vmem:[#allocation16_spill] sm:$0xff] %v3624_v28  ;;  %v3635_v46 = vadd.f32 %v966_v59, %v962_v63  ;;  %v895_v3 = vadd.f32 %v891_v4, %v887_v48  ;;  %v923_v26 = vmul.f32 %v919_v36, %v2498_v44  ;;  %v1059_v25 = vmul.f32 %v3582_v29, %v2413_v11 }
  0xbb   :  { %2053 = vst [vmem:[%s5365_s4 + $0xc0] sm:$0xff] %v926_v22  ;;  %v3644_v10 = vadd.f32 %v926_v22, %v5545_v42  ;;  %v939_v55 = vmul.f32 %v926_v22, %v926_v22  ;;  %v1063_v50 = vmul.f32 %v903_v53, %v2416_v13  ;;  %v868_v59 = vmul.f32 %v3360_v18, %v2320_v27  ;;  %v5547_v22 = vld [vmem:[#allocation17_spill] sm:$0xff] }
  0xbc   :  { %5544 = vst [vmem:[#allocation18_spill] sm:$0xff] %v3635_v46  ;;  %v877_v63 = vmul.f32 %v3533_v5, %v2434_v38  ;;  %v1066_v4 = vadd.f32 %v1062_v58, %v1058_v39  ;;  %v1070_v54 = vmul.f32 %v918_v62, %v2311_v21  ;;  %v911_v48 = vadd.f32 %v907_v0, %v895_v3 }
  0xbd   :  { %5546 = vst [vmem:[#allocation6_spill] sm:$0xff] %v3644_v10  ;;  %v885_v6 = vmul.f32 %v815_v45, %v2463_v9  ;;  %v3653_v35 = vadd.f32 %v967_v14, %v963_v47  ;;  %v3656_v42 = vadd.f32 %v939_v55, %v3473_v61  ;;  %v872_v46 = vadd.f32 %v868_v59, %v5547_v22 }
  0xbe   :  { %v980_v10 = vmul.f32 %v902_v8, %v2331_v33  ;;  %v988_v18 = vmul.f32 %v918_v62, %v2347_v37  ;;  %v927_v28 = vadd.f32 %v923_v26, %v911_v48  ;;  %v1071_v5 = vmul.f32 %v919_v36, %v2423_v24 }
  0xbf   :  { %v1067_v39 = vadd.f32 %v1063_v50, %v1059_v25  ;;  %v880_v58 = vadd.f32 %v3519_v57, %v872_v46  ;;  %v892_v45 = vmul.f32 %v3543_v56, %v2355_v41  ;;  %v5548_v0 = vrot.slane %v3538_v23, 1 }
  0xc0   :  { %v5549_v61 = vrot.slane %v3543_v56, 1  ;;  %v3671_v14 = vadd.f32 %v1070_v54, %v1066_v4  ;;  %2054 = vst [vmem:[%s5365_s4 + $0xc8] sm:$0xff] %v927_v28  ;;  %v3677_v8 = vadd.f32 %v927_v28, %v3494_v15  ;;  %v940_v57 = vmul.f32 %v927_v28, %v927_v28 }
  0xc1   :  { %v869_v62 = vmul.f32 %v3404_v34, %v2429_v31  ;;  %v981_v46 = vmul.f32 %v903_v53, %v2434_v38  ;;  %v888_v3 = vadd.f32 %v3522_v20, %v880_v58  ;;  %v5550_v25 = vrot.slane %v3538_v23, 2 }
  0xc2   :  { %v904_v47 = vsel %vm59_vm0, %v5549_v61, %v5548_v0  ;;  %v5551_v55 = vrot.slane %v3543_v56, 2  ;;  %v3691_v15 = vadd.f32 %v940_v57, %v3508_v12  ;;  %v1060_v28 = vmul.f32 %v3543_v56, %v2297_v16 }
  0xc3   :  { %v908_v26 = vmul.f32 %v904_v47, %v2376_v51  ;;  %v1064_v34 = vmul.f32 %v904_v47, %v2300_v17  ;;  %v873_v53 = vadd.f32 %v869_v62, %v3470_v30  ;;  %v989_v20 = vmul.f32 %v919_v36, %v2463_v9 }
  0xc4   :  { %v920_v50 = vsel %vm82_vm1, %v5551_v55, %v5550_v25  ;;  %v3698_v59 = vadd.f32 %v1071_v5, %v1067_v39  ;;  %v896_v4 = vadd.f32 %v892_v45, %v888_v3  ;;  %v3702_v48 = vmul.f32 %v904_v47, %v2331_v33  ;;  %v3721_v45 = vld [vmem:[%s5364_s0 + $0x100] sm:$0xff] }
  0xc5   :  { %v924_v54 = vmul.f32 %v920_v50, %v2399_v60  ;;  %v3705_v12 = vmul.f32 %v920_v50, %v2347_v37  ;;  %v881_v22 = vadd.f32 %v877_v63, %v873_v53  ;;  %v893_v58 = vmul.f32 %v3587_v19, %v2478_v32  ;;  %v3726_v63 = vld [vmem:[%s5364_s0 + $0x110] sm:$0xff] }
  0xc6   :  { %v912_v0 = vadd.f32 %v908_v26, %v896_v4  ;;  %v1072_v30 = vmul.f32 %v920_v50, %v2311_v21  ;;  %v5552_v36 = vrot.slane %v3582_v29, 1  ;;  %v5553_v5 = vrot.slane %v3587_v19, 1 }
  0xc7   :  { %v972_v61 = vmul.f32 %v3538_v23, %v2320_v27  ;;  %v1068_v47 = vadd.f32 %v1064_v34, %v1060_v28  ;;  %v889_v57 = vadd.f32 %v885_v6, %v881_v22  ;;  %v5554_v3 = vrot.slane %v3582_v29, 2 }
  0xc8   :  { %v3716_v39 = vsel %vm59_vm0, %v5553_v5, %v5552_v36  ;;  %v5555_v26 = vrot.slane %v3587_v19, 2  ;;  %v928_v55 = vadd.f32 %v924_v54, %v912_v0  ;;  %v1061_v53 = vmul.f32 %v3587_v19, %v2413_v11 }
  0xc9   :  { %v909_v62 = vmul.f32 %v3716_v39, %v2484_v43  ;;  %v976_v23 = vadd.f32 %v972_v61, %v3488_v7  ;;  %v897_v28 = vadd.f32 %v893_v58, %v889_v57  ;;  %v5427_v6 = vrot.slane %v3721_v45, 1 }
  0xca   :  { %v921_v25 = vsel %vm82_vm1, %v5555_v26, %v5554_v3  ;;  %v5426_v34 = vrot.slane %v3726_v63, 1  ;;  %v973_v4 = vmul.f32 %v3582_v29, %v2429_v31  ;;  %2055 = vst [vmem:[%s5365_s4 + $0xd0] sm:$0xff] %v928_v55  ;;  %v3750_v54 = vadd.f32 %v928_v55, %v3567_v52  ;;  %v3765_v52 = vld [vmem:[%s5364_s0 + $0x108] sm:$0xff] }
  0xcb   :  { %v925_v50 = vmul.f32 %v921_v25, %v2498_v44  ;;  %v941_v22 = vmul.f32 %v928_v55, %v928_v55  ;;  %v984_v0 = vadd.f32 %v980_v10, %v976_v23  ;;  %v996_v7 = vmul.f32 %v3721_v45, %v2355_v41  ;;  %v3770_v10 = vld [vmem:[%s5364_s0 + $0x118] sm:$0xff] }
  0xcc   :  { %v913_v58 = vadd.f32 %v909_v62, %v897_v28  ;;  %v1008_v29 = vsel %vm59_vm0, %v5427_v6, %v5426_v34  ;;  %v5425_v36 = vrot.slane %v3721_v45, 2  ;;  %v5424_v5 = vrot.slane %v3726_v63, 2  ;;  %v5556_v34 = vld [vmem:[#allocation16_spill] sm:$0xff] }
  0xcd   :  { %v3773_v61 = vadd.f32 %v941_v22, %v3590_v40  ;;  %v1065_v57 = vmul.f32 %v3716_v39, %v2416_v13  ;;  %v992_v62 = vadd.f32 %v988_v18, %v984_v0  ;;  %v1012_v3 = vmul.f32 %v1008_v29, %v2376_v51 }
  0xce   :  { %v929_v26 = vadd.f32 %v925_v50, %v913_v58  ;;  %v1024_v55 = vsel %vm82_vm1, %v5425_v36, %v5424_v5  ;;  %v1164_v23 = vmul.f32 %v3721_v45, %v2297_v16  ;;  %v977_v40 = vadd.f32 %v973_v4, %v3515_v2 }
  0xcf   :  { %v1000_v28 = vadd.f32 %v996_v7, %v992_v62  ;;  %v1028_v22 = vmul.f32 %v1024_v55, %v2399_v60  ;;  %v5429_v18 = vrot.slane %v3765_v52, 1  ;;  %v5428_v0 = vrot.slane %v3770_v10, 1 }
  0xd0   :  { %2056 = vst [vmem:[%s5365_s4 + $0xd8] sm:$0xff] %v929_v26  ;;  %v3794_v50 = vadd.f32 %v929_v26, %v3611_v49  ;;  %v942_v58 = vmul.f32 %v929_v26, %v929_v26  ;;  %v985_v5 = vadd.f32 %v981_v46, %v977_v40  ;;  %v997_v36 = vmul.f32 %v3765_v52, %v2478_v32 }
  0xd1   :  { %v1016_v2 = vadd.f32 %v1012_v3, %v1000_v28  ;;  %v1009_v4 = vsel %vm59_vm0, %v5429_v18, %v5428_v0  ;;  %v5431_v7 = vrot.slane %v3765_v52, 2  ;;  %v5430_v62 = vrot.slane %v3770_v10, 2 }
  0xd2   :  { %v3807_v49 = vadd.f32 %v942_v58, %v5556_v34  ;;  %v1168_v46 = vmul.f32 %v1008_v29, %v2300_v17  ;;  %v993_v26 = vadd.f32 %v989_v20, %v985_v5  ;;  %v1013_v40 = vmul.f32 %v1009_v4, %v2484_v43 }
  0xd3   :  { %v1069_v3 = vadd.f32 %v1065_v57, %v1061_v53  ;;  %v1073_v28 = vmul.f32 %v921_v25, %v2423_v24  ;;  %v1032_v6 = vadd.f32 %v1028_v22, %v1016_v2  ;;  %v1025_v0 = vsel %vm82_vm1, %v5431_v7, %v5430_v62  ;;  %v5559_v53 = vld [vmem:[#allocation6_spill] sm:$0xff] }
  0xd4   :  { %5557 = vst [vmem:[#allocation4_spill] sm:$0xff] %v3807_v49  ;;  %v3818_v18 = vadd.f32 %v1072_v30, %v1068_v47  ;;  %v1001_v34 = vadd.f32 %v997_v36, %v993_v26  ;;  %v1029_v58 = vmul.f32 %v1025_v0, %v2498_v44  ;;  %v1165_v20 = vmul.f32 %v3765_v52, %v2413_v11 }
  0xd5   :  { %2061 = vst [vmem:[%s5365_s4 + $0xe0] sm:$0xff] %v1032_v6  ;;  %v3827_v5 = vadd.f32 %v1032_v6, %v5559_v53  ;;  %v1045_v57 = vmul.f32 %v1032_v6, %v1032_v6  ;;  %v1169_v22 = vmul.f32 %v1009_v4, %v2416_v13  ;;  %v974_v30 = vmul.f32 %v3543_v56, %v2320_v27  ;;  %v5561_v6 = vld [vmem:[#allocation18_spill] sm:$0xff] }
  0xd6   :  { %5558 = vst [vmem:[#allocation9_spill] sm:$0xff] %v3818_v18  ;;  %v983_v47 = vmul.f32 %v3716_v39, %v2434_v38  ;;  %v1172_v36 = vadd.f32 %v1168_v46, %v1164_v23  ;;  %v1176_v2 = vmul.f32 %v1024_v55, %v2311_v21  ;;  %v1017_v26 = vadd.f32 %v1013_v40, %v1001_v34 }
  0xd7   :  { %5560 = vst [vmem:[#allocation10_spill] sm:$0xff] %v3827_v5  ;;  %v991_v62 = vmul.f32 %v921_v25, %v2463_v9  ;;  %v3836_v7 = vadd.f32 %v1073_v28, %v1069_v3  ;;  %v3839_v53 = vadd.f32 %v1045_v57, %v3656_v42  ;;  %v978_v18 = vadd.f32 %v974_v30, %v5561_v6 }
  0xd8   :  { %v1086_v5 = vmul.f32 %v1008_v29, %v2331_v33  ;;  %v1094_v56 = vmul.f32 %v1024_v55, %v2347_v37  ;;  %v1033_v49 = vadd.f32 %v1029_v58, %v1017_v26  ;;  %v1177_v39 = vmul.f32 %v1025_v0, %v2423_v24 }
  0xd9   :  { %v1173_v23 = vadd.f32 %v1169_v22, %v1165_v20  ;;  %v986_v46 = vadd.f32 %v3702_v48, %v978_v18  ;;  %v998_v25 = vmul.f32 %v3726_v63, %v2355_v41  ;;  %v5562_v40 = vrot.slane %v3721_v45, 1 }
  0xda   :  { %v5563_v42 = vrot.slane %v3726_v63, 1  ;;  %v3854_v28 = vadd.f32 %v1176_v2, %v1172_v36  ;;  %2062 = vst [vmem:[%s5365_s4 + $0xe8] sm:$0xff] %v1033_v49  ;;  %v3860_v29 = vadd.f32 %v1033_v49, %v3677_v8  ;;  %v1046_v48 = vmul.f32 %v1033_v49, %v1033_v49 }
  0xdb   :  { %v975_v55 = vmul.f32 %v3587_v19, %v2429_v31  ;;  %v1087_v18 = vmul.f32 %v1009_v4, %v2434_v38  ;;  %v994_v34 = vadd.f32 %v3705_v12, %v986_v46  ;;  %v5565_v20 = vrot.slane %v3721_v45, 2 }
  0xdc   :  { %v1010_v3 = vsel %vm59_vm0, %v5563_v42, %v5562_v40  ;;  %5564 = vst [vmem:[#allocation12_spill] sm:$0xff] %v3854_v28  ;;  %v5566_v57 = vrot.slane %v3726_v63, 2  ;;  %v3874_v8 = vadd.f32 %v1046_v48, %v3691_v15  ;;  %v1166_v49 = vmul.f32 %v3726_v63, %v2297_v16 }
  0xdd   :  { %v1014_v58 = vmul.f32 %v1010_v3, %v2376_v51  ;;  %v1170_v19 = vmul.f32 %v1010_v3, %v2300_v17  ;;  %v979_v4 = vadd.f32 %v975_v55, %v3653_v35  ;;  %v1095_v12 = vmul.f32 %v1025_v0, %v2463_v9 }
  0xde   :  { %v1026_v22 = vsel %vm82_vm1, %v5566_v57, %v5565_v20  ;;  %v3881_v30 = vadd.f32 %v1177_v39, %v1173_v23  ;;  %v1002_v36 = vadd.f32 %v998_v25, %v994_v34  ;;  %v3885_v26 = vmul.f32 %v1010_v3, %v2331_v33  ;;  %v3902_v25 = vld [vmem:[%s5364_s0 + $0x120] sm:$0xff] }
  0xdf   :  { %v1030_v2 = vmul.f32 %v1026_v22, %v2399_v60  ;;  %v3888_v15 = vmul.f32 %v1026_v22, %v2347_v37  ;;  %v987_v6 = vadd.f32 %v983_v47, %v979_v4  ;;  %v999_v46 = vmul.f32 %v3770_v10, %v2478_v32  ;;  %v3907_v47 = vld [vmem:[%s5364_s0 + $0x130] sm:$0xff] }
  0xe0   :  { %5567 = vst [vmem:[#allocation11_spill] sm:$0xff] %v3881_v30  ;;  %v1018_v40 = vadd.f32 %v1014_v58, %v1002_v36  ;;  %v1178_v35 = vmul.f32 %v1026_v22, %v2311_v21  ;;  %v5568_v0 = vrot.slane %v3765_v52, 1  ;;  %v5569_v39 = vrot.slane %v3770_v10, 1 }
  0xe1   :  { %v1078_v42 = vmul.f32 %v3721_v45, %v2320_v27  ;;  %v1174_v3 = vadd.f32 %v1170_v19, %v1166_v49  ;;  %v995_v48 = vadd.f32 %v991_v62, %v987_v6  ;;  %v5570_v34 = vrot.slane %v3765_v52, 2 }
  0xe2   :  { %v1011_v23 = vsel %vm59_vm0, %v5569_v39, %v5568_v0  ;;  %v5571_v58 = vrot.slane %v3770_v10, 2  ;;  %v1034_v57 = vadd.f32 %v1030_v2, %v1018_v40  ;;  %v1167_v4 = vmul.f32 %v3770_v10, %v2413_v11 }
  0xe3   :  { %v1015_v55 = vmul.f32 %v1011_v23, %v2484_v43  ;;  %v1082_v36 = vadd.f32 %v1078_v42, %v3671_v14  ;;  %v1003_v45 = vadd.f32 %v999_v46, %v995_v48  ;;  %v1110_v62 = vrot.slane %v3902_v25, 1  ;;  %v3941_v42 = vld [vmem:[%s5364_s0 + $0x128] sm:$0xff] }
  0xe4   :  { %v1027_v20 = vsel %vm82_vm1, %v5571_v58, %v5570_v34  ;;  %v1112_v49 = vrot.slane %v3907_v47, 1  ;;  %v1079_v19 = vmul.f32 %v3765_v52, %v2429_v31  ;;  %2063 = vst [vmem:[%s5365_s4 + $0xf0] sm:$0xff] %v1034_v57  ;;  %v3930_v2 = vadd.f32 %v1034_v57, %v3750_v54  ;;  %v3946_v54 = vld [vmem:[%s5364_s0 + $0x138] sm:$0xff] }
  0xe5   :  { %v1031_v22 = vmul.f32 %v1027_v20, %v2498_v44  ;;  %v1047_v6 = vmul.f32 %v1034_v57, %v1034_v57  ;;  %v1090_v40 = vadd.f32 %v1086_v5, %v1082_v36  ;;  %v1102_v14 = vmul.f32 %v3902_v25, %v2355_v41 }
  0xe6   :  { %5572 = vst [vmem:[#allocation15_spill] sm:$0xff] %v3930_v2  ;;  %v1019_v46 = vadd.f32 %v1015_v55, %v1003_v45  ;;  %v1114_v0 = vsel %vm59_vm0, %v1110_v62, %v1112_v49  ;;  %v1126_v39 = vrot.slane %v3902_v25, 2  ;;  %v1128_v52 = vrot.slane %v3907_v47, 2 }
  0xe7   :  { %v3949_v5 = vadd.f32 %v1047_v6, %v3773_v61  ;;  %v1171_v48 = vmul.f32 %v1011_v23, %v2416_v13  ;;  %v1098_v55 = vadd.f32 %v1094_v56, %v1090_v40  ;;  %v1118_v34 = vmul.f32 %v1114_v0, %v2376_v51 }
  0xe8   :  { %v1035_v58 = vadd.f32 %v1031_v22, %v1019_v46  ;;  %v1179_v57 = vmul.f32 %v1027_v20, %v2423_v24  ;;  %v3956_v36 = vsel %vm82_vm1, %v1126_v39, %v1128_v52  ;;  %v1083_v45 = vadd.f32 %v1079_v19, %v3698_v59 }
  0xe9   :  { %5573 = vst [vmem:[#allocation14_spill] sm:$0xff] %v3949_v5  ;;  %v1106_v30 = vadd.f32 %v1102_v14, %v1098_v55  ;;  %v1134_v2 = vmul.f32 %v3956_v36, %v2399_v60  ;;  %v1111_v61 = vrot.slane %v3941_v42, 1  ;;  %v1113_v6 = vrot.slane %v3946_v54, 1  ;;  %v5575_v5 = vld [vmem:[#allocation4_spill] sm:$0xff] }
  0xea   :  { %2064 = vst [vmem:[%s5365_s4 + $0xf8] sm:$0xff] %v1035_v58  ;;  %v3967_v56 = vadd.f32 %v1035_v58, %v3794_v50  ;;  %v1048_v22 = vmul.f32 %v1035_v58, %v1035_v58  ;;  %v1091_v40 = vadd.f32 %v1087_v18, %v1083_v45  ;;  %v1103_v59 = vmul.f32 %v3941_v42, %v2478_v32 }
  0xeb   :  { %v1122_v19 = vadd.f32 %v1118_v34, %v1106_v30  ;;  %v3973_v14 = vsel %vm59_vm0, %v1111_v61, %v1113_v6  ;;  %v1127_v46 = vrot.slane %v3941_v42, 2  ;;  %v1129_v55 = vrot.slane %v3946_v54, 2 }
  0xec   :  { %5574 = vst [vmem:[#allocation13_spill] sm:$0xff] %v3967_v56  ;;  %v3978_v28 = vadd.f32 %v1048_v22, %v5575_v5  ;;  %v1175_v24 = vadd.f32 %v1171_v48, %v1167_v4  ;;  %v1099_v50 = vadd.f32 %v1095_v12, %v1091_v40  ;;  %v1119_v18 = vmul.f32 %v3973_v14, %v2484_v43 }
  0xed   :  { %v3982_v58 = vadd.f32 %v1178_v35, %v1174_v3  ;;  %v1089_v30 = vmul.f32 %v1011_v23, %v2434_v38  ;;  %v1138_v34 = vadd.f32 %v1134_v2, %v1122_v19  ;;  %v3987_v45 = vsel %vm82_vm1, %v1127_v46, %v1129_v55  ;;  %v5576_v35 = vld [vmem:[#allocation10_spill] sm:$0xff] }
  0xee   :  { %v1270_v56 = vmul.f32 %v3902_v25, %v2297_v16  ;;  %v1274_v5 = vmul.f32 %v1114_v0, %v2300_v17  ;;  %v1107_v22 = vadd.f32 %v1103_v59, %v1099_v50  ;;  %v1135_v12 = vmul.f32 %v3987_v45, %v2498_v44 }
  0xef   :  { %v1097_v4 = vmul.f32 %v1027_v20, %v2463_v9  ;;  %2069 = vst [vmem:[%s5365_s4 + $0x100] sm:$0xff] %v1138_v34  ;;  %v3999_v23 = vadd.f32 %v1138_v34, %v5576_v35  ;;  %v1151_v3 = vmul.f32 %v1138_v34, %v1138_v34  ;;  %v1080_v2 = vmul.f32 %v3726_v63, %v2320_v27  ;;  %v5578_v63 = vld [vmem:[#allocation9_spill] sm:$0xff] }
  0xf0   :  { %v4003_v48 = vadd.f32 %v1179_v57, %v1175_v24  ;;  %v1123_v40 = vadd.f32 %v1119_v18, %v1107_v22  ;;  %v4007_v59 = vsel %vm59_vm0, %v1112_v49, %v1110_v62  ;;  %v4011_v20 = vsel %vm82_vm1, %v1128_v52, %v1126_v39 }
  0xf1   :  { %v4014_v19 = vadd.f32 %v1151_v3, %v3839_v53  ;;  %v1192_v50 = vmul.f32 %v1114_v0, %v2331_v33  ;;  %v1200_v34 = vmul.f32 %v3956_v36, %v2347_v37  ;;  %v1084_v24 = vadd.f32 %v1080_v2, %v5578_v63  ;;  %v4078_v63 = vld [vmem:[%s5364_s0 + $0x150] sm:$0xff] }
  0xf2   :  { %5577 = vst [vmem:[#allocation17_spill] sm:$0xff] %v4003_v48  ;;  %v4020_v57 = vadd.f32 %v1274_v5, %v1270_v56  ;;  %v1139_v18 = vadd.f32 %v1135_v12, %v1123_v40  ;;  %v4024_v62 = vmul.f32 %v3973_v14, %v2434_v38  ;;  %v1104_v49 = vmul.f32 %v3907_v47, %v2355_v41 }
  0xf3   :  { %v1092_v53 = vadd.f32 %v3885_v26, %v1084_v24  ;;  %v1272_v0 = vmul.f32 %v3907_v47, %v2297_v16  ;;  %v1276_v39 = vmul.f32 %v4007_v59, %v2300_v17  ;;  %v1284_v52 = vmul.f32 %v4011_v20, %v2311_v21 }
  0xf4   :  { %5579 = vst [vmem:[#allocation16_spill] sm:$0xff] %v4020_v57  ;;  %2070 = vst [vmem:[%s5365_s4 + $0x108] sm:$0xff] %v1139_v18  ;;  %v4039_v56 = vadd.f32 %v1139_v18, %v3860_v29  ;;  %v1152_v5 = vmul.f32 %v1139_v18, %v1139_v18  ;;  %v1120_v26 = vmul.f32 %v4007_v59, %v2376_v51  ;;  %v1234_v48 = vrot.slane %v4078_v63, 2 }
  0xf5   :  { %v1081_v22 = vmul.f32 %v3770_v10, %v2429_v31  ;;  %v1100_v12 = vadd.f32 %v3888_v15, %v1092_v53  ;;  %v1280_v35 = vadd.f32 %v1276_v39, %v1272_v0  ;;  %v4048_v3 = vsel %vm59_vm0, %v1113_v6, %v1111_v61  ;;  %v4067_v61 = vld [vmem:[%s5364_s0 + $0x140] sm:$0xff] }
  0xf6   :  { %v4052_v2 = vsel %vm82_vm1, %v1129_v55, %v1127_v46  ;;  %v4055_v29 = vadd.f32 %v1152_v5, %v3874_v8  ;;  %v4059_v40 = vmul.f32 %v3941_v42, %v2413_v11  ;;  %v1136_v10 = vmul.f32 %v4011_v20, %v2399_v60 }
  0xf7   :  { %5580 = vst [vmem:[#allocation6_spill] sm:$0xff] %v4052_v2  ;;  %v1085_v15 = vadd.f32 %v1081_v22, %v3836_v7  ;;  %v1108_v6 = vadd.f32 %v1104_v49, %v1100_v12  ;;  %v4069_v46 = vadd.f32 %v1284_v52, %v1280_v35  ;;  %v1105_v8 = vmul.f32 %v3946_v54, %v2478_v32  ;;  %v5583_v49 = vld [vmem:[#allocation5_spill] sm:$0xff] }
  0xf8   :  { %5581 = vst [vmem:[#allocation18_spill] sm:$0xff] %v4055_v29  ;;  %v1121_v55 = vmul.f32 %v4048_v3, %v2484_v43  ;;  %v1273_v24 = vmul.f32 %v3946_v54, %v2413_v11  ;;  %v1277_v18 = vmul.f32 %v4048_v3, %v2416_v13  ;;  %v1285_v53 = vmul.f32 %v4052_v2, %v5583_v49 }
  0xf9   :  { %5582 = vst [vmem:[#allocation4_spill] sm:$0xff] %v4069_v46  ;;  %v1093_v7 = vadd.f32 %v1089_v30, %v1085_v15  ;;  %v1124_v0 = vadd.f32 %v1120_v26, %v1108_v6  ;;  %v1137_v39 = vmul.f32 %v4052_v2, %v2498_v44  ;;  %v1184_v52 = vmul.f32 %v3902_v25, %v2320_v27  ;;  %v5584_v46 = vld [vmem:[#allocation12_spill] sm:$0xff] }
  0xfa   :  { %v5434_v5 = vrot.slane %v4067_v61, 1  ;;  %v1281_v30 = vadd.f32 %v1277_v18, %v1273_v24  ;;  %v1218_v12 = vrot.slane %v4078_v63, 1  ;;  %v1232_v35 = vrot.slane %v4067_v61, 2 }
  0xfb   :  { %v1101_v22 = vadd.f32 %v1097_v4, %v1093_v7  ;;  %v1140_v15 = vadd.f32 %v1136_v10, %v1124_v0  ;;  %v1188_v57 = vadd.f32 %v1184_v52, %v5584_v46  ;;  %v1376_v26 = vmul.f32 %v4067_v61, %v2297_v16  ;;  %v5586_v10 = vld [vmem:[#allocation15_spill] sm:$0xff] }
  0xfc   :  { %v4097_v29 = vadd.f32 %v1285_v53, %v1281_v30  ;;  %v4103_v25 = vsel %vm59_vm0, %v5434_v5, %v1218_v12  ;;  %v1185_v4 = vmul.f32 %v3941_v42, %v2429_v31  ;;  %v1208_v24 = vmul.f32 %v4067_v61, %v2355_v41  ;;  %v4126_v52 = vld [vmem:[%s5364_s0 + $0x148] sm:$0xff] }
  0xfd   :  { %v1109_v6 = vadd.f32 %v1105_v8, %v1101_v22  ;;  %2071 = vst [vmem:[%s5365_s4 + $0x110] sm:$0xff] %v1140_v15  ;;  %v4111_v46 = vadd.f32 %v1140_v15, %v5586_v10  ;;  %v1153_v7 = vmul.f32 %v1140_v15, %v1140_v15  ;;  %v1196_v8 = vadd.f32 %v1192_v50, %v1188_v57  ;;  %v4131_v50 = vld [vmem:[%s5364_s0 + $0x158] sm:$0xff]  ;;  %v5588_v57 = vld [vmem:[#allocation14_spill] sm:$0xff] }
  0xfe   :  { %5585 = vst [vmem:[#allocation10_spill] sm:$0xff] %v4097_v29  ;;  %v1201_v18 = vmul.f32 %v3987_v45, %v2463_v9  ;;  %v4119_v0 = vsel %vm82_vm1, %v1232_v35, %v1234_v48  ;;  %v1380_v42 = vmul.f32 %v4103_v25, %v2300_v17  ;;  %v1224_v30 = vmul.f32 %v4103_v25, %v2376_v51  ;;  %v5589_v29 = vld [vmem:[#allocation11_spill] sm:$0xff] }
  0xff   :  { %5587 = vst [vmem:[#allocation9_spill] sm:$0xff] %v4111_v46  ;;  %v1125_v53 = vadd.f32 %v1121_v55, %v1109_v6  ;;  %v4134_v22 = vadd.f32 %v1153_v7, %v5588_v57  ;;  %v1204_v55 = vadd.f32 %v1200_v34, %v1196_v8  ;;  %v1240_v15 = vmul.f32 %v4119_v0, %v2399_v60  ;;  %v5590_v8 = vld [vmem:[#allocation13_spill] sm:$0xff] }
 0x100   :  { %v1384_v10 = vadd.f32 %v1380_v42, %v1376_v26  ;;  %v1388_v5 = vmul.f32 %v4119_v0, %v2311_v21  ;;  %v1189_v46 = vadd.f32 %v1185_v4, %v5589_v29  ;;  %v1209_v9 = vmul.f32 %v4126_v52, %v2478_v32 }
 0x101   :  { %v1141_v6 = vadd.f32 %v1137_v39, %v1125_v53  ;;  %v1212_v2 = vadd.f32 %v1208_v24, %v1204_v55  ;;  %v5440_v7 = vrot.slane %v4126_v52, 1  ;;  %v5439_v34 = vrot.slane %v4131_v50, 1 }
 0x102   :  { %v4153_v53 = vadd.f32 %v1388_v5, %v1384_v10  ;;  %v1197_v29 = vadd.f32 %v4024_v62, %v1189_v46  ;;  %v5438_v42 = vrot.slane %v4126_v52, 2  ;;  %v1235_v57 = vrot.slane %v4131_v50, 2 }
 0x103   :  { %2072 = vst [vmem:[%s5365_s4 + $0x118] sm:$0xff] %v1141_v6  ;;  %v4151_v39 = vadd.f32 %v1141_v6, %v5590_v8  ;;  %v1154_v26 = vmul.f32 %v1141_v6, %v1141_v6  ;;  %v1228_v4 = vadd.f32 %v1224_v30, %v1212_v2  ;;  %v4162_v24 = vsel %vm59_vm0, %v5440_v7, %v5439_v34 }
 0x104   :  { %v1275_v55 = vmul.f32 %v3973_v14, %v2416_v13  ;;  %v1205_v62 = vadd.f32 %v1201_v18, %v1197_v29  ;;  %v1225_v2 = vmul.f32 %v4162_v24, %v2484_v43  ;;  %v4177_v30 = vsel %vm82_vm1, %v5438_v42, %v1235_v57 }
 0x105   :  { %v4169_v5 = vadd.f32 %v1154_v26, %v3978_v28  ;;  %v1244_v46 = vadd.f32 %v1240_v15, %v1228_v4  ;;  %v1377_v6 = vmul.f32 %v4126_v52, %v2413_v11  ;;  %v1381_v14 = vmul.f32 %v4162_v24, %v2416_v13 }
 0x106   :  { %v1194_v28 = vmul.f32 %v4007_v59, %v2331_v33  ;;  %v1213_v18 = vadd.f32 %v1209_v9, %v1205_v62  ;;  %v1241_v10 = vmul.f32 %v4177_v30, %v2498_v44  ;;  %v1389_v15 = vmul.f32 %v4177_v30, %v5583_v49 }
 0x107   :  { %2077 = vst [vmem:[%s5365_s4 + $0x120] sm:$0xff] %v1244_v46  ;;  %v4193_v8 = vadd.f32 %v1244_v46, %v3999_v23  ;;  %v1257_v26 = vmul.f32 %v1244_v46, %v1244_v46  ;;  %v1385_v29 = vadd.f32 %v1381_v14, %v1377_v6  ;;  %v1186_v4 = vmul.f32 %v3907_v47, %v2320_v27 }
 0x108   :  { %v1282_v9 = vmul.f32 %v3956_v36, %v2311_v21  ;;  %v1229_v59 = vadd.f32 %v1225_v2, %v1213_v18  ;;  %v5591_v62 = vrot.slane %v4067_v61, 1  ;;  %v4207_v34 = vsel %vm82_vm1, %v1234_v48, %v1232_v35 }
 0x109   :  { %v1202_v23 = vmul.f32 %v4011_v20, %v2347_v37  ;;  %v4212_v46 = vadd.f32 %v1257_v26, %v4014_v19  ;;  %v4214_v47 = vadd.f32 %v1389_v15, %v1385_v29  ;;  %v1190_v36 = vadd.f32 %v1186_v4, %v3982_v58  ;;  %v5592_v15 = vld [vmem:[#allocation7_spill] sm:$0xff]  ;;  %v5593_v26 = vld [vmem:[#allocation6_spill] sm:$0xff] }
 0x10a   :  { %v4203_v42 = vsel %vm59_vm0, %v1218_v12, %v5591_v62  ;;  %v1279_v2 = vadd.f32 %v1275_v55, %v4059_v40  ;;  %v1283_v12 = vmul.f32 %v3987_v45, %v5583_v49  ;;  %v1245_v6 = vadd.f32 %v1241_v10, %v1229_v59  ;;  %v5595_v59 = vld [vmem:[#allocation17_spill] sm:$0xff] }
 0x10b   :  { %v1210_v48 = vmul.f32 %v4078_v63, %v2355_v41  ;;  %v1198_v35 = vadd.f32 %v1194_v28, %v1190_v36  ;;  %v1378_v20 = vmul.f32 %v4078_v63, %v2297_v16  ;;  %v1382_v19 = vmul.f32 %v4203_v42, %v2300_v17  ;;  %v5596_v36 = vld [vmem:[#allocation16_spill] sm:$0xff] }
 0x10c   :  { %v1390_v14 = vmul.f32 %v4207_v34, %v2311_v21  ;;  %v1195_v58 = vmul.f32 %v4048_v3, %v2434_v38  ;;  %2078 = vst [vmem:[%s5365_s4 + $0x128] sm:$0xff] %v1245_v6  ;;  %v4234_v45 = vadd.f32 %v1245_v6, %v4039_v56  ;;  %v1258_v40 = vmul.f32 %v1245_v6, %v1245_v6  ;;  %v5594_v3 = vld [vmem:[#allocation18_spill] sm:$0xff] }
 0x10d   :  { %v1187_v55 = vmul.f32 %v3946_v54, %v2429_v31  ;;  %v1206_v28 = vadd.f32 %v1202_v23, %v1198_v35  ;;  %v1226_v18 = vmul.f32 %v4203_v42, %v2376_v51  ;;  %v1386_v10 = vadd.f32 %v1382_v19, %v1378_v20 }
 0x10e   :  { %v1203_v29 = vmul.f32 %v5593_v26, %v5592_v15  ;;  %v4243_v4 = vadd.f32 %v1258_v40, %v5594_v3  ;;  %v1286_v56 = vadd.f32 %v1282_v9, %v5596_v36  ;;  %v1242_v6 = vmul.f32 %v4207_v34, %v2399_v60 }
 0x10f   :  { %v1191_v62 = vadd.f32 %v1187_v55, %v5595_v59  ;;  %v1214_v7 = vadd.f32 %v1210_v48, %v1206_v28  ;;  %v4249_v54 = vadd.f32 %v1390_v14, %v1386_v10  ;;  %v1287_v23 = vadd.f32 %v1283_v12, %v1279_v2  ;;  %v4266_v2 = vld [vmem:[%s5364_s0 + $0x160] sm:$0xff]  ;;  %v4271_v12 = vld [vmem:[%s5364_s0 + $0x170] sm:$0xff] }
 0x110   :  { %v1211_v20 = vmul.f32 %v4131_v50, %v2478_v32  ;;  %v1298_v19 = vmul.f32 %v4103_v25, %v2331_v33  ;;  %v5597_v26 = vrot.slane %v4126_v52, 1  ;;  %v5598_v55 = vrot.slane %v4131_v50, 1 }
 0x111   :  { %v1199_v35 = vadd.f32 %v1195_v58, %v1191_v62  ;;  %v1230_v40 = vadd.f32 %v1226_v18, %v1214_v7  ;;  %v1290_v25 = vmul.f32 %v4067_v61, %v2320_v27  ;;  %v1306_v7 = vmul.f32 %v4119_v0, %v2347_v37 }
 0x112   :  { %v4261_v9 = vsel %vm59_vm0, %v5598_v55, %v5597_v26  ;;  %v5599_v58 = vrot.slane %v4126_v52, 2  ;;  %v1299_v18 = vmul.f32 %v4162_v24, %v2434_v38  ;;  %v1322_v0 = vrot.slane %v4266_v2, 1  ;;  %v4319_v26 = vld [vmem:[%s5364_s0 + $0x178] sm:$0xff] }
 0x113   :  { %v1207_v48 = vadd.f32 %v1203_v29, %v1199_v35  ;;  %v1227_v14 = vmul.f32 %v4261_v9, %v2484_v43  ;;  %v1246_v10 = vadd.f32 %v1242_v6, %v1230_v40  ;;  %v1294_v3 = vadd.f32 %v1290_v25, %v1286_v56 }
 0x114   :  { %v4283_v28 = vsel %vm82_vm1, %v1235_v57, %v5599_v58  ;;  %v1324_v29 = vrot.slane %v4271_v12, 1  ;;  %v1291_v62 = vmul.f32 %v4126_v52, %v2429_v31  ;;  %v5600_v57 = vld [vmem:[#allocation9_spill] sm:$0xff]  ;;  %v1314_v56 = vmul.f32 %v4266_v2, %v2355_v41 }
 0x115   :  { %v1243_v61 = vmul.f32 %v4283_v28, %v2498_v44  ;;  %v1215_v59 = vadd.f32 %v1211_v20, %v1207_v48  ;;  %2079 = vst [vmem:[%s5365_s4 + $0x130] sm:$0xff] %v1246_v10  ;;  %v4297_v36 = vadd.f32 %v1246_v10, %v5600_v57  ;;  %v1259_v24 = vmul.f32 %v1246_v10, %v1246_v10 }
 0x116   :  { %v1302_v6 = vadd.f32 %v1298_v19, %v1294_v3  ;;  %v4307_v52 = vsel %vm59_vm0, %v1322_v0, %v1324_v29  ;;  %v1338_v20 = vrot.slane %v4266_v2, 2  ;;  %v1340_v40 = vrot.slane %v4271_v12, 2  ;;  %v4314_v19 = vld [vmem:[%s5364_s0 + $0x168] sm:$0xff] }
 0x117   :  { %v1231_v35 = vadd.f32 %v1227_v14, %v1215_v59  ;;  %v4322_v55 = vadd.f32 %v1259_v24, %v4134_v22  ;;  %v1330_v48 = vmul.f32 %v4307_v52, %v2376_v51  ;;  %v1307_v14 = vmul.f32 %v4177_v30, %v5592_v15 }
 0x118   :  { %v1310_v25 = vadd.f32 %v1306_v7, %v1302_v6  ;;  %v4334_v10 = vsel %vm82_vm1, %v1338_v20, %v1340_v40  ;;  %v1295_v3 = vadd.f32 %v1291_v62, %v1287_v23  ;;  %v5444_v7 = vrot.slane %v4314_v19, 1 }
 0x119   :  { %v1247_v58 = vadd.f32 %v1243_v61, %v1231_v35  ;;  %v1346_v22 = vmul.f32 %v4334_v10, %v2399_v60  ;;  %v5441_v57 = vrot.slane %v4319_v26, 1  ;;  %v1315_v23 = vmul.f32 %v4314_v19, %v2478_v32 }
 0x11a   :  { %v1318_v59 = vadd.f32 %v1314_v56, %v1310_v25  ;;  %v1303_v24 = vadd.f32 %v1299_v18, %v1295_v3  ;;  %v5443_v56 = vrot.slane %v4314_v19, 2  ;;  %v5442_v35 = vrot.slane %v4319_v26, 2 }
 0x11b   :  { %2080 = vst [vmem:[%s5365_s4 + $0x138] sm:$0xff] %v1247_v58  ;;  %v4344_v30 = vadd.f32 %v1247_v58, %v4151_v39  ;;  %v1260_v61 = vmul.f32 %v1247_v58, %v1247_v58  ;;  %v1327_v6 = vsel %vm59_vm0, %v5444_v7, %v5441_v57  ;;  %v1379_v3 = vmul.f32 %v4131_v50, %v2413_v11 }
 0x11c   :  { %v1334_v62 = vadd.f32 %v1330_v48, %v1318_v59  ;;  %v1311_v25 = vadd.f32 %v1307_v14, %v1303_v24  ;;  %v1331_v18 = vmul.f32 %v1327_v6, %v2484_v43  ;;  %v1343_v48 = vsel %vm82_vm1, %v5443_v56, %v5442_v35  ;;  %v5602_v56 = vld [vmem:[#allocation4_spill] sm:$0xff] }
 0x11d   :  { %v4357_v39 = vadd.f32 %v1260_v61, %v4169_v5  ;;  %v1383_v59 = vmul.f32 %v4261_v9, %v2416_v13  ;;  %v1347_v5 = vmul.f32 %v1343_v48, %v2498_v44  ;;  %v1300_v14 = vmul.f32 %v4203_v42, %v2331_v33 }
 0x11e   :  { %v1350_v58 = vadd.f32 %v1346_v22, %v1334_v62  ;;  %v1319_v57 = vadd.f32 %v1315_v23, %v1311_v25  ;;  %v1292_v24 = vmul.f32 %v4078_v63, %v2320_v27  ;;  %v1308_v62 = vmul.f32 %v4207_v34, %v2347_v37 }
 0x11f   :  { %v1482_v42 = vmul.f32 %v4266_v2, %v2297_v16  ;;  %v1486_v35 = vmul.f32 %v4307_v52, %v2300_v17  ;;  %v1387_v7 = vadd.f32 %v1383_v59, %v1379_v3  ;;  %v1483_v34 = vmul.f32 %v4314_v19, %v2413_v11 }
 0x120   :  { %2085 = vst [vmem:[%s5365_s4 + $0x140] sm:$0xff] %v1350_v58  ;;  %v4377_v22 = vadd.f32 %v1350_v58, %v4193_v8  ;;  %v1363_v61 = vmul.f32 %v1350_v58, %v1350_v58  ;;  %v1335_v23 = vadd.f32 %v1331_v18, %v1319_v57  ;;  %v1296_v8 = vadd.f32 %v1292_v24, %v5602_v56 }
 0x121   :  { %v1391_v58 = vmul.f32 %v4283_v28, %v5583_v49  ;;  %v1487_v57 = vmul.f32 %v1327_v6, %v2416_v13  ;;  %v1316_v18 = vmul.f32 %v4271_v12, %v2355_v41  ;;  %v1293_v59 = vmul.f32 %v4131_v50, %v2429_v31  ;;  %v5605_v50 = vld [vmem:[#allocation10_spill] sm:$0xff] }
 0x122   :  { %v4384_v25 = vadd.f32 %v1363_v61, %v4212_v46  ;;  %v1351_v63 = vadd.f32 %v1347_v5, %v1335_v23  ;;  %v1304_v46 = vadd.f32 %v1300_v14, %v1296_v8  ;;  %v1301_v61 = vmul.f32 %v4261_v9, %v2434_v38 }
 0x123   :  { %v1490_v5 = vadd.f32 %v1486_v35, %v1482_v42  ;;  %v1494_v14 = vmul.f32 %v4334_v10, %v2311_v21  ;;  %v1328_v9 = vsel %vm59_vm0, %v1324_v29, %v1322_v0  ;;  %v4418_v23 = vadd.f32 %v1391_v58, %v1387_v7 }
 0x124   :  { %5601 = vst [vmem:[#allocation5_spill] sm:$0xff] %v4384_v25  ;;  %2086 = vst [vmem:[%s5365_s4 + $0x148] sm:$0xff] %v1351_v63  ;;  %v4404_v56 = vadd.f32 %v1351_v63, %v4234_v45  ;;  %v1364_v3 = vmul.f32 %v1351_v63, %v1351_v63  ;;  %v1312_v24 = vadd.f32 %v1308_v62, %v1304_v46 }
 0x125   :  { %v1309_v45 = vmul.f32 %v4283_v28, %v5592_v15  ;;  %v1297_v35 = vadd.f32 %v1293_v59, %v5605_v50  ;;  %v1491_v42 = vadd.f32 %v1487_v57, %v1483_v34  ;;  %v1495_v62 = vmul.f32 %v1343_v48, %v5583_v49  ;;  %v4466_v50 = vld [vmem:[%s5364_s0 + $0x190] sm:$0xff] }
 0x126   :  { %5603 = vst [vmem:[#allocation12_spill] sm:$0xff] %v4404_v56  ;;  %v4421_v8 = vadd.f32 %v1364_v3, %v4243_v4  ;;  %v1320_v63 = vadd.f32 %v1316_v18, %v1312_v24  ;;  %v1344_v0 = vsel %vm82_vm1, %v1340_v40, %v1338_v20  ;;  %v1484_v28 = vmul.f32 %v4271_v12, %v2297_v16 }
 0x127   :  { %v1488_v29 = vmul.f32 %v1328_v9, %v2300_v17  ;;  %v1305_v4 = vadd.f32 %v1301_v61, %v1297_v35  ;;  %v1317_v7 = vmul.f32 %v4319_v26, %v2478_v32  ;;  %v1404_v58 = vmul.f32 %v4307_v52, %v2331_v33 }
 0x128   :  { %5604 = vst [vmem:[#allocation15_spill] sm:$0xff] %v4421_v8  ;;  %v1412_v34 = vmul.f32 %v4334_v10, %v2347_v37  ;;  %v4440_v57 = vadd.f32 %v1494_v14, %v1490_v5  ;;  %v1396_v20 = vmul.f32 %v4266_v2, %v2320_v27  ;;  %v1405_v40 = vmul.f32 %v1327_v6, %v2434_v38 }
 0x129   :  { %v1332_v46 = vmul.f32 %v1328_v9, %v2376_v51  ;;  %v1313_v18 = vadd.f32 %v1309_v45, %v1305_v4  ;;  %v5607_v61 = vrot.slane %v4314_v19, 1  ;;  %v5608_v3 = vrot.slane %v4319_v26, 1  ;;  %v4461_v45 = vld [vmem:[%s5364_s0 + $0x180] sm:$0xff] }
 0x12a   :  { %5606 = vst [vmem:[#allocation14_spill] sm:$0xff] %v4440_v57  ;;  %v1413_v59 = vmul.f32 %v1343_v48, %v5592_v15  ;;  %v4453_v10 = vadd.f32 %v1495_v62, %v1491_v42  ;;  %v1496_v5 = vmul.f32 %v1344_v0, %v2311_v21  ;;  %v1400_v2 = vadd.f32 %v1396_v20, %v4153_v53 }
 0x12b   :  { %v1329_v52 = vsel %vm59_vm0, %v5608_v3, %v5607_v61  ;;  %v1492_v14 = vadd.f32 %v1488_v29, %v1484_v28  ;;  %v1321_v6 = vadd.f32 %v1317_v7, %v1313_v18  ;;  %5610 = vst [vmem:[#allocation13_spill] sm:$0xff] %v4461_v45  ;;  %v1397_v48 = vmul.f32 %v4314_v19, %v2429_v31 }
 0x12c   :  { %5609 = vst [vmem:[#allocation11_spill] sm:$0xff] %v4453_v10  ;;  %v1333_v24 = vmul.f32 %v1329_v52, %v2484_v43  ;;  %v1348_v35 = vmul.f32 %v1344_v0, %v2399_v60  ;;  %v1485_v53 = vmul.f32 %v4319_v26, %v2413_v11  ;;  %v1489_v42 = vmul.f32 %v1329_v52, %v2416_v13 }
 0x12d   :  { %v1408_v62 = vadd.f32 %v1404_v58, %v1400_v2  ;;  %v1336_v28 = vadd.f32 %v1332_v46, %v1320_v63  ;;  %v1406_v29 = vmul.f32 %v1328_v9, %v2331_v33  ;;  %v1414_v4 = vmul.f32 %v1344_v0, %v2347_v37 }
 0x12e   :  { %v5611_v7 = vrot.slane %v4314_v19, 2  ;;  %v5612_v20 = vrot.slane %v4319_v26, 2  ;;  %v1420_v3 = vmul.f32 %v4461_v45, %v2355_v41  ;;  %v1428_v10 = vrot.slane %v4461_v45, 1  ;;  %v4492_v19 = vld [vmem:[%s5364_s0 + $0x188] sm:$0xff] }
 0x12f   :  { %v1416_v61 = vadd.f32 %v1412_v34, %v1408_v62  ;;  %v1430_v58 = vrot.slane %v4466_v50, 1  ;;  %v4486_v63 = vadd.f32 %v1496_v5, %v1492_v14  ;;  %v1337_v9 = vadd.f32 %v1333_v24, %v1321_v6  ;;  %v4497_v34 = vld [vmem:[%s5364_s0 + $0x198] sm:$0xff] }
 0x130   :  { %v1345_v18 = vsel %vm82_vm1, %v5612_v20, %v5611_v7  ;;  %v1401_v46 = vadd.f32 %v1397_v48, %v4214_v47  ;;  %v1493_v2 = vadd.f32 %v1489_v42, %v1485_v53  ;;  %v5445_v14 = vrot.slane %v4461_v45, 2 }
 0x131   :  { %5613 = vst [vmem:[#allocation7_spill] sm:$0xff] %v4486_v63  ;;  %v1349_v0 = vmul.f32 %v1345_v18, %v2498_v44  ;;  %v1497_v62 = vmul.f32 %v1345_v18, %v5583_v49  ;;  %v1432_v5 = vsel %vm59_vm0, %v1428_v10, %v1430_v58  ;;  %v4504_v6 = vadd.f32 %v1348_v35, %v1336_v28 }
 0x132   :  { %v1446_v24 = vrot.slane %v4466_v50, 2  ;;  %v1409_v7 = vadd.f32 %v1405_v40, %v1401_v46  ;;  %v1421_v20 = vmul.f32 %v4492_v19, %v2478_v32  ;;  %v1424_v63 = vadd.f32 %v1420_v3, %v1416_v61 }
 0x133   :  { %5614 = vst [vmem:[#allocation6_spill] sm:$0xff] %v4504_v6  ;;  %v1436_v8 = vmul.f32 %v1432_v5, %v2376_v51  ;;  %v1429_v47 = vrot.slane %v4492_v19, 1  ;;  %v1431_v48 = vrot.slane %v4497_v34, 1  ;;  %v4512_v53 = vadd.f32 %v1349_v0, %v1337_v9 }
 0x134   :  { %v1583_v42 = vmul.f32 %v4461_v45, %v2297_v16  ;;  %v1587_v35 = vmul.f32 %v1432_v5, %v2300_v17  ;;  %v1417_v28 = vadd.f32 %v1413_v59, %v1409_v7  ;;  %v1407_v40 = vmul.f32 %v1329_v52, %v2434_v38 }
 0x135   :  { %5615 = vst [vmem:[#allocation18_spill] sm:$0xff] %v4512_v53  ;;  %v1415_v46 = vmul.f32 %v1345_v18, %v5592_v15  ;;  %v1448_v61 = vsel %vm82_vm1, %v5445_v14, %v1446_v24  ;;  %v1433_v3 = vsel %vm59_vm0, %v1429_v47, %v1431_v48  ;;  %v1365_v9 = vmul.f32 %v4504_v6, %v4504_v6 }
 0x136   :  { %v1452_v0 = vmul.f32 %v1448_v61, %v2399_v60  ;;  %v1425_v56 = vadd.f32 %v1421_v20, %v1417_v28  ;;  %v1437_v59 = vmul.f32 %v1433_v3, %v2484_v43  ;;  %v1440_v7 = vadd.f32 %v1436_v8, %v1424_v63 }
 0x137   :  { %v1445_v52 = vrot.slane %v4492_v19, 2  ;;  %v1447_v18 = vrot.slane %v4497_v34, 2  ;;  %v1398_v25 = vmul.f32 %v4271_v12, %v2320_v27  ;;  %v1366_v14 = vmul.f32 %v4512_v53, %v4512_v53 }
 0x138   :  { %v4535_v57 = vadd.f32 %v1497_v62, %v1493_v2  ;;  %v1591_v32 = vadd.f32 %v1587_v35, %v1583_v42  ;;  %v1595_v45 = vmul.f32 %v1448_v61, %v2311_v21  ;;  %v4540_v20 = vadd.f32 %v4504_v6, %v4297_v36 }
 0x139   :  { %v1510_v8 = vmul.f32 %v1432_v5, %v2331_v33  ;;  %v1449_v63 = vsel %vm82_vm1, %v1445_v52, %v1447_v18  ;;  %v1402_v28 = vadd.f32 %v1398_v25, %v4249_v54  ;;  %v4547_v12 = vadd.f32 %v1365_v9, %v4322_v55 }
 0x13a   :  { %v1518_v2 = vmul.f32 %v1448_v61, %v2347_v37  ;;  %v1441_v62 = vadd.f32 %v1437_v59, %v1425_v56  ;;  %v1453_v42 = vmul.f32 %v1449_v63, %v2498_v44  ;;  %v4553_v35 = vadd.f32 %v4512_v53, %v4344_v30 }
 0x13b   :  { %v4555_v36 = vadd.f32 %v1452_v0, %v1440_v7  ;;  %v1410_v5 = vadd.f32 %v1406_v29, %v1402_v28  ;;  %v1422_v6 = vmul.f32 %v4466_v50, %v2355_v41  ;;  %v4560_v54 = vadd.f32 %v1366_v14, %v4357_v39  ;;  %v5618_v28 = vld [vmem:[#allocation13_spill] sm:$0xff] }
 0x13c   :  { %v4562_v55 = vadd.f32 %v1595_v45, %v1591_v32  ;;  %v4565_v25 = vmul.f32 %v1433_v3, %v2434_v38  ;;  %v1399_v56 = vmul.f32 %v4319_v26, %v2429_v31  ;;  %v1584_v30 = vmul.f32 %v4492_v19, %v2413_v11 }
 0x13d   :  { %5616 = vst [vmem:[#allocation17_spill] sm:$0xff] %v4555_v36  ;;  %v1588_v61 = vmul.f32 %v1433_v3, %v2416_v13  ;;  %v1418_v29 = vadd.f32 %v1414_v4, %v1410_v5  ;;  %v1434_v9 = vsel %vm59_vm0, %v1430_v58, %v1428_v10  ;;  %v4574_v0 = vadd.f32 %v1453_v42, %v1441_v62  ;;  %v5620_v42 = vld [vmem:[#allocation8_spill] sm:$0xff] }
 0x13e   :  { %v4577_v32 = vmul.f32 %v1449_v63, %v5592_v15  ;;  %v1438_v39 = vmul.f32 %v1434_v9, %v2376_v51  ;;  %v1403_v45 = vadd.f32 %v1399_v56, %v4418_v23  ;;  %v4583_v26 = vadd.f32 %v4555_v36, %v4377_v22  ;;  %v5621_v56 = vld [vmem:[#allocation14_spill] sm:$0xff] }
 0x13f   :  { %5617 = vst [vmem:[#allocation16_spill] sm:$0xff] %v4574_v0  ;;  %v1469_v14 = vmul.f32 %v4555_v36, %v4555_v36  ;;  %v1596_v4 = vmul.f32 %v1449_v63, %v5583_v49  ;;  %v1426_v3 = vadd.f32 %v1422_v6, %v1418_v29  ;;  %v1585_v10 = vmul.f32 %v4466_v50, %v2297_v16 }
 0x140   :  { %v1589_v58 = vmul.f32 %v1434_v9, %v2300_v17  ;;  %v1411_v59 = vadd.f32 %v1407_v40, %v1403_v45  ;;  %v1435_v7 = vsel %vm59_vm0, %v1431_v48, %v1429_v47  ;;  %v1592_v23 = vadd.f32 %v1588_v61, %v1584_v30  ;;  %v5622_v61 = vld [vmem:[#allocation5_spill] sm:$0xff] }
 0x141   :  { %v5619_v62 = vrot.slane %v5618_v28, 2  ;;  %v1423_v5 = vmul.f32 %v4497_v34, %v5620_v42  ;;  %v1502_v6 = vmul.f32 %v5618_v28, %v2320_v27  ;;  %v1470_v16 = vmul.f32 %v4574_v0, %v4574_v0 }
 0x142   :  { %v1442_v17 = vadd.f32 %v1438_v39, %v1426_v3  ;;  %v1419_v63 = vadd.f32 %v1415_v46, %v1411_v59  ;;  %v1586_v47 = vmul.f32 %v4497_v34, %v2413_v11  ;;  %v1590_v48 = vmul.f32 %v1435_v7, %v2416_v13  ;;  %v4622_v13 = vld [vmem:[%s5364_s0 + $0x1a0] sm:$0xff] }
 0x143   :  { %v1450_v22 = vsel %vm82_vm1, %v1446_v24, %v5619_v62  ;;  %v1506_v24 = vadd.f32 %v1502_v6, %v5621_v56  ;;  %v1503_v30 = vmul.f32 %v4492_v19, %v2429_v31  ;;  %v4611_v29 = vadd.f32 %v1469_v14, %v5622_v61  ;;  %v4627_v19 = vld [vmem:[%s5364_s0 + $0x1b0] sm:$0xff] }
 0x144   :  { %v1454_v40 = vmul.f32 %v1450_v22, %v2399_v60  ;;  %v1593_v45 = vadd.f32 %v1589_v58, %v1585_v10  ;;  %v1597_v28 = vmul.f32 %v1450_v22, %v2311_v21  ;;  %v1451_v39 = vsel %vm82_vm1, %v1447_v18, %v1445_v52  ;;  %v5623_v21 = vld [vmem:[#allocation12_spill] sm:$0xff]  ;;  %v5625_v58 = vld [vmem:[#allocation15_spill] sm:$0xff] }
 0x145   :  { %v4616_v46 = vadd.f32 %v1596_v4, %v1592_v23  ;;  %v1427_v3 = vadd.f32 %v1423_v5, %v1419_v63  ;;  %v1439_v11 = vmul.f32 %v1435_v7, %v2484_v43  ;;  %v1514_v14 = vadd.f32 %v1510_v8, %v1506_v24  ;;  %v5626_v5 = vld [vmem:[#allocation11_spill] sm:$0xff] }
 0x146   :  { %v4631_v10 = vadd.f32 %v4574_v0, %v5623_v21  ;;  %v4633_v52 = vadd.f32 %v1454_v40, %v1442_v17  ;;  %v1512_v18 = vmul.f32 %v1434_v9, %v2331_v33  ;;  %v1520_v4 = vmul.f32 %v1450_v22, %v2347_v37 }
 0x147   :  { %v4638_v59 = vadd.f32 %v1470_v16, %v5625_v58  ;;  %v1594_v23 = vadd.f32 %v1590_v48, %v1586_v47  ;;  %v1598_v62 = vmul.f32 %v1451_v39, %v5583_v49  ;;  %v1507_v6 = vadd.f32 %v1503_v30, %v5626_v5 }
 0x148   :  { %5624 = vst [vmem:[#allocation9_spill] sm:$0xff] %v4633_v52  ;;  %v4642_v63 = vadd.f32 %v1597_v28, %v1593_v45  ;;  %v1455_v8 = vmul.f32 %v1451_v39, %v2498_v44  ;;  %v1534_v56 = vrot.slane %v4622_v13, 1  ;;  %v1536_v17 = vrot.slane %v4627_v19, 1  ;;  %v4667_v45 = vld [vmem:[%s5364_s0 + $0x1b8] sm:$0xff] }
 0x149   :  { %v1443_v40 = vadd.f32 %v1439_v11, %v1427_v3  ;;  %v1522_v9 = vadd.f32 %v1518_v2, %v1514_v14  ;;  %v1526_v22 = vmul.f32 %v4622_v13, %v2355_v41  ;;  %v1504_v16 = vmul.f32 %v4466_v50, %v2320_v27  ;;  %v2098_v50 = vld [vmem:[%s5364_s0 + $0x1a8] sm:$0xff] }
 0x14a   :  { %v1471_v49 = vmul.f32 %v4633_v52, %v4633_v52  ;;  %v1538_v47 = vsel %vm59_vm0, %v1534_v56, %v1536_v17  ;;  %v1550_v48 = vrot.slane %v4622_v13, 2  ;;  %v1552_v24 = vrot.slane %v4627_v19, 2 }
 0x14b   :  { %v1513_v30 = vmul.f32 %v1435_v7, %v2434_v38  ;;  %v1521_v2 = vmul.f32 %v1451_v39, %v5592_v15  ;;  %v4659_v61 = vadd.f32 %v1598_v62, %v1594_v23  ;;  %v1515_v28 = vadd.f32 %v4565_v25, %v1507_v6  ;;  %v5628_v23 = vld [vmem:[#allocation7_spill] sm:$0xff] }
 0x14c   :  { %v4672_v3 = vadd.f32 %v4633_v52, %v4540_v20  ;;  %v1542_v7 = vmul.f32 %v1538_v47, %v2376_v51  ;;  %v1554_v39 = vsel %vm82_vm1, %v1550_v48, %v1552_v24  ;;  %v1527_v11 = vmul.f32 %v2098_v50, %v5620_v42 }
 0x14d   :  { %v4678_v14 = vadd.f32 %v1455_v8, %v1443_v40  ;;  %v1530_v21 = vadd.f32 %v1526_v22, %v1522_v9  ;;  %v1611_v58 = vmul.f32 %v1538_v47, %v2331_v33  ;;  %v1508_v62 = vadd.f32 %v1504_v16, %v5628_v23 }
 0x14e   :  { %v4683_v25 = vadd.f32 %v1471_v49, %v4547_v12  ;;  %v1558_v20 = vmul.f32 %v1554_v39, %v2399_v60  ;;  %v1535_v5 = vrot.slane %v2098_v50, 1  ;;  %v1537_v6 = vrot.slane %v4667_v45, 1 }
 0x14f   :  { %5627 = vst [vmem:[#allocation4_spill] sm:$0xff] %v4678_v14  ;;  %v1619_v52 = vmul.f32 %v1554_v39, %v2347_v37  ;;  %v1523_v0 = vadd.f32 %v4577_v32, %v1515_v28  ;;  %v1551_v36 = vrot.slane %v2098_v50, 2  ;;  %v1516_v8 = vadd.f32 %v1512_v18, %v1508_v62 }
 0x150   :  { %v1539_v40 = vsel %vm59_vm0, %v1535_v5, %v1537_v6  ;;  %v1553_v9 = vrot.slane %v4667_v45, 2  ;;  %v1528_v12 = vmul.f32 %v4627_v19, %v2355_v41  ;;  %v1505_v22 = vmul.f32 %v4497_v34, %v2429_v31 }
 0x151   :  { %v4698_v16 = vadd.f32 %v4678_v14, %v4553_v35  ;;  %v4702_v32 = vmul.f32 %v4678_v14, %v4678_v14  ;;  %v1546_v18 = vadd.f32 %v1542_v7, %v1530_v21  ;;  %v1524_v49 = vadd.f32 %v1520_v4, %v1516_v8 }
 0x152   :  { %v1543_v47 = vmul.f32 %v1539_v40, %v2484_v43  ;;  %v1555_v28 = vsel %vm82_vm1, %v1551_v36, %v1553_v9  ;;  %v1540_v39 = vsel %vm59_vm0, %v1536_v17, %v1534_v56  ;;  %v1509_v34 = vadd.f32 %v1505_v22, %v4535_v57 }
 0x153   :  { %v1531_v23 = vadd.f32 %v1527_v11, %v1523_v0  ;;  %v1559_v35 = vmul.f32 %v1555_v28, %v2498_v44  ;;  %v1612_v62 = vmul.f32 %v1539_v40, %v2434_v38  ;;  %v1544_v14 = vmul.f32 %v1540_v39, %v2376_v51 }
 0x154   :  { %v1532_v53 = vadd.f32 %v1528_v12, %v1524_v49  ;;  %v1517_v7 = vadd.f32 %v1513_v30, %v1509_v34  ;;  %v1529_v4 = vmul.f32 %v4667_v45, %v5620_v42  ;;  %v1603_v21 = vmul.f32 %v4622_v13, %v2320_v27 }
 0x155   :  { %v4717_v8 = vadd.f32 %v1558_v20, %v1546_v18  ;;  %v1620_v56 = vmul.f32 %v1555_v28, %v5592_v15  ;;  %v1556_v57 = vsel %vm82_vm1, %v1552_v24, %v1550_v48  ;;  %v1604_v0 = vmul.f32 %v2098_v50, %v2429_v31 }
 0x156   :  { %v1613_v17 = vmul.f32 %v1540_v39, %v2331_v33  ;;  %v1525_v11 = vadd.f32 %v1521_v2, %v1517_v7  ;;  %v1541_v30 = vsel %vm59_vm0, %v1537_v6, %v1535_v5  ;;  %v1607_v40 = vadd.f32 %v1603_v21, %v4562_v55 }
 0x157   :  { %v1560_v12 = vmul.f32 %v1556_v57, %v2399_v60  ;;  %v1545_v13 = vmul.f32 %v1541_v30, %v2484_v43  ;;  %v1557_v20 = vsel %vm82_vm1, %v1553_v9, %v1551_v36  ;;  %v1608_v22 = vadd.f32 %v1604_v0, %v4616_v46 }
 0x158   :  { %v1548_v48 = vadd.f32 %v1544_v14, %v1532_v53  ;;  %v1533_v24 = vadd.f32 %v1529_v4, %v1525_v11  ;;  %v1615_v50 = vadd.f32 %v1611_v58, %v1607_v40  ;;  %v1605_v33 = vmul.f32 %v4627_v19, %v2320_v27 }
 0x159   :  { %v1547_v2 = vadd.f32 %v1543_v47, %v1531_v23  ;;  %v1621_v5 = vmul.f32 %v1556_v57, %v2347_v37  ;;  %v1561_v55 = vmul.f32 %v1557_v20, %v2498_v44  ;;  %v1616_v6 = vadd.f32 %v1612_v62, %v1608_v22 }
 0x15a   :  { %v1614_v18 = vmul.f32 %v1541_v30, %v2434_v38  ;;  %v1623_v49 = vadd.f32 %v1619_v52, %v1615_v50  ;;  %v1627_v28 = vmul.f32 0.0, %v2355_v41  ;;  %v1609_v36 = vadd.f32 %v1605_v33, %v4642_v63 }
 0x15b   :  { %v1549_v46 = vadd.f32 %v1545_v13, %v1533_v24  ;;  %v1624_v53 = vadd.f32 %v1620_v56, %v1616_v6  ;;  %v1628_v14 = vmul.f32 0.0, %v5620_v42  ;;  %v1606_v27 = vmul.f32 %v4667_v45, %v2429_v31 }
 0x15c   :  { %v4742_v19 = vadd.f32 %v1560_v12, %v1548_v48  ;;  %v1629_v37 = vadd.f32 %v1627_v28, %v1623_v49  ;;  %v1633_v58 = vmul.f32 0.0, %v2376_v51  ;;  %v1617_v9 = vadd.f32 %v1613_v17, %v1609_v36 }
 0x15d   :  { %v1622_v38 = vmul.f32 %v1557_v20, %v5592_v15  ;;  %v1630_v52 = vadd.f32 %v1628_v14, %v1624_v53  ;;  %v1634_v41 = vmul.f32 0.0, %v2484_v43  ;;  %v1610_v63 = vadd.f32 %v1606_v27, %v4659_v61 }
 0x15e   :  { %v1635_v47 = vadd.f32 %v1633_v58, %v1629_v37  ;;  %v1639_v39 = vmul.f32 0.0, %v2399_v60  ;;  %v22_v42 = vadd.s32 8, %v2246_v1  ;;  %v1625_v34 = vadd.f32 %v1621_v5, %v1617_v9 }
 0x15f   :  { %v4750_v31 = vadd.f32 %v1559_v35, %v1547_v2  ;;  %v4752_v45 = vadd.f32 %v1561_v55, %v1549_v46  ;;  %v1636_v23 = vadd.f32 %v1634_v41, %v1630_v52  ;;  %v1618_v51 = vadd.f32 %v1614_v18, %v1610_v63 }
 0x160   :  { %v1575_v15 = vmul.f32 %v4717_v8, %v4717_v8  ;;  %v1577_v43 = vmul.f32 %v4742_v19, %v4742_v19  ;;  %v4758_v62 = vadd.f32 %v1639_v39, %v1635_v47  ;;  %v1631_v61 = vadd.f32 %v1627_v28, %v1625_v34 }
 0x161   :  { %v1476_v60 = vadd.f32 %v4702_v32, %v4560_v54  ;;  %v1571_v35 = vadd.f32 %v4717_v8, %v4583_v26  ;;  %v1640_v7 = vmul.f32 0.0, %v2498_v44  ;;  %v1626_v4 = vadd.f32 %v1622_v38, %v1618_v51 }
 0x162   :  { %v1573_v21 = vadd.f32 %v4742_v19, %v4672_v3  ;;  %vm24_vm2 = vcmp.lt.s32.totalorder %v22_v42, 14  ;;  %v1637_v56 = vadd.f32 %v1633_v58, %v1631_v61  ;;  %v1576_v57 = vmul.f32 %v4750_v31, %v4750_v31 }
 0x163   :  { %v1578_v0 = vmul.f32 %v4752_v45, %v4752_v45  ;;  %v4771_v17 = vadd.f32 %v1640_v7, %v1636_v23  ;;  %v1632_v54 = vadd.f32 %v1628_v14, %v1626_v4  ;;  %v1579_v32 = vadd.f32 %v1575_v15, %v4611_v29 }
 0x164   :  { %v1581_v26 = vadd.f32 %v1577_v43, %v4683_v25  ;;  %v1654_v44 = vmul.f32 %v4758_v62, %v4758_v62  ;;  %v4777_v11 = vadd.f32 %v1639_v39, %v1637_v56  ;;  %v1572_v3 = vadd.f32 %v4750_v31, %v4631_v10 }
 0x165   :  { %v1574_v30 = vadd.f32 %v4752_v45, %v4698_v16  ;;  %v2219_v40 = vmov 0.0   ;;  %v1638_v13 = vadd.f32 %v1634_v41, %v1632_v54  ;;  %v1650_v20 = vadd.f32 %v4758_v62, %v1571_v35 }
 0x166   :  { %v2004_v12 = vsel %vm24_vm2, 1.0, %v2219_v40  ;;  %v1652_v29 = vadd.f32 %v4777_v11, %v1573_v21  ;;  %v1656_v25 = vmul.f32 %v4777_v11, %v4777_v11  ;;  %v1580_v22 = vadd.f32 %v1576_v57, %v4638_v59 }
 0x167   :  { %v1582_v48 = vadd.f32 %v1578_v0, %v1476_v60  ;;  %v1655_v24 = vmul.f32 %v4771_v17, %v4771_v17  ;;  %v4790_v10 = vadd.f32 %v1640_v7, %v1638_v13  ;;  %v1658_v50 = vadd.f32 %v1654_v44, %v1579_v32 }
 0x168   :  { %v1660_v16 = vadd.f32 %v1656_v25, %v1581_v26  ;;  %v1664_v33 = vmul.f32 %v2004_v12, %v1652_v29  ;;  %v1651_v2 = vadd.f32 %v4771_v17, %v1572_v3  ;;  %v2220_v25 = vmov 1966171168  }
 0x169   :  { %v1653_v5 = vadd.f32 %v4790_v10, %v1574_v30  ;;  %v1657_v55 = vmul.f32 %v4790_v10, %v4790_v10  ;;  %v1659_v49 = vadd.f32 %v1655_v24, %v1580_v22  ;;  %v1717_v22 = vunpack.c.l.s4 %v2220_v25  ;;  %v2149_v25 = vld [vmem:[%s5365_s4 + $0xc0] sm:$0xff] }
 0x16a   :  { %v1666_v6 = vadd.f32 %v1664_v33, %v1650_v20  ;;  %v1682_v18 = vmul.f32 %v2004_v12, %v1660_v16 }
 0x16b   :  { %v1661_v59 = vadd.f32 %v1657_v55, %v1582_v48  ;;  %v1665_v28 = vmul.f32 %v2004_v12, %v1653_v5  ;;  %v1718_v48 = vunpack.c.0.s8 %v1717_v22  ;;  %v1712_v5 = vld [vmem:[%s5366_s2] sm:$0x3] }
 0x16c   :  { %v1667_v36 = vrot.slane %v1666_v6, 4  ;;  %v1684_v46 = vadd.f32 %v1682_v18, %v1658_v50 }
 0x16d   :  { %v1673_v53 = vadd.f32 %v1665_v28, %v1651_v2  ;;  %v1683_v14 = vmul.f32 %v2004_v12, %v1661_v59  ;;  %v4797_v50 = vsub.s32 %v1718_v48, %v2246_v1  ;;  %v1766_v1 = vld [vmem:[%s5365_s4 + $0x8] sm:$0xff]  ;;  %v1768_v59 = vld [vmem:[%s5365_s4 + $0x18] sm:$0xff]  ;;  %v2109_v28 = vld [vmem:[%s5365_s4 + $0x20] sm:$0xff] }
 0x16e   :  { %v1668_v27 = vadd.f32 %v1667_v36, %v1666_v6  ;;  %v1685_v37 = vrot.slane %v1684_v46, 4  ;;  %v1765_v6 = vld [vmem:[%s5365_s4] sm:$0xff]  ;;  %v2110_v36 = vld [vmem:[%s5365_s4 + $0x28] sm:$0xff] }
 0x16f   :  { %v1674_v58 = vrot.slane %v1673_v53, 4  ;;  %v1691_v9 = vadd.f32 %v1683_v14, %v1659_v49  ;;  %v1767_v49 = vld [vmem:[%s5365_s4 + $0x10] sm:$0xff] }
 0x170   :  { %v1669_v38 = vrot.slane %v1668_v27, 2  ;;  %v1686_v52 = vadd.f32 %v1685_v37, %v1684_v46  ;;  %v2111_v46 = vld [vmem:[%s5365_s4 + $0x30] sm:$0xff] }
 0x171   :  { %v1675_v41 = vadd.f32 %v1674_v58, %v1673_v53  ;;  %v1692_v63 = vrot.slane %v1691_v9, 4  ;;  %v5629_v53 = vld [vmem:[#allocation2_spill] sm:$0xff]  ;;  %v2112_v58 = vld [vmem:[%s5365_s4 + $0x38] sm:$0xff] }
 0x172   :  { %v1670_v47 = vadd.f32 %v1669_v38, %v1668_v27  ;;  %v1687_v39 = vrot.slane %v1686_v52, 2  ;;  %v5630_v27 = vld [vmem:[#allocation3_spill] sm:$0xff] }
 0x173   :  { %v1676_v42 = vrot.slane %v1675_v41, 2  ;;  %v1693_v34 = vadd.f32 %v1692_v63, %v1691_v9  ;;  %v2117_v9 = vld [vmem:[%s5365_s4 + $0x40] sm:$0xff]  ;;  %v2118_v38 = vld [vmem:[%s5365_s4 + $0x48] sm:$0xff] }
 0x174   :  { %v1671_v23 = vrot.slane %v1670_v47, 1  ;;  %v1688_v51 = vadd.f32 %v1687_v39, %v1686_v52  ;;  %v2119_v52 = vld [vmem:[%s5365_s4 + $0x50] sm:$0xff]  ;;  %v2125_v63 = vld [vmem:[%s5365_s4 + $0x60] sm:$0xff] }
 0x175   :  { %v1677_v15 = vadd.f32 %v1676_v42, %v1675_v41  ;;  %v1694_v43 = vrot.slane %v1693_v34, 2  ;;  %v2120_v41 = vld [vmem:[%s5365_s4 + $0x58] sm:$0xff] }
 0x176   :  { %v1672_v61 = vadd.f32 %v1671_v23, %v1670_v47  ;;  %v1689_v60 = vrot.slane %v1688_v51, 1  ;;  %v2126_v23 = vld [vmem:[%s5365_s4 + $0x68] sm:$0xff] }
 0x177   :  { %v1678_v35 = vrot.slane %v1677_v15, 1  ;;  %v1695_v7 = vadd.f32 %v1694_v43, %v1693_v34 }
 0x178   :  { %v1690_v4 = vadd.f32 %v1689_v60, %v1688_v51  ;;  %v1698_v21 = vmul.f32 0.0051020407, %v1672_v61  ;;  %v2127_v51 = vld [vmem:[%s5365_s4 + $0x70] sm:$0xff] }
 0x179   :  { %v1679_v56 = vadd.f32 %v1678_v35, %v1677_v15  ;;  %v1696_v57 = vrot.slane %v1695_v7, 1  ;;  %v2128_v15 = vld [vmem:[%s5365_s4 + $0x78] sm:$0xff] }
 0x17a   :  { %v1700_v0 = vmul.f32 0.0051020407, %v1690_v4  ;;  %v1702_v54 = vmul.f32 %v1698_v21, %v1698_v21  ;;  %v2134_v4 = vld [vmem:[%s5365_s4 + $0x88] sm:$0xff] }
 0x17b   :  { %v1697_v32 = vadd.f32 %v1696_v57, %v1695_v7  ;;  %v1699_v26 = vmul.f32 0.0051020407, %v1679_v56  ;;  %v2133_v7 = vld [vmem:[%s5365_s4 + $0x80] sm:$0xff] }
 0x17c   :  { %v1704_v44 = vsub.f32 %v1700_v0, %v1702_v54 }
 0x17d   :  { %v1701_v3 = vmul.f32 0.0051020407, %v1697_v32  ;;  %v1703_v30 = vmul.f32 %v1699_v26, %v1699_v26  ;;  %v2136_v32 = vld [vmem:[%s5365_s4 + $0x98] sm:$0xff] }
 0x17e   :  { %v1706_v40 = vmax.f32 %v1704_v44, 0.0  ;;  %v2142_v44 = vld [vmem:[%s5365_s4 + $0xa8] sm:$0xff] }
 0x17f   :  { %v1705_v12 = vsub.f32 %v1701_v3, %v1703_v30  ;;  %v1732_v3 = vld [vmem:[%s5367_s3] sm:$0x3] }
 0x180   :  { %v1708_v13 = vadd.f32 0.001, %v1706_v40 }
 0x181   :  { %v1707_v20 = vmax.f32 %v1705_v12, 0.0 }
 0x182   :  { %2215 = vrsqrt.f32 %v1708_v13 }
 0x183   :  { %v1709_v29 = vadd.f32 0.001, %v1707_v20  ;;  %v2143_v20 = vld [vmem:[%s5365_s4 + $0xb0] sm:$0xff] }
 0x185   :  { %2217 = vrsqrt.f32 %v1709_v29  ;;  %v2144_v29 = vld [vmem:[%s5365_s4 + $0xb8] sm:$0xff] }
 0x18c   :  { %v2216_v24 = vpop.eup %2215 }
 0x18f   :  { %v2218_v16 = vpop.eup %2217 }
 0x190   :  { %v1715_v33 = vcombine.low %v2216_v24, %v2218_v16 }
 0x192   :  { %v1722_v2 = vrot.slane %v1715_v33, %v4797_v50  ;;  %v2150_v33 = vld [vmem:[%s5365_s4 + $0xc8] sm:$0xff] }
 0x194   :  { %v1729_v55 = vrot.slane %v1722_v2, %v4797_v50  ;;  %v2151_v2 = vld [vmem:[%s5365_s4 + $0xd0] sm:$0xff] }
 0x196   :  { %v1731_v18 = vmul.f32 %v1729_v55, %v1712_v5  ;;  %v2152_v5 = vld [vmem:[%s5365_s4 + $0xd8] sm:$0xff] }
 0x198   :  { %v4826_v14 = vrot.slane %v1731_v18, %v5629_v53  ;;  %v4829_v37 = vrot.slane %v1731_v18, %v5630_v27 }
 0x19a   :  { %v1744_v47 = vmul.f32 %v4826_v14, %v1698_v21  ;;  %v1745_v39 = vmul.f32 %v4829_v37, %v1699_v26  ;;  %v4852_v42 = vmul.f32 %v1765_v6, %v4826_v14  ;;  %v4855_v34 = vmul.f32 %v1766_v1, %v4829_v37  ;;  %v2135_v21 = vld [vmem:[%s5365_s4 + $0x90] sm:$0xff]  ;;  %v2141_v26 = vld [vmem:[%s5365_s4 + $0xa0] sm:$0xff] }
 0x19b   :  { %v4867_v43 = vmul.f32 %v1767_v49, %v4826_v14  ;;  %v4870_v61 = vmul.f32 %v1768_v59, %v4829_v37  ;;  %v4873_v60 = vmul.f32 %v2109_v28, %v4826_v14  ;;  %v4876_v35 = vmul.f32 %v2110_v36, %v4829_v37  ;;  %v2157_v49 = vld [vmem:[%s5365_s4 + $0xe0] sm:$0xff]  ;;  %v2158_v59 = vld [vmem:[%s5365_s4 + $0xe8] sm:$0xff]  ;;  %v2159_v28 = vld [vmem:[%s5365_s4 + $0xf0] sm:$0xff] }
 0x19c   :  { %v1748_v56 = vcombine.low %v1744_v47, %v1745_v39  ;;  %v4888_v57 = vmul.f32 %v2111_v46, %v4826_v14  ;;  %v4891_v0 = vmul.f32 %v2112_v58, %v4829_v37  ;;  %v4894_v54 = vmul.f32 %v2117_v9, %v4826_v14 }
 0x19d   :  { %v4909_v30 = vmul.f32 %v2118_v38, %v4829_v37  ;;  %v4912_v40 = vmul.f32 %v2119_v52, %v4826_v14  ;;  %v4915_v12 = vmul.f32 %v2120_v41, %v4829_v37  ;;  %v4918_v13 = vmul.f32 %v2125_v63, %v4826_v14  ;;  %v2160_v38 = vld [vmem:[%s5365_s4 + $0xf8] sm:$0xff]  ;;  %v2165_v52 = vld [vmem:[%s5365_s4 + $0x100] sm:$0xff] }
 0x19e   :  { %v1755_v22 = vrot.slane %v1748_v56, %v4797_v50  ;;  %v4931_v48 = vmul.f32 %v2126_v23, %v4829_v37  ;;  %v4934_v24 = vmul.f32 %v2127_v51, %v4826_v14  ;;  %v4937_v16 = vmul.f32 %v2128_v15, %v4829_v37  ;;  %v2167_v23 = vld [vmem:[%s5365_s4 + $0x110] sm:$0xff]  ;;  %v2168_v51 = vld [vmem:[%s5365_s4 + $0x118] sm:$0xff]  ;;  %v2173_v15 = vld [vmem:[%s5365_s4 + $0x120] sm:$0xff] }
 0x19f   :  { %v4949_v55 = vmul.f32 %v2133_v7, %v4826_v14  ;;  %v4952_v6 = vmul.f32 %v2134_v4, %v4829_v37  ;;  %v4955_v18 = vmul.f32 %v2135_v21, %v4826_v14  ;;  %v4958_v1 = vmul.f32 %v2136_v32, %v4829_v37  ;;  %v2174_v32 = vld [vmem:[%s5365_s4 + $0x128] sm:$0xff] }
 0x1a0   :  { %v1762_v36 = vrot.slane %v1755_v22, %v4797_v50  ;;  %v4971_v46 = vmul.f32 %v2141_v26, %v4826_v14  ;;  %v4974_v58 = vmul.f32 %v2142_v44, %v4829_v37  ;;  %v4977_v9 = vmul.f32 %v2143_v20, %v4826_v14  ;;  %v2166_v50 = vld [vmem:[%s5365_s4 + $0x108] sm:$0xff]  ;;  %v2175_v26 = vld [vmem:[%s5365_s4 + $0x130] sm:$0xff]  ;;  %v2176_v44 = vld [vmem:[%s5365_s4 + $0x138] sm:$0xff] }
 0x1a1   :  { %v4989_v41 = vmul.f32 %v2144_v29, %v4829_v37  ;;  %v4992_v63 = vmul.f32 %v2149_v25, %v4826_v14  ;;  %v4995_v47 = vmul.f32 %v2150_v33, %v4829_v37  ;;  %v4998_v39 = vmul.f32 %v2151_v2, %v4826_v14 }
 0x1a2   :  { %v1764_v7 = vsub.f32 %v1732_v3, %v1762_v36  ;;  %v5010_v4 = vmul.f32 %v2152_v5, %v4829_v37  ;;  %v5013_v21 = vmul.f32 %v2157_v49, %v4826_v14  ;;  %v5016_v56 = vmul.f32 %v2158_v59, %v4829_v37 }
 0x1a3   :  { %v5028_v3 = vmul.f32 %v2159_v28, %v4826_v14  ;;  %v5031_v20 = vmul.f32 %v2160_v38, %v4829_v37  ;;  %v5034_v29 = vmul.f32 %v2165_v52, %v4826_v14  ;;  %v5037_v25 = vmul.f32 %v2166_v50, %v4829_v37 }
 0x1a4   :  { %v5040_v22 = vrot.slane %v1764_v7, %v5629_v53  ;;  %v5043_v33 = vrot.slane %v1764_v7, %v5630_v27  ;;  %v5046_v2 = vmul.f32 %v2167_v23, %v4826_v14  ;;  %v5049_v5 = vmul.f32 %v2168_v51, %v4829_v37 }
 0x1a5   :  { %v5052_v49 = vmul.f32 %v2173_v15, %v4826_v14  ;;  %v5055_v59 = vmul.f32 %v2174_v32, %v4829_v37  ;;  %v5058_v28 = vmul.f32 %v2175_v26, %v4826_v14  ;;  %v5061_v53 = vmul.f32 %v2176_v44, %v4829_v37 }
 0x1a6   :  { %v1784_v27 = vadd.f32 %v5040_v22, %v4852_v42  ;;  %v1785_v36 = vadd.f32 %v5043_v33, %v4855_v34  ;;  %v1786_v38 = vadd.f32 %v5040_v22, %v4867_v43  ;;  %v1787_v52 = vadd.f32 %v5043_v33, %v4870_v61 }
 0x1a7   :  { %v1800_v50 = vadd.f32 %v4873_v60, %v5040_v22  ;;  %v1801_v23 = vadd.f32 %v4876_v35, %v5043_v33  ;;  %v1802_v51 = vadd.f32 %v4888_v57, %v5040_v22  ;;  %v1803_v42 = vadd.f32 %v4891_v0, %v5043_v33 }
 0x1a8   :  { %1788 = vst [vmem:[%s5365_s4] sm:$0xff] %v1784_v27  ;;  %1789 = vst [vmem:[%s5365_s4 + $0x8] sm:$0xff] %v1785_v36  ;;  %v1816_v34 = vadd.f32 %v4894_v54, %v5040_v22  ;;  %v1817_v43 = vadd.f32 %v4909_v30, %v5043_v33  ;;  %v1818_v61 = vadd.f32 %v4912_v40, %v5040_v22  ;;  %v5635_v27 = vld [vmem:[#allocation9_spill] sm:$0xff] }
 0x1a9   :  { %1790 = vst [vmem:[%s5365_s4 + $0x10] sm:$0xff] %v1786_v38  ;;  %1791 = vst [vmem:[%s5365_s4 + $0x18] sm:$0xff] %v1787_v52  ;;  %v1819_v60 = vadd.f32 %v4915_v12, %v5043_v33  ;;  %v1832_v35 = vadd.f32 %v4918_v13, %v5040_v22  ;;  %v1833_v57 = vadd.f32 %v4931_v48, %v5043_v33  ;;  %v5636_v38 = vld [vmem:[#allocation4_spill] sm:$0xff] }
 0x1aa   :  { %2113 = vst [vmem:[%s5365_s4 + $0x20] sm:$0xff] %v1800_v50  ;;  %2114 = vst [vmem:[%s5365_s4 + $0x28] sm:$0xff] %v1801_v23  ;;  %v1834_v0 = vadd.f32 %v4934_v24, %v5040_v22  ;;  %v1835_v54 = vadd.f32 %v4937_v16, %v5043_v33  ;;  %v1848_v30 = vadd.f32 %v4949_v55, %v5040_v22 }
 0x1ab   :  { %2115 = vst [vmem:[%s5365_s4 + $0x30] sm:$0xff] %v1802_v51  ;;  %2116 = vst [vmem:[%s5365_s4 + $0x38] sm:$0xff] %v1803_v42  ;;  %v1849_v40 = vadd.f32 %v4952_v6, %v5043_v33  ;;  %v1850_v12 = vadd.f32 %v4955_v18, %v5040_v22  ;;  %v1851_v13 = vadd.f32 %v4958_v1, %v5043_v33 }
 0x1ac   :  { %2121 = vst [vmem:[%s5365_s4 + $0x40] sm:$0xff] %v1816_v34  ;;  %2122 = vst [vmem:[%s5365_s4 + $0x48] sm:$0xff] %v1817_v43  ;;  %v1864_v48 = vadd.f32 %v4971_v46, %v5040_v22  ;;  %v1865_v24 = vadd.f32 %v4974_v58, %v5043_v33  ;;  %v1866_v16 = vadd.f32 %v4977_v9, %v5040_v22 }
 0x1ad   :  { %2123 = vst [vmem:[%s5365_s4 + $0x50] sm:$0xff] %v1818_v61  ;;  %2124 = vst [vmem:[%s5365_s4 + $0x58] sm:$0xff] %v1819_v60  ;;  %v1867_v55 = vadd.f32 %v4989_v41, %v5043_v33  ;;  %v1880_v6 = vadd.f32 %v4992_v63, %v5040_v22  ;;  %v1881_v18 = vadd.f32 %v4995_v47, %v5043_v33  ;;  %v2181_v47 = vld [vmem:[%s5365_s4 + $0x140] sm:$0xff] }
 0x1ae   :  { %2129 = vst [vmem:[%s5365_s4 + $0x60] sm:$0xff] %v1832_v35  ;;  %2130 = vst [vmem:[%s5365_s4 + $0x68] sm:$0xff] %v1833_v57  ;;  %v1882_v1 = vadd.f32 %v4998_v39, %v5040_v22  ;;  %v1883_v46 = vadd.f32 %v5010_v4, %v5043_v33  ;;  %v1896_v58 = vadd.f32 %v5013_v21, %v5040_v22  ;;  %v2182_v39 = vld [vmem:[%s5365_s4 + $0x148] sm:$0xff] }
 0x1af   :  { %2131 = vst [vmem:[%s5365_s4 + $0x70] sm:$0xff] %v1834_v0  ;;  %2132 = vst [vmem:[%s5365_s4 + $0x78] sm:$0xff] %v1835_v54  ;;  %v1897_v9 = vadd.f32 %v5016_v56, %v5043_v33  ;;  %v1898_v41 = vadd.f32 %v5028_v3, %v5040_v22  ;;  %v1899_v63 = vadd.f32 %v5031_v20, %v5043_v33 }
 0x1b0   :  { %2137 = vst [vmem:[%s5365_s4 + $0x80] sm:$0xff] %v1848_v30  ;;  %2138 = vst [vmem:[%s5365_s4 + $0x88] sm:$0xff] %v1849_v40  ;;  %v1912_v15 = vadd.f32 %v5034_v29, %v5040_v22  ;;  %v1913_v7 = vadd.f32 %v5037_v25, %v5043_v33  ;;  %v1914_v4 = vadd.f32 %v5046_v2, %v5040_v22  ;;  %v5631_v29 = vld [vmem:[#allocation6_spill] sm:$0xff] }
 0x1b1   :  { %2139 = vst [vmem:[%s5365_s4 + $0x90] sm:$0xff] %v1850_v12  ;;  %2140 = vst [vmem:[%s5365_s4 + $0x98] sm:$0xff] %v1851_v13  ;;  %v1915_v21 = vadd.f32 %v5049_v5, %v5043_v33  ;;  %v1928_v56 = vadd.f32 %v5052_v49, %v5040_v22  ;;  %v1929_v32 = vadd.f32 %v5055_v59, %v5043_v33  ;;  %v5632_v2 = vld [vmem:[#allocation18_spill] sm:$0xff]  ;;  %v5633_v49 = vld [vmem:[#allocation17_spill] sm:$0xff] }
 0x1b2   :  { %2145 = vst [vmem:[%s5365_s4 + $0xa0] sm:$0xff] %v1864_v48  ;;  %2146 = vst [vmem:[%s5365_s4 + $0xa8] sm:$0xff] %v1865_v24  ;;  %v1930_v26 = vadd.f32 %v5058_v28, %v5040_v22  ;;  %v1931_v44 = vadd.f32 %v5061_v53, %v5043_v33  ;;  %v1940_v3 = vmul.f32 %v2181_v47, %v4826_v14  ;;  %v5634_v28 = vld [vmem:[#allocation16_spill] sm:$0xff] }
 0x1b3   :  { %2147 = vst [vmem:[%s5365_s4 + $0xb0] sm:$0xff] %v1866_v16  ;;  %2148 = vst [vmem:[%s5365_s4 + $0xb8] sm:$0xff] %v1867_v55  ;;  %v1941_v20 = vmul.f32 %v2182_v39, %v4829_v37  ;;  %v1942_v25 = vmul.f32 %v4826_v14, %v5631_v29  ;;  %v1943_v5 = vmul.f32 %v4829_v37, %v5632_v2 }
 0x1b4   :  { %2153 = vst [vmem:[%s5365_s4 + $0xc0] sm:$0xff] %v1880_v6  ;;  %2154 = vst [vmem:[%s5365_s4 + $0xc8] sm:$0xff] %v1881_v18  ;;  %v1956_v59 = vmul.f32 %v4826_v14, %v5633_v49  ;;  %v1957_v53 = vmul.f32 %v4829_v37, %v5634_v28  ;;  %v1958_v36 = vmul.f32 %v4826_v14, %v5635_v27 }
 0x1b5   :  { %2155 = vst [vmem:[%s5365_s4 + $0xd0] sm:$0xff] %v1882_v1  ;;  %2156 = vst [vmem:[%s5365_s4 + $0xd8] sm:$0xff] %v1883_v46  ;;  %v1959_v52 = vmul.f32 %v4829_v37, %v5636_v38  ;;  %v1944_v50 = vadd.f32 %v1940_v3, %v5040_v22  ;;  %v1945_v23 = vadd.f32 %v1941_v20, %v5043_v33 }
 0x1b6   :  { %2161 = vst [vmem:[%s5365_s4 + $0xe0] sm:$0xff] %v1896_v58  ;;  %2162 = vst [vmem:[%s5365_s4 + $0xe8] sm:$0xff] %v1897_v9  ;;  %v1946_v51 = vadd.f32 %v1942_v25, %v5040_v22  ;;  %v1947_v42 = vadd.f32 %v1943_v5, %v5043_v33  ;;  %v1960_v34 = vadd.f32 %v1956_v59, %v5040_v22 }
 0x1b7   :  { %2163 = vst [vmem:[%s5365_s4 + $0xf0] sm:$0xff] %v1898_v41  ;;  %2164 = vst [vmem:[%s5365_s4 + $0xf8] sm:$0xff] %v1899_v63  ;;  %v1961_v43 = vadd.f32 %v1957_v53, %v5043_v33  ;;  %v1962_v61 = vadd.f32 %v1958_v36, %v5040_v22  ;;  %v1963_v60 = vadd.f32 %v1959_v52, %v5043_v33 }
 0x1b8   :  { %2169 = vst [vmem:[%s5365_s4 + $0x100] sm:$0xff] %v1912_v15  ;;  %2170 = vst [vmem:[%s5365_s4 + $0x108] sm:$0xff] %v1913_v7  ;;  %v1972_v35 = vmul.f32 %v4826_v14, %v4717_v8  ;;  %v1973_v57 = vmul.f32 %v4829_v37, %v4750_v31  ;;  %v1974_v0 = vmul.f32 %v4826_v14, %v4742_v19 }
 0x1b9   :  { %2171 = vst [vmem:[%s5365_s4 + $0x110] sm:$0xff] %v1914_v4  ;;  %2172 = vst [vmem:[%s5365_s4 + $0x118] sm:$0xff] %v1915_v21  ;;  %v1975_v54 = vmul.f32 %v4829_v37, %v4752_v45  ;;  %v1988_v8 = vmul.f32 %v4826_v14, %v4758_v62  ;;  %v1989_v19 = vmul.f32 %v4829_v37, %v4771_v17 }
 0x1ba   :  { %2177 = vst [vmem:[%s5365_s4 + $0x120] sm:$0xff] %v1928_v56  ;;  %2178 = vst [vmem:[%s5365_s4 + $0x128] sm:$0xff] %v1929_v32  ;;  %v1990_v31 = vmul.f32 %v4826_v14, %v4777_v11  ;;  %v1991_v45 = vmul.f32 %v4829_v37, %v4790_v10  ;;  %v1976_v30 = vadd.f32 %v1972_v35, %v5040_v22 }
 0x1bb   :  { %2179 = vst [vmem:[%s5365_s4 + $0x130] sm:$0xff] %v1930_v26  ;;  %2180 = vst [vmem:[%s5365_s4 + $0x138] sm:$0xff] %v1931_v44  ;;  %v1977_v40 = vadd.f32 %v1973_v57, %v5043_v33  ;;  %v1978_v12 = vadd.f32 %v1974_v0, %v5040_v22  ;;  %v1979_v13 = vadd.f32 %v1975_v54, %v5043_v33 }
 0x1bc   :  { %2185 = vst [vmem:[%s5365_s4 + $0x140] sm:$0xff] %v1944_v50  ;;  %2186 = vst [vmem:[%s5365_s4 + $0x148] sm:$0xff] %v1945_v23  ;;  %v1992_v48 = vadd.f32 %v1988_v8, %v5040_v22  ;;  %v1993_v62 = vadd.f32 %v1989_v19, %v5043_v33  ;;  %v1994_v17 = vadd.f32 %v1990_v31, %v5040_v22 }
 0x1bd   :  { %2187 = vst [vmem:[%s5365_s4 + $0x150] sm:$0xff] %v1946_v51  ;;  %2188 = vst [vmem:[%s5365_s4 + $0x158] sm:$0xff] %v1947_v42  ;;  %v1995_v24 = vadd.f32 %v1991_v45, %v5043_v33 }
 0x1be   :  { %2193 = vst [vmem:[%s5365_s4 + $0x160] sm:$0xff] %v1960_v34  ;;  %2194 = vst [vmem:[%s5365_s4 + $0x168] sm:$0xff] %v1961_v43 }
 0x1bf   :  { %2195 = vst [vmem:[%s5365_s4 + $0x170] sm:$0xff] %v1962_v61  ;;  %2196 = vst [vmem:[%s5365_s4 + $0x178] sm:$0xff] %v1963_v60 }
 0x1c0   :  { %2201 = vst [vmem:[%s5365_s4 + $0x180] sm:$0xff] %v1976_v30  ;;  %2202 = vst [vmem:[%s5365_s4 + $0x188] sm:$0xff] %v1977_v40 }
 0x1c1   :  { %2203 = vst [vmem:[%s5365_s4 + $0x190] sm:$0xff] %v1978_v12  ;;  %2204 = vst [vmem:[%s5365_s4 + $0x198] sm:$0xff] %v1979_v13 }
 0x1c2   :  { %2209 = vst [vmem:[%s5365_s4 + $0x1a0] sm:$0xff] %v1992_v48  ;;  %2210 = vst [vmem:[%s5365_s4 + $0x1a8] sm:$0xff] %v1993_v62 }
 0x1c3   :  { %2211 = vst [vmem:[%s5365_s4 + $0x1b0] sm:$0xff] %v1994_v17  ;;  %2212 = vst [vmem:[%s5365_s4 + $0x1b8] sm:$0xff] %v1995_v24 }

</bundles_post_ra>
